<compile_context>
chip_gen: v5e
topology: v5e:2x2
jax: 0.10.0
libtpu: 0.0.40
codegen_flags: <defaults>
</compile_context>

<pallas_src>
import jax
import jax.numpy as jnp
from jax.experimental import pallas as pl
from jax.experimental.pallas import tpu as pltpu

_LANE = 128            # output lane padding for the tiny final layers
_H1 = 1024             # hidden size of layer 1 (per branch)
_H2 = 512              # hidden size of layer 2 (per branch)
_P_OUT = 5             # fc3_1 output width (branch p)


# ----------------------------------------------------------------------------
# Kernel
# ----------------------------------------------------------------------------
def baseline_kernel(
    alpha_ref,                     # SMEM (4,) f32: [a1p, a2p, a1a, a2a]
    x_ref,                         # (tb, inputsize) bf16
    w1_ref, b1_ref,                # (inputsize, 2048) bf16 / (1, 2048) f32  (BN folded, p|a concat)
    w2p_ref, b2p_ref,              # (1024, 512) bf16 / (1, 512) f32         (BN folded)
    w2a_ref, b2a_ref,              # (1024, 512) bf16 / (1, 512) f32         (BN folded)
    w3p_ref, b3p_ref,              # (512, 128) bf16 / (1, 128) f32          (BN folded, lane-padded)
    w3a_ref, b3a_ref,              # (512, 128) bf16 / (1, 128) f32          (lane-padded)
    out_a_ref, out_p_ref,          # (tb, 128) f32 each (lane-padded)
):
    x = x_ref[...]                                             # bf16

    a1p = alpha_ref[0]
    a2p = alpha_ref[1]
    a1a = alpha_ref[2]
    a2a = alpha_ref[3]

    # ---- layer 1 for BOTH branches in one MXU pass (shared input x) ----
    h1 = jnp.dot(x, w1_ref[...], preferred_element_type=jnp.float32) + b1_ref[...]
    hp = h1[:, :_H1]               # branch p pre-activation (f32), lane-aligned slice
    ha = h1[:, _H1:]               # branch a pre-activation (f32), lane-aligned slice

    # PReLU (dropout is identity in eval mode); cast to bf16 for the next MXU pass
    hp = jnp.where(hp > 0, hp, a1p * hp).astype(jnp.bfloat16)
    ha = jnp.where(ha > 0, ha, a1a * ha).astype(jnp.bfloat16)

    # ---- layer 2 ----
    hp = jnp.dot(hp, w2p_ref[...], preferred_element_type=jnp.float32) + b2p_ref[...]
    hp = jnp.where(hp > 0, hp, a2p * hp).astype(jnp.bfloat16)

    ha = jnp.dot(ha, w2a_ref[...], preferred_element_type=jnp.float32) + b2a_ref[...]
    ha = jnp.where(ha > 0, ha, a2a * ha).astype(jnp.bfloat16)

    # ---- layer 3 (lane-padded to 128 output columns -> unmasked stores) ----
    zp = jnp.dot(hp, w3p_ref[...], preferred_element_type=jnp.float32) + b3p_ref[...]
    out_p_ref[...] = jnp.tanh(zp)

    za = jnp.dot(ha, w3a_ref[...], preferred_element_type=jnp.float32) + b3a_ref[...]
    out_a_ref[...] = jax.nn.sigmoid(za)


# ----------------------------------------------------------------------------
# Wrapper
# ----------------------------------------------------------------------------
def baseline_model_pallas(x, kp, num_classes):
    """Fused BaselineModel forward (eval mode). Returns (out_a, out_p)."""
    B, inputsize = x.shape
    tb = B if B <= 256 else 256
    assert B % tb == 0 and tb % 8 == 0, "batch must be a multiple of 8"
    grid = (B // tb,)

    x_bf16 = x.astype(jnp.bfloat16)

    const = lambda i: (0, 0)                    # weight/bias blocks: resident across grid
    batch = lambda i: (i, 0)                    # batch-tiled blocks

    in_specs = [
        pl.BlockSpec(memory_space=pltpu.MemorySpace.SMEM),     # alpha scalars
        pl.BlockSpec((tb, inputsize), batch),                  # x
        pl.BlockSpec((inputsize, 2 * _H1), const),             # w1 (p|a concat)
        pl.BlockSpec((1, 2 * _H1), const),                     # b1
        pl.BlockSpec((_H1, _H2), const),                       # w2p
        pl.BlockSpec((1, _H2), const),                         # b2p
        pl.BlockSpec((_H1, _H2), const),                       # w2a
        pl.BlockSpec((1, _H2), const),                         # b2a
        pl.BlockSpec((_H2, _LANE), const),                     # w3p (padded)
        pl.BlockSpec((1, _LANE), const),                       # b3p (padded)
        pl.BlockSpec((_H2, _LANE), const),                     # w3a (padded)
        pl.BlockSpec((1, _LANE), const),                       # b3a (padded)
    ]
    out_specs = (
        pl.BlockSpec((tb, _LANE), batch),                      # out_a (padded)
        pl.BlockSpec((tb, _LANE), batch),                      # out_p (padded)
    )

    out_a_pad, out_p_pad = pl.pallas_call(
        baseline_kernel,
        grid=grid,
        in_specs=in_specs,
        out_specs=out_specs,
        out_shape=(
            jax.ShapeDtypeStruct((B, _LANE), jnp.float32),
            jax.ShapeDtypeStruct((B, _LANE), jnp.float32),
        ),
        compiler_params=pltpu.CompilerParams(
            dimension_semantics=("parallel",),
            vmem_limit_bytes=32 << 20,
        ),
    )(
        kp["alpha"], x_bf16,
        kp["w1"], kp["b1"],
        kp["w2p"], kp["b2p"],
        kp["w2a"], kp["b2a"],
        kp["w3p"], kp["b3p"],
        kp["w3a"], kp["b3a"],
    )

    out_a = out_a_pad[:, :num_classes]
    out_p = out_p_pad[:, :_P_OUT]
    return out_a, out_p


# ----------------------------------------------------------------------------
# Parameter construction (PyTorch-equivalent raw params) + host-side folding
# ----------------------------------------------------------------------------
def make_raw_params(key, inputsize, num_classes):
    """Deterministic synthetic params matching BaselineModel's shapes (eval mode)."""
    keys = jax.random.split(key, 32)
    ki = iter(range(32))

    def lin(kin, kout):
        bound = 1.0 / jnp.sqrt(jnp.float32(kin))
        w = jax.random.uniform(keys[next(ki)], (kin, kout), jnp.float32, -bound, bound)
        b = jax.random.uniform(keys[next(ki)], (kout,), jnp.float32, -bound, bound)
        return w, b

    def bn(h):
        gamma = 1.0 + 0.1 * jax.random.normal(keys[next(ki)], (h,), jnp.float32)
        beta = 0.1 * jax.random.normal(keys[next(ki)], (h,), jnp.float32)
        mean = 0.1 * jax.random.normal(keys[next(ki)], (h,), jnp.float32)
        var = 0.5 + jax.random.uniform(keys[next(ki)], (h,), jnp.float32)
        return gamma, beta, mean, var

    p = {}
    # branch p
    p["W1p"], p["b1p"] = lin(inputsize, _H1)
    p["bn1p"] = bn(_H1)
    p["a1p"] = jnp.float32(0.25)               # PReLU default alpha
    p["W2p"], p["b2p"] = lin(_H1, _H2)
    p["bn2p"] = bn(_H2)
    p["a2p"] = jnp.float32(0.25)
    p["W3p"], p["b3p"] = lin(_H2, _P_OUT)
    p["bn3p"] = bn(_P_OUT)
    # branch a
    p["W1a"], p["b1a"] = lin(inputsize, _H1)
    p["bn1a"] = bn(_H1)
    p["a1a"] = jnp.float32(0.25)
    p["W2a"], p["b2a"] = lin(_H1, _H2)
    p["bn2a"] = bn(_H2)
    p["a2a"] = jnp.float32(0.25)
    p["W3a"], p["b3a"] = lin(_H2, num_classes)
    return p


def _fold_bn(W, b, bn_params, eps=1e-5):
    """Fold eval-mode BatchNorm1d into the preceding Linear: y = x @ W' + b'."""
    gamma, beta, mean, var = bn_params
    scale = gamma / jnp.sqrt(var + eps)
    return W * scale[None, :], (b - mean) * scale + beta


def prepare_kernel_params(raw, num_classes):
    """Fold BN, concat layer-1 branches, pad tiny last layers, cast MXU operands to bf16."""
    W1p, b1p = _fold_bn(raw["W1p"], raw["b1p"], raw["bn1p"])
    W2p, b2p = _fold_bn(raw["W2p"], raw["b2p"], raw["bn2p"])
    W3p, b3p = _fold_bn(raw["W3p"], raw["b3p"], raw["bn3p"])
    W1a, b1a = _fold_bn(raw["W1a"], raw["b1a"], raw["bn1a"])
    W2a, b2a = _fold_bn(raw["W2a"], raw["b2a"], raw["bn2a"])
    W3a, b3a = raw["W3a"], raw["b3a"]          # fc3_2 has no BatchNorm

    kp = {}
    kp["w1"] = jnp.concatenate([W1p, W1a], axis=1).astype(jnp.bfloat16)      # [in, 2048]
    kp["b1"] = jnp.concatenate([b1p, b1a])[None, :].astype(jnp.float32)      # [1, 2048]
    kp["w2p"] = W2p.astype(jnp.bfloat16)
    kp["b2p"] = b2p[None, :].astype(jnp.float32)
    kp["w2a"] = W2a.astype(jnp.bfloat16)
    kp["b2a"] = b2a[None, :].astype(jnp.float32)
    kp["w3p"] = jnp.pad(W3p, ((0, 0), (0, _LANE - _P_OUT))).astype(jnp.bfloat16)
    kp["b3p"] = jnp.pad(b3p, (0, _LANE - _P_OUT))[None, :].astype(jnp.float32)
    kp["w3a"] = jnp.pad(W3a, ((0, 0), (0, _LANE - num_classes))).astype(jnp.bfloat16)
    kp["b3a"] = jnp.pad(b3a, (0, _LANE - num_classes))[None, :].astype(jnp.float32)
    kp["alpha"] = jnp.array([raw["a1p"], raw["a2p"], raw["a1a"], raw["a2a"]], jnp.float32)
    return kp


# ----------------------------------------------------------------------------
# References
# ----------------------------------------------------------------------------
def reference_forward_f32(x, raw, eps=1e-5):
    """Pure-JAX f32 reference with the original (unfolded) eval-mode semantics."""
    def bn(y, params):
        g, b, m, v = params
        return (y - m) / jnp.sqrt(v + eps) * g + b

    def prelu(v, a):
        return jnp.where(v > 0, v, a * v)

    h = prelu(bn(x @ raw["W1p"] + raw["b1p"], raw["bn1p"]), raw["a1p"])
    h = prelu(bn(h @ raw["W2p"] + raw["b2p"], raw["bn2p"]), raw["a2p"])
    out_p = jnp.tanh(bn(h @ raw["W3p"] + raw["b3p"], raw["bn3p"]))

    g = prelu(bn(x @ raw["W1a"] + raw["b1a"], raw["bn1a"]), raw["a1a"])
    g = prelu(bn(g @ raw["W2a"] + raw["b2a"], raw["bn2a"]), raw["a2a"])
    out_a = jax.nn.sigmoid(g @ raw["W3a"] + raw["b3a"])
    return out_a, out_p


def reference_forward_bf16(x, kp, num_classes):
    """Pure-JAX reference that mirrors the kernel's bf16/f32 mixed-precision math."""
    xb = x.astype(jnp.bfloat16)
    a1p, a2p, a1a, a2a = kp["alpha"]

    h1 = jnp.dot(xb, kp["w1"], preferred_element_type=jnp.float32) + kp["b1"]
    hp, ha = h1[:, :_H1], h1[:, _H1:]
    hp = jnp.where(hp > 0, hp, a1p * hp).astype(jnp.bfloat16)
    ha = jnp.where(ha > 0, ha, a1a * ha).astype(jnp.bfloat16)

    hp = jnp.dot(hp, kp["w2p"], preferred_element_type=jnp.float32) + kp["b2p"]
    hp = jnp.where(hp > 0, hp, a2p * hp).astype(jnp.bfloat16)
    ha = jnp.dot(ha, kp["w2a"], preferred_element_type=jnp.float32) + kp["b2a"]
    ha = jnp.where(ha > 0, ha, a2a * ha).astype(jnp.bfloat16)

    zp = jnp.dot(hp, kp["w3p"], preferred_element_type=jnp.float32) + kp["b3p"]
    za = jnp.dot(ha, kp["w3a"], preferred_element_type=jnp.float32) + kp["b3a"]
    return jax.nn.sigmoid(za)[:, :num_classes], jnp.tanh(zp)[:, :_P_OUT]


# ----------------------------------------------------------------------------
if __name__ == "__main__":
    B = 8
    INPUTSIZE = 64
    NUM_CLASSES = 3
    # keep_probability only sets the dropout rate; dropout is identity in eval mode.

    key = jax.random.PRNGKey(0)
    k_x, k_p = jax.random.split(key)
    x = jax.random.normal(k_x, (B, INPUTSIZE), jnp.float32)

    raw = make_raw_params(k_p, INPUTSIZE, NUM_CLASSES)
    kparams = prepare_kernel_params(raw, NUM_CLASSES)

    out_a, out_p = baseline_model_pallas(x, kparams, NUM_CLASSES)
    out_a, out_p = jax.block_until_ready((out_a, out_p))

    assert out_a.shape == (B, NUM_CLASSES) and out_p.shape == (B, _P_OUT)

    # Tight check against a JAX reference that mirrors the kernel's bf16 math.
    ref_a16, ref_p16 = reference_forward_bf16(x, kparams, NUM_CLASSES)
    assert jnp.allclose(out_a, ref_a16, atol=2e-3, rtol=2e-3)
    assert jnp.allclose(out_p, ref_p16, atol=2e-3, rtol=2e-3)

    # Loose check against the original full-f32 module semantics
    # (difference = bf16 weight/activation quantization only).
    ref_a32, ref_p32 = reference_forward_f32(x, raw)
    assert jnp.allclose(out_a, ref_a32, atol=6e-2, rtol=6e-2)
    assert jnp.allclose(out_p, ref_p32, atol=6e-2, rtol=6e-2)

    print("KERNEL_OK")
</pallas_src>

<mosaic_0001>
module attributes {stable_mosaic.version = 11 : i64} {
  func.func @baseline_kernel(%arg0: i32, %arg1: memref<4xf32, #tpu.memory_space<smem>>, %arg2: memref<8x64xbf16, #tpu.memory_space<vmem>>, %arg3: memref<64x2048xbf16, #tpu.memory_space<vmem>>, %arg4: memref<1x2048xf32, #tpu.memory_space<vmem>>, %arg5: memref<1024x512xbf16, #tpu.memory_space<vmem>>, %arg6: memref<1x512xf32, #tpu.memory_space<vmem>>, %arg7: memref<1024x512xbf16, #tpu.memory_space<vmem>>, %arg8: memref<1x512xf32, #tpu.memory_space<vmem>>, %arg9: memref<512x128xbf16, #tpu.memory_space<vmem>>, %arg10: memref<1x128xf32, #tpu.memory_space<vmem>>, %arg11: memref<512x128xbf16, #tpu.memory_space<vmem>>, %arg12: memref<1x128xf32, #tpu.memory_space<vmem>>, %arg13: memref<8x128xf32, #tpu.memory_space<vmem>>, %arg14: memref<8x128xf32, #tpu.memory_space<vmem>>) attributes {dimension_semantics = [#tpu.dimension_semantics<parallel>], iteration_bounds = array<i64: 1>, scalar_prefetch = 0 : i64, scratch_operands = 0 : i64, tpu.core_type = #tpu.core_type<tc>, window_params = [{transform_indices = @transform_0, window_bounds = array<i64: 4>}, {transform_indices = @transform_1, window_bounds = array<i64: 8, 64>}, {pipeline_mode = #tpu.pipeline_mode<synchronous>, transform_indices = @transform_2, window_bounds = array<i64: 64, 2048>}, {pipeline_mode = #tpu.pipeline_mode<synchronous>, transform_indices = @transform_3, window_bounds = array<i64: 1, 2048>}, {pipeline_mode = #tpu.pipeline_mode<synchronous>, transform_indices = @transform_4, window_bounds = array<i64: 1024, 512>}, {pipeline_mode = #tpu.pipeline_mode<synchronous>, transform_indices = @transform_5, window_bounds = array<i64: 1, 512>}, {pipeline_mode = #tpu.pipeline_mode<synchronous>, transform_indices = @transform_6, window_bounds = array<i64: 1024, 512>}, {pipeline_mode = #tpu.pipeline_mode<synchronous>, transform_indices = @transform_7, window_bounds = array<i64: 1, 512>}, {pipeline_mode = #tpu.pipeline_mode<synchronous>, transform_indices = @transform_8, window_bounds = array<i64: 512, 128>}, {pipeline_mode = #tpu.pipeline_mode<synchronous>, transform_indices = @transform_9, window_bounds = array<i64: 1, 128>}, {pipeline_mode = #tpu.pipeline_mode<synchronous>, transform_indices = @transform_10, window_bounds = array<i64: 512, 128>}, {pipeline_mode = #tpu.pipeline_mode<synchronous>, transform_indices = @transform_11, window_bounds = array<i64: 1, 128>}, {transform_indices = @transform_12, window_bounds = array<i64: 8, 128>}, {transform_indices = @transform_13, window_bounds = array<i64: 8, 128>}]} {
    %c0 = arith.constant 0 : index
    %c0_0 = arith.constant 0 : index
    %0 = vector.load %arg2[%c0, %c0_0] : memref<8x64xbf16, #tpu.memory_space<vmem>>, vector<8x64xbf16>
    %c0_1 = arith.constant 0 : index
    %1 = memref.load %arg1[%c0_1] : memref<4xf32, #tpu.memory_space<smem>>
    %c1 = arith.constant 1 : index
    %2 = memref.load %arg1[%c1] : memref<4xf32, #tpu.memory_space<smem>>
    %c2 = arith.constant 2 : index
    %3 = memref.load %arg1[%c2] : memref<4xf32, #tpu.memory_space<smem>>
    %c3 = arith.constant 3 : index
    %4 = memref.load %arg1[%c3] : memref<4xf32, #tpu.memory_space<smem>>
    %c0_2 = arith.constant 0 : index
    %c0_3 = arith.constant 0 : index
    %5 = vector.load %arg3[%c0_2, %c0_3] : memref<64x2048xbf16, #tpu.memory_space<vmem>>, vector<64x2048xbf16>
    %cst = arith.constant dense<0.000000e+00> : vector<8x2048xf32>
    %6 = tpu.matmul %0, %5, %cst {dimension_numbers = #tpu.dot_dimension_numbers<[1], [0], [0], [1], [0, 0, 1, 1], [], []>} : vector<8x64xbf16>, vector<64x2048xbf16>, vector<8x2048xf32> -> vector<8x2048xf32>
    %c0_4 = arith.constant 0 : index
    %c0_5 = arith.constant 0 : index
    %7 = vector.load %arg4[%c0_4, %c0_5] : memref<1x2048xf32, #tpu.memory_space<vmem>>, vector<1x2048xf32>
    %8 = vector.broadcast %7 : vector<1x2048xf32> to vector<8x2048xf32>
    %9 = arith.addf %6, %8 : vector<8x2048xf32>
    %10 = vector.extract_strided_slice %9 {offsets = [0, 0], sizes = [8, 1024], strides = [1, 1]} : vector<8x2048xf32> to vector<8x1024xf32>
    %11 = vector.extract_strided_slice %9 {offsets = [0, 1024], sizes = [8, 1024], strides = [1, 1]} : vector<8x2048xf32> to vector<8x1024xf32>
    %cst_6 = arith.constant 0.000000e+00 : f32
    %12 = vector.broadcast %cst_6 : f32 to vector<8x1024xf32>
    %13 = arith.cmpf ogt, %10, %12 : vector<8x1024xf32>
    %14 = vector.broadcast %1 : f32 to vector<8x1024xf32>
    %15 = arith.mulf %14, %10 : vector<8x1024xf32>
    %16 = arith.select %13, %10, %15 : vector<8x1024xi1>, vector<8x1024xf32>
    %17 = arith.truncf %16 : vector<8x1024xf32> to vector<8x1024xbf16>
    %cst_7 = arith.constant 0.000000e+00 : f32
    %18 = vector.broadcast %cst_7 : f32 to vector<8x1024xf32>
    %19 = arith.cmpf ogt, %11, %18 : vector<8x1024xf32>
    %20 = vector.broadcast %3 : f32 to vector<8x1024xf32>
    %21 = arith.mulf %20, %11 : vector<8x1024xf32>
    %22 = arith.select %19, %11, %21 : vector<8x1024xi1>, vector<8x1024xf32>
    %23 = arith.truncf %22 : vector<8x1024xf32> to vector<8x1024xbf16>
    %c0_8 = arith.constant 0 : index
    %c0_9 = arith.constant 0 : index
    %24 = vector.load %arg5[%c0_8, %c0_9] : memref<1024x512xbf16, #tpu.memory_space<vmem>>, vector<1024x512xbf16>
    %cst_10 = arith.constant dense<0.000000e+00> : vector<8x512xf32>
    %25 = tpu.matmul %17, %24, %cst_10 {dimension_numbers = #tpu.dot_dimension_numbers<[1], [0], [0], [1], [0, 0, 1, 1], [], []>} : vector<8x1024xbf16>, vector<1024x512xbf16>, vector<8x512xf32> -> vector<8x512xf32>
    %c0_11 = arith.constant 0 : index
    %c0_12 = arith.constant 0 : index
    %26 = vector.load %arg6[%c0_11, %c0_12] : memref<1x512xf32, #tpu.memory_space<vmem>>, vector<1x512xf32>
    %27 = vector.broadcast %26 : vector<1x512xf32> to vector<8x512xf32>
    %28 = arith.addf %25, %27 : vector<8x512xf32>
    %cst_13 = arith.constant 0.000000e+00 : f32
    %29 = vector.broadcast %cst_13 : f32 to vector<8x512xf32>
    %30 = arith.cmpf ogt, %28, %29 : vector<8x512xf32>
    %31 = vector.broadcast %2 : f32 to vector<8x512xf32>
    %32 = arith.mulf %31, %28 : vector<8x512xf32>
    %33 = arith.select %30, %28, %32 : vector<8x512xi1>, vector<8x512xf32>
    %34 = arith.truncf %33 : vector<8x512xf32> to vector<8x512xbf16>
    %c0_14 = arith.constant 0 : index
    %c0_15 = arith.constant 0 : index
    %35 = vector.load %arg7[%c0_14, %c0_15] : memref<1024x512xbf16, #tpu.memory_space<vmem>>, vector<1024x512xbf16>
    %cst_16 = arith.constant dense<0.000000e+00> : vector<8x512xf32>
    %36 = tpu.matmul %23, %35, %cst_16 {dimension_numbers = #tpu.dot_dimension_numbers<[1], [0], [0], [1], [0, 0, 1, 1], [], []>} : vector<8x1024xbf16>, vector<1024x512xbf16>, vector<8x512xf32> -> vector<8x512xf32>
    %c0_17 = arith.constant 0 : index
    %c0_18 = arith.constant 0 : index
    %37 = vector.load %arg8[%c0_17, %c0_18] : memref<1x512xf32, #tpu.memory_space<vmem>>, vector<1x512xf32>
    %38 = vector.broadcast %37 : vector<1x512xf32> to vector<8x512xf32>
    %39 = arith.addf %36, %38 : vector<8x512xf32>
    %cst_19 = arith.constant 0.000000e+00 : f32
    %40 = vector.broadcast %cst_19 : f32 to vector<8x512xf32>
    %41 = arith.cmpf ogt, %39, %40 : vector<8x512xf32>
    %42 = vector.broadcast %4 : f32 to vector<8x512xf32>
    %43 = arith.mulf %42, %39 : vector<8x512xf32>
    %44 = arith.select %41, %39, %43 : vector<8x512xi1>, vector<8x512xf32>
    %45 = arith.truncf %44 : vector<8x512xf32> to vector<8x512xbf16>
    %c0_20 = arith.constant 0 : index
    %c0_21 = arith.constant 0 : index
    %46 = vector.load %arg9[%c0_20, %c0_21] : memref<512x128xbf16, #tpu.memory_space<vmem>>, vector<512x128xbf16>
    %cst_22 = arith.constant dense<0.000000e+00> : vector<8x128xf32>
    %47 = tpu.matmul %34, %46, %cst_22 {dimension_numbers = #tpu.dot_dimension_numbers<[1], [0], [0], [1], [0, 0, 1, 1], [], []>} : vector<8x512xbf16>, vector<512x128xbf16>, vector<8x128xf32> -> vector<8x128xf32>
    %c0_23 = arith.constant 0 : index
    %c0_24 = arith.constant 0 : index
    %48 = vector.load %arg10[%c0_23, %c0_24] : memref<1x128xf32, #tpu.memory_space<vmem>>, vector<1x128xf32>
    %49 = vector.broadcast %48 : vector<1x128xf32> to vector<8x128xf32>
    %50 = arith.addf %47, %49 : vector<8x128xf32>
    %51 = math.tanh %50 : vector<8x128xf32>
    %c0_25 = arith.constant 0 : index
    %c0_26 = arith.constant 0 : index
    %52 = vector.load %arg14[%c0_25, %c0_26] : memref<8x128xf32, #tpu.memory_space<vmem>>, vector<8x128xf32>
    tpu.vector_store %arg14[%c0_25, %c0_26], %51 {strides = array<i32>} : memref<8x128xf32, #tpu.memory_space<vmem>>, vector<8x128xf32>,
    %c0_27 = arith.constant 0 : index
    %c0_28 = arith.constant 0 : index
    %53 = vector.load %arg11[%c0_27, %c0_28] : memref<512x128xbf16, #tpu.memory_space<vmem>>, vector<512x128xbf16>
    %cst_29 = arith.constant dense<0.000000e+00> : vector<8x128xf32>
    %54 = tpu.matmul %45, %53, %cst_29 {dimension_numbers = #tpu.dot_dimension_numbers<[1], [0], [0], [1], [0, 0, 1, 1], [], []>} : vector<8x512xbf16>, vector<512x128xbf16>, vector<8x128xf32> -> vector<8x128xf32>
    %c0_30 = arith.constant 0 : index
    %c0_31 = arith.constant 0 : index
    %55 = vector.load %arg12[%c0_30, %c0_31] : memref<1x128xf32, #tpu.memory_space<vmem>>, vector<1x128xf32>
    %56 = vector.broadcast %55 : vector<1x128xf32> to vector<8x128xf32>
    %57 = arith.addf %54, %56 : vector<8x128xf32>
    %58 = arith.negf %57 : vector<8x128xf32>
    %59 = math.exp %58 : vector<8x128xf32>
    %cst_32 = arith.constant 1.000000e+00 : f32
    %60 = vector.broadcast %cst_32 : f32 to vector<8x128xf32>
    %61 = arith.addf %60, %59 : vector<8x128xf32>
    %62 = arith.divf %60, %61 : vector<8x128xf32>
    %c0_33 = arith.constant 0 : index
    %c0_34 = arith.constant 0 : index
    %63 = vector.load %arg13[%c0_33, %c0_34] : memref<8x128xf32, #tpu.memory_space<vmem>>, vector<8x128xf32>
    tpu.vector_store %arg13[%c0_33, %c0_34], %62 {strides = array<i32>} : memref<8x128xf32, #tpu.memory_space<vmem>>, vector<8x128xf32>,
    return
  }
  func.func @transform_0(%arg0: i32) -> i32 {
    %c0_i32 = arith.constant 0 : i32
    %c0_i32_0 = arith.constant 0 : i32
    return %c0_i32 : i32
  }
  func.func @transform_1(%arg0: i32) -> (i32, i32) {
    %c0_i32 = arith.constant 0 : i32
    %c0_i32_0 = arith.constant 0 : i32
    return %arg0, %c0_i32 : i32, i32
  }
  func.func @transform_2(%arg0: i32) -> (i32, i32) {
    %c0_i32 = arith.constant 0 : i32
    %c0_i32_0 = arith.constant 0 : i32
    %c0_i32_1 = arith.constant 0 : i32
    return %c0_i32, %c0_i32_0 : i32, i32
  }
  func.func @transform_3(%arg0: i32) -> (i32, i32) {
    %c0_i32 = arith.constant 0 : i32
    %c0_i32_0 = arith.constant 0 : i32
    %c0_i32_1 = arith.constant 0 : i32
    return %c0_i32, %c0_i32_0 : i32, i32
  }
  func.func @transform_4(%arg0: i32) -> (i32, i32) {
    %c0_i32 = arith.constant 0 : i32
    %c0_i32_0 = arith.constant 0 : i32
    %c0_i32_1 = arith.constant 0 : i32
    return %c0_i32, %c0_i32_0 : i32, i32
  }
  func.func @transform_5(%arg0: i32) -> (i32, i32) {
    %c0_i32 = arith.constant 0 : i32
    %c0_i32_0 = arith.constant 0 : i32
    %c0_i32_1 = arith.constant 0 : i32
    return %c0_i32, %c0_i32_0 : i32, i32
  }
  func.func @transform_6(%arg0: i32) -> (i32, i32) {
    %c0_i32 = arith.constant 0 : i32
    %c0_i32_0 = arith.constant 0 : i32
    %c0_i32_1 = arith.constant 0 : i32
    return %c0_i32, %c0_i32_0 : i32, i32
  }
  func.func @transform_7(%arg0: i32) -> (i32, i32) {
    %c0_i32 = arith.constant 0 : i32
    %c0_i32_0 = arith.constant 0 : i32
    %c0_i32_1 = arith.constant 0 : i32
    return %c0_i32, %c0_i32_0 : i32, i32
  }
  func.func @transform_8(%arg0: i32) -> (i32, i32) {
    %c0_i32 = arith.constant 0 : i32
    %c0_i32_0 = arith.constant 0 : i32
    %c0_i32_1 = arith.constant 0 : i32
    return %c0_i32, %c0_i32_0 : i32, i32
  }
  func.func @transform_9(%arg0: i32) -> (i32, i32) {
    %c0_i32 = arith.constant 0 : i32
    %c0_i32_0 = arith.constant 0 : i32
    %c0_i32_1 = arith.constant 0 : i32
    return %c0_i32, %c0_i32_0 : i32, i32
  }
  func.func @transform_10(%arg0: i32) -> (i32, i32) {
    %c0_i32 = arith.constant 0 : i32
    %c0_i32_0 = arith.constant 0 : i32
    %c0_i32_1 = arith.constant 0 : i32
    return %c0_i32, %c0_i32_0 : i32, i32
  }
  func.func @transform_11(%arg0: i32) -> (i32, i32) {
    %c0_i32 = arith.constant 0 : i32
    %c0_i32_0 = arith.constant 0 : i32
    %c0_i32_1 = arith.constant 0 : i32
    return %c0_i32, %c0_i32_0 : i32, i32
  }
  func.func @transform_12(%arg0: i32) -> (i32, i32) {
    %c0_i32 = arith.constant 0 : i32
    %c0_i32_0 = arith.constant 0 : i32
    return %arg0, %c0_i32 : i32, i32
  }
  func.func @transform_13(%arg0: i32) -> (i32, i32) {
    %c0_i32 = arith.constant 0 : i32
    %c0_i32_0 = arith.constant 0 : i32
    return %arg0, %c0_i32 : i32, i32
  }
}

</mosaic_0001>

<bundles_post_ra>
// kernel: tpu_custom_call.1
= control target key start
LH: loop header
LB: loop body
LE: loop exit
PB: predicated region body
PF: predicated region fallthrough
CT: control target
= control target key end

     0   :  { %19 = vsyncpa [#allocation5], 0  ;;  %s9474_s0 = inlined_call_operand.hbm [shape: f32[4], index: 0, kind: input, shape index: {}]   ;;  %s9475_s1 = inlined_call_operand.hbm [shape: bf16[8,64], index: 1, kind: input, shape index: {}]   ;;  %s9476_s2 = inlined_call_operand.hbm [shape: bf16[64,2048], index: 2, kind: input, shape index: {}]   ;;  %s9477_s3 = inlined_call_operand.hbm [shape: f32[1,2048], index: 3, kind: input, shape index: {}]   ;;  %s9478_s4 = inlined_call_operand.hbm [shape: bf16[1024,512], index: 4, kind: input, shape index: {}]   ;;  %s9479_s5 = inlined_call_operand.vmem [shape: f32[1,512], index: 5, kind: input, shape index: {}]   ;;  %s9480_s6 = inlined_call_operand.hbm [shape: bf16[1024,512], index: 6, kind: input, shape index: {}]   ;;  %s9481_s7 = inlined_call_operand.hbm [shape: f32[1,512], index: 7, kind: input, shape index: {}]   ;;  %s9482_s8 = inlined_call_operand.hbm [shape: bf16[512,128], index: 8, kind: input, shape index: {}]   ;;  %s9483_s9 = inlined_call_operand.vmem [shape: f32[1,128], index: 9, kind: input, shape index: {}]   ;;  %s9484_s10 = inlined_call_operand.hbm [shape: bf16[512,128], index: 10, kind: input, shape index: {}]   ;;  %s9485_s11 = inlined_call_operand.vmem [shape: f32[1,128], index: 11, kind: input, shape index: {}]   ;;  %s9486_s12 = inlined_call_operand.hbm [shape: f32[8,128], index: 12, kind: output, shape index: {0}]   ;;  %s9487_s13 = inlined_call_operand.hbm [shape: f32[8,128], index: 13, kind: output, shape index: {1}]  }
   0x1   :  { %20 = vsyncpa [#allocation3], 0 }
   0x2   :  { %21 = vsyncpa [#allocation8], 0 }
   0x3   :  { %22 = vsyncpa [#allocation11], 0 }
   0x4   :  { %23 = vsyncpa [#allocation14], 0 }
   0x5   :  { %24 = vsyncpa [#allocation17], 0 }
   0x6   :  { %25 = vsyncpa [#allocation4], 0  ;;  %s51_s27 = sshll.u32 %s9476_s2, 4  ;;  %s52_s27 = int_to_ptr.hbm [resolvable:$true] %s51_s27 }
   0x7   :  { %26 = vsyncpa [#allocation20], 0  ;;  %s9037_s28 = smov [#allocation7]   ;;  %s75_s15 = sshll.u32 %s9478_s4, 4  ;;  %s76_s15 = int_to_ptr.hbm [resolvable:$true] %s75_s15 }
   0x8   :  { %s53_s29 = sshll.u32 %s9037_s28, 4  ;;  %s9038_s16 = smov 1024   ;;  %s54_s29 = int_to_ptr.vmem [resolvable:$true] %s53_s29 }
   0x9   :  { %s9039_s17 = smov 64   ;;  %s9040_s18 = smov [#allocation10]  }
   0xa   :  { %59 = dma.hbm_to_vmem [thread:$0]  %s52_s27, 8192, %s54_s29, [#allocation8], %s9038_s16, %s9038_s16, %s9039_s17  }
   0xb   :  { %s77_s19 = sshll.u32 %s9040_s18, 4  ;;  %s9041_s20 = smov 256   ;;  %s78_s19 = int_to_ptr.vmem [resolvable:$true] %s77_s19 }
   0xc   :  { %s9042_s21 = smov 16   ;;  %s104_s23 = sshll.u32 %s9481_s7, 4  ;;  %s105_s23 = int_to_ptr.hbm [resolvable:$true] %s104_s23 }
   0xd   :  { %83 = dma.hbm_to_vmem [thread:$0]  %s76_s15, 32768, %s78_s19, [#allocation11], %s9041_s20, %s9041_s20, %s9042_s21  }
   0xe   :  { %s9043_s4 = smov [#allocation13]   ;;  %s32_s27 = sshll.u32 %s9474_s0, 4  ;;  %s33_s27 = int_to_ptr.hbm [resolvable:$true] %s32_s27 }
   0xf   :  { %s106_s24 = sshll.u32 %s9043_s4, 4  ;;  %s9044_s28 = smov [#allocation2]   ;;  %s107_s24 = int_to_ptr.vmem [resolvable:$true] %s106_s24 }
  0x10   :  { %109 = dma.hbm_to_vmem [thread:$0]  %s105_s23, 64, %s107_s24, [#allocation14]  }
  0x11   :  { %35 = dma.hbm_to_smem %s33_s27, 16, %s9044_s28, [#allocation5]  }
  0x12   :  { %s41_s14 = sshll.u32 %s9475_s1, 4  ;;  %s9045_s15 = smov [#allocation6]   ;;  %s42_s14 = int_to_ptr.hbm [resolvable:$true] %s41_s14 }
  0x13   :  { %s43_s16 = sshll.u32 %s9045_s15, 4  ;;  %s65_s19 = sshll.u32 %s9477_s3, 4  ;;  %s44_s16 = int_to_ptr.vmem [resolvable:$true] %s43_s16  ;;  %s66_s19 = int_to_ptr.hbm [resolvable:$true] %s65_s19 }
  0x14   :  { %46 = dma.hbm_to_vmem [thread:$0]  %s42_s14, 64, %s44_s16, [#allocation3]  }
  0x15   :  { %s9046_s2 = smov [#allocation9]   ;;  %s90_s4 = sshll.u32 %s9480_s6, 4  ;;  %s91_s4 = int_to_ptr.hbm [resolvable:$true] %s90_s4 }
  0x16   :  { %s67_s0 = sshll.u32 %s9046_s2, 4  ;;  %s114_s25 = sshll.u32 %s9482_s8, 4  ;;  %s68_s0 = int_to_ptr.vmem [resolvable:$true] %s67_s0  ;;  %s115_s25 = int_to_ptr.hbm [resolvable:$true] %s114_s25 }
  0x17   :  { %70 = dma.hbm_to_vmem [thread:$0]  %s66_s19, 256, %s68_s0, [#allocation8]  }
  0x18   :  { %s9047_s26 = smov [#allocation12]   ;;  %s9048_s3 = smov [#allocation15]  }
  0x19   :  { %s92_s27 = sshll.u32 %s9047_s26, 4  ;;  %s116_s28 = sshll.u32 %s9048_s3, 4  ;;  %s93_s27 = int_to_ptr.vmem [resolvable:$true] %s92_s27  ;;  %s117_s28 = int_to_ptr.vmem [resolvable:$true] %s116_s28 }
  0x1a   :  { %98 = dma.hbm_to_vmem [thread:$0]  %s91_s4, 32768, %s93_s27, [#allocation11], %s9041_s20, %s9041_s20, %s9042_s21  }
  0x1b   :  { %s129_s30 = sshll.u32 %s9484_s10, 4  ;;  %s9049_s14 = smov 4   ;;  %s130_s30 = int_to_ptr.hbm [resolvable:$true] %s129_s30 }
  0x1c   :  { %122 = dma.hbm_to_vmem [thread:$0]  %s115_s25, 4096, %s117_s28, [#allocation14], %s9039_s17, %s9039_s17, %s9049_s14  }
  0x1d   :  { %s9050_s8 = smov [#allocation16]  }
  0x1e   :  { %s131_s15 = sshll.u32 %s9050_s8, 4  ;;  %s132_s15 = int_to_ptr.vmem [resolvable:$true] %s131_s15 }
  0x1f   :  { %137 = dma.hbm_to_vmem [thread:$0]  %s130_s30, 4096, %s132_s15, [#allocation17], %s9039_s17, %s9039_s17, %s9049_s14  }
  0x20   :  { %9021 = dma.done.wait [#allocation5], 16  }
  0x21   :  { %9022 = vsyncadd [#allocation5], 4294967280 }
  0x22   :  { %9023 = dma.done.wait [#allocation3], 64  }
  0x23   :  { %9024 = vsyncadd [#allocation3], 4294967232 }
  0x24   :  { %9025 = dma.done.wait [#allocation8], 8448  }
  0x25   :  { %9026 = vsyncadd [#allocation8], 4294958848 }
  0x26   :  { %9027 = dma.done.wait [#allocation11], 65536  }
  0x27   :  { %9028 = vsyncadd [#allocation11], 4294901760 }
  0x28   :  { %9029 = dma.done.wait [#allocation14], 4160  }
  0x29   :  { %9030 = vsyncadd [#allocation14], 4294963136 }
  0x2a   :  { %9031 = dma.done.wait [#allocation17], 4096  }
  0x2b   :  { %9032 = vsyncadd [#allocation17], 4294963200 }
  0x2c   :  { %176 = sfence }
  0x2d   :  { %v5720_v0 = vld [vmem:[#allocation7 + $0x180] sm:$0xf]  ;;  %v8151_v2 = vld [vmem:[#allocation7 + $0x184] sm:$0xf]  ;;  %v5728_v5 = vld [vmem:[#allocation7 + $0x188] sm:$0xf] }
  0x2e   :  { %v8159_v1 = vld [vmem:[#allocation7 + $0x1bc] sm:$0xf0]  ;;  %v5722_v4 = vld [vmem:[#allocation7 + $0x1c0] sm:$0xf0]  ;;  %v8160_v6 = vld [vmem:[#allocation7 + $0x1c4] sm:$0xf0] }
  0x2f   :  { %v5721_v3 = vor.u32 %v8159_v1, %v5720_v0  ;;  %v5725_v7 = vor.u32 %v8151_v2, %v5722_v4  ;;  %v5729_v8 = vor.u32 %v8160_v6, %v5728_v5  ;;  %v8152_v9 = vld [vmem:[#allocation7 + $0x18c] sm:$0xf]  ;;  %v5656_v11 = vld [vmem:[#allocation7 + $0x100] sm:$0xf]  ;;  %v8135_v14 = vld [vmem:[#allocation7 + $0x104] sm:$0xf] }
  0x30   :  { %v5730_v10 = vld [vmem:[#allocation7 + $0x1c8] sm:$0xf0]  ;;  %v8143_v13 = vld [vmem:[#allocation7 + $0x13c] sm:$0xf0]  ;;  %v5658_v15 = vld [vmem:[#allocation7 + $0x140] sm:$0xf0] }
  0x31   :  { %611 = vmatpush.bf16.msra.mxu0 %v5721_v3  ;;  %v5733_v12 = vor.u32 %v8152_v9, %v5730_v10  ;;  %624 = vmatpush.bf16.msra.mxu1 %v5725_v7  ;;  %v5657_v16 = vor.u32 %v8143_v13, %v5656_v11  ;;  %v5661_v17 = vor.u32 %v8135_v14, %v5658_v15  ;;  %v5664_v18 = vld [vmem:[#allocation7 + $0x108] sm:$0xf]  ;;  %v8136_v20 = vld [vmem:[#allocation7 + $0x10c] sm:$0xf]  ;;  %v5592_v23 = vld [vmem:[#allocation7 + $0x80] sm:$0xf] }
  0x32   :  { %637 = vmatpush.bf16.msra.mxu2 %v5729_v8  ;;  %v8144_v19 = vld [vmem:[#allocation7 + $0x144] sm:$0xf0]  ;;  %v5666_v22 = vld [vmem:[#allocation7 + $0x148] sm:$0xf0]  ;;  %v8127_v24 = vld [vmem:[#allocation7 + $0xbc] sm:$0xf0] }
  0x33   :  { %650 = vmatpush.bf16.msra.mxu3 %v5733_v12  ;;  %v5665_v21 = vor.u32 %v8144_v19, %v5664_v18  ;;  %v5669_v25 = vor.u32 %v8136_v20, %v5666_v22  ;;  %v8119_v26 = vld [vmem:[#allocation7 + $0x84] sm:$0xf]  ;;  %v5600_v28 = vld [vmem:[#allocation7 + $0x88] sm:$0xf]  ;;  %v5593_v29 = vor.u32 %v8127_v24, %v5592_v23  ;;  %v8120_v31 = vld [vmem:[#allocation7 + $0x8c] sm:$0xf] }
  0x34   :  { %v5594_v27 = vld [vmem:[#allocation7 + $0xc0] sm:$0xf0]  ;;  %v8128_v30 = vld [vmem:[#allocation7 + $0xc4] sm:$0xf0]  ;;  %v5602_v32 = vld [vmem:[#allocation7 + $0xc8] sm:$0xf0] }
  0x35   :  { %612 = vmatpush.bf16.msra.mxu0 %v5657_v16  ;;  %625 = vmatpush.bf16.msra.mxu1 %v5661_v17  ;;  %v5597_v33 = vor.u32 %v8119_v26, %v5594_v27  ;;  %v5601_v34 = vor.u32 %v8128_v30, %v5600_v28  ;;  %v5528_v35 = vld [vmem:[#allocation7] sm:$0xf]  ;;  %v8103_v37 = vld [vmem:[#allocation7 + $0x4] sm:$0xf]  ;;  %v5605_v38 = vor.u32 %v8120_v31, %v5602_v32  ;;  %v5536_v40 = vld [vmem:[#allocation7 + $0x8] sm:$0xf] }
  0x36   :  { %638 = vmatpush.bf16.msra.mxu2 %v5665_v21  ;;  %v8111_v36 = vld [vmem:[#allocation7 + $0x3c] sm:$0xf0]  ;;  %v5530_v39 = vld [vmem:[#allocation7 + $0x40] sm:$0xf0]  ;;  %v8112_v41 = vld [vmem:[#allocation7 + $0x44] sm:$0xf0] }
  0x37   :  { %651 = vmatpush.bf16.msra.mxu3 %v5669_v25  ;;  %v8104_v42 = vld [vmem:[#allocation7 + $0xc] sm:$0xf]  ;;  %v5529_v44 = vor.u32 %v8111_v36, %v5528_v35  ;;  %v5736_v45 = vld [vmem:[#allocation7 + $0x190] sm:$0xf]  ;;  %v5533_v47 = vor.u32 %v8103_v37, %v5530_v39  ;;  %v5537_v48 = vor.u32 %v8112_v41, %v5536_v40  ;;  %v8153_v49 = vld [vmem:[#allocation7 + $0x194] sm:$0xf] }
  0x38   :  { %v5538_v43 = vld [vmem:[#allocation7 + $0x48] sm:$0xf0]  ;;  %v8161_v46 = vld [vmem:[#allocation7 + $0x1cc] sm:$0xf0]  ;;  %v5738_v50 = vld [vmem:[#allocation7 + $0x1d0] sm:$0xf0] }
  0x39   :  { %613 = vmatpush.bf16.msra.mxu0 %v5593_v29  ;;  %626 = vmatpush.bf16.msra.mxu1 %v5597_v33  ;;  %v5541_v51 = vor.u32 %v8104_v42, %v5538_v43  ;;  %v9161_v52 = vld [vmem:[#allocation6] sm:$0xf]  ;;  %v5737_v53 = vor.u32 %v8161_v46, %v5736_v45  ;;  %v5744_v54 = vld [vmem:[#allocation7 + $0x198] sm:$0xf]  ;;  %v5741_v57 = vor.u32 %v8153_v49, %v5738_v50  ;;  %v5672_v59 = vld [vmem:[#allocation7 + $0x110] sm:$0xf] }
  0x3a   :  { %639 = vmatpush.bf16.msra.mxu2 %v5601_v34  ;;  %v8162_v55 = vld [vmem:[#allocation7 + $0x1d4] sm:$0xf0]  ;;  %v8154_v56 = vld [vmem:[#allocation7 + $0x19c] sm:$0xf]  ;;  %v8145_v60 = vld [vmem:[#allocation7 + $0x14c] sm:$0xf0] }
  0x3b   :  { %652 = vmatpush.bf16.msra.mxu3 %v5605_v38  ;;  %v5746_v58 = vld [vmem:[#allocation7 + $0x1d8] sm:$0xf0]  ;;  %vm603_vm0 = vcmask 523264   ;;  %v8137_v61 = vld [vmem:[#allocation7 + $0x114] sm:$0xf]  ;;  %v5745_v63 = vor.u32 %v8162_v55, %v5744_v54  ;;  %v5673_v1 = vor.u32 %v8145_v60, %v5672_v59  ;;  %s179_s10 = sld [smem:[#allocation2]] }
  0x3c   :  { %v5674_v62 = vld [vmem:[#allocation7 + $0x150] sm:$0xf0]  ;;  %v5749_v0 = vor.u32 %v8154_v56, %v5746_v58  ;;  %v5680_v2 = vld [vmem:[#allocation7 + $0x118] sm:$0xf]  ;;  %v8138_v4 = vld [vmem:[#allocation7 + $0x11c] sm:$0xf] }
  0x3d   :  { %614 = vmatpush.bf16.msra.mxu0 %v5529_v44  ;;  %627 = vmatpush.bf16.msra.mxu1 %v5533_v47  ;;  %v8146_v3 = vld [vmem:[#allocation7 + $0x154] sm:$0xf0]  ;;  %v5677_v5 = vor.u32 %v8137_v61, %v5674_v62  ;;  %v5682_v6 = vld [vmem:[#allocation7 + $0x158] sm:$0xf0]  ;;  %v5608_v7 = vld [vmem:[#allocation7 + $0x90] sm:$0xf] }
  0x3e   :  { %640 = vmatpush.bf16.msra.mxu2 %v5537_v48  ;;  %v8129_v8 = vld [vmem:[#allocation7 + $0xcc] sm:$0xf0]  ;;  %v8121_v9 = vld [vmem:[#allocation7 + $0x94] sm:$0xf]  ;;  %v5681_v11 = vor.u32 %v8146_v3, %v5680_v2  ;;  %v5616_v12 = vld [vmem:[#allocation7 + $0x98] sm:$0xf]  ;;  %v5685_v13 = vor.u32 %v8138_v4, %v5682_v6 }
  0x3f   :  { %653 = vmatpush.bf16.msra.mxu3 %v5541_v51  ;;  %v5610_v10 = vld [vmem:[#allocation7 + $0xd0] sm:$0xf0]  ;;  %v5609_v14 = vor.u32 %v8129_v8, %v5608_v7  ;;  %v8130_v15 = vld [vmem:[#allocation7 + $0xd4] sm:$0xf0]  ;;  %v8122_v16 = vld [vmem:[#allocation7 + $0x9c] sm:$0xf] }
  0x40   :  { %5782 = vmatmul.msk.bf16.vlgmr.msra.gmra.mxu0 %vm603_vm0, %v9161_v52  ;;  %5783 = vmatmul.msk.bf16.vlgmr.msra.gmra.mxu1 %vm603_vm0, %v9161_v52  ;;  %v5618_v17 = vld [vmem:[#allocation7 + $0xd8] sm:$0xf0]  ;;  %v5613_v18 = vor.u32 %v8121_v9, %v5610_v10  ;;  %v5544_v19 = vld [vmem:[#allocation7 + $0x10] sm:$0xf]  ;;  %v8105_v21 = vld [vmem:[#allocation7 + $0x14] sm:$0xf]  ;;  %v5617_v25 = vor.u32 %v8130_v15, %v5616_v12 }
  0x41   :  { %663 = vmatpush.bf16.msrb.mxu0 %v5737_v53  ;;  %676 = vmatpush.bf16.msrb.mxu1 %v5741_v57  ;;  %v8113_v20 = vld [vmem:[#allocation7 + $0x4c] sm:$0xf0]  ;;  %v5546_v22 = vld [vmem:[#allocation7 + $0x50] sm:$0xf0]  ;;  %v5752_v23 = vld [vmem:[#allocation7 + $0x1a0] sm:$0xf]  ;;  %v5621_v28 = vor.u32 %v8122_v16, %v5618_v17 }
  0x42   :  { %5784 = vmatmul.msk.bf16.vlgmr.msra.gmra.mxu2 %vm603_vm0, %v9161_v52  ;;  %5785 = vmatmul.msk.bf16.vlgmr.msra.gmra.mxu3 %vm603_vm0, %v9161_v52  ;;  %v8163_v24 = vld [vmem:[#allocation7 + $0x1dc] sm:$0xf0]  ;;  %v8155_v26 = vld [vmem:[#allocation7 + $0x1a4] sm:$0xf]  ;;  %v5545_v29 = vor.u32 %v8113_v20, %v5544_v19  ;;  %v5552_v30 = vld [vmem:[#allocation7 + $0x18] sm:$0xf]  ;;  %v5549_v33 = vor.u32 %v8105_v21, %v5546_v22 }
  0x43   :  { %689 = vmatpush.bf16.msrb.mxu2 %v5745_v63  ;;  %702 = vmatpush.bf16.msrb.mxu3 %v5749_v0  ;;  %v5754_v27 = vld [vmem:[#allocation7 + $0x1e0] sm:$0xf0]  ;;  %v8114_v31 = vld [vmem:[#allocation7 + $0x54] sm:$0xf0]  ;;  %v8106_v32 = vld [vmem:[#allocation7 + $0x1c] sm:$0xf]  ;;  %v5753_v35 = vor.u32 %v8163_v24, %v5752_v23 }
  0x44   :  { %v5554_v34 = vld [vmem:[#allocation7 + $0x58] sm:$0xf0]  ;;  %v5760_v36 = vld [vmem:[#allocation7 + $0x1a8] sm:$0xf]  ;;  %v5757_v38 = vor.u32 %v8155_v26, %v5754_v27  ;;  %v8156_v39 = vld [vmem:[#allocation7 + $0x1ac] sm:$0xf]  ;;  %v5553_v41 = vor.u32 %v8114_v31, %v5552_v30 }
  0x45   :  { %664 = vmatpush.bf16.msrb.mxu0 %v5673_v1  ;;  %677 = vmatpush.bf16.msrb.mxu1 %v5677_v5  ;;  %v8164_v37 = vld [vmem:[#allocation7 + $0x1e4] sm:$0xf0]  ;;  %v5762_v40 = vld [vmem:[#allocation7 + $0x1e8] sm:$0xf0]  ;;  %v5557_v42 = vor.u32 %v8106_v32, %v5554_v34  ;;  %v5688_v43 = vld [vmem:[#allocation7 + $0x120] sm:$0xf] }
  0x46   :  { %v8147_v44 = vld [vmem:[#allocation7 + $0x15c] sm:$0xf0]  ;;  %v8139_v45 = vld [vmem:[#allocation7 + $0x124] sm:$0xf]  ;;  %v5761_v46 = vor.u32 %v8164_v37, %v5760_v36  ;;  %v5765_v48 = vor.u32 %v8156_v39, %v5762_v40  ;;  %v5696_v49 = vld [vmem:[#allocation7 + $0x128] sm:$0xf] }
  0x47   :  { %690 = vmatpush.bf16.msrb.mxu2 %v5681_v11  ;;  %703 = vmatpush.bf16.msrb.mxu3 %v5685_v13  ;;  %v5690_v47 = vld [vmem:[#allocation7 + $0x160] sm:$0xf0]  ;;  %v8148_v50 = vld [vmem:[#allocation7 + $0x164] sm:$0xf0]  ;;  %v8140_v51 = vld [vmem:[#allocation7 + $0x12c] sm:$0xf]  ;;  %v5689_v54 = vor.u32 %v8147_v44, %v5688_v43 }
  0x48   :  { %v5698_v53 = vld [vmem:[#allocation7 + $0x168] sm:$0xf0]  ;;  %v5693_v55 = vor.u32 %v8139_v45, %v5690_v47  ;;  %v5624_v56 = vld [vmem:[#allocation7 + $0xa0] sm:$0xf]  ;;  %v8123_v58 = vld [vmem:[#allocation7 + $0xa4] sm:$0xf]  ;;  %v5697_v59 = vor.u32 %v8148_v50, %v5696_v49 }
  0x49   :  { %665 = vmatpush.bf16.msrb.mxu0 %v5609_v14  ;;  %678 = vmatpush.bf16.msrb.mxu1 %v5613_v18  ;;  %v8131_v57 = vld [vmem:[#allocation7 + $0xdc] sm:$0xf0]  ;;  %v5626_v60 = vld [vmem:[#allocation7 + $0xe0] sm:$0xf0]  ;;  %v5701_v61 = vor.u32 %v8140_v51, %v5698_v53  ;;  %v5632_v62 = vld [vmem:[#allocation7 + $0xa8] sm:$0xf] }
  0x4a   :  { %v8132_v63 = vld [vmem:[#allocation7 + $0xe4] sm:$0xf0]  ;;  %v8124_v0 = vld [vmem:[#allocation7 + $0xac] sm:$0xf]  ;;  %v5625_v2 = vor.u32 %v8131_v57, %v5624_v56  ;;  %v5560_v3 = vld [vmem:[#allocation7 + $0x20] sm:$0xf]  ;;  %v5629_v5 = vor.u32 %v8123_v58, %v5626_v60 }
  0x4b   :  { %691 = vmatpush.bf16.msrb.mxu2 %v5617_v25  ;;  %704 = vmatpush.bf16.msrb.mxu3 %v5621_v28  ;;  %v5634_v1 = vld [vmem:[#allocation7 + $0xe8] sm:$0xf0]  ;;  %v8115_v4 = vld [vmem:[#allocation7 + $0x5c] sm:$0xf0]  ;;  %v8107_v6 = vld [vmem:[#allocation7 + $0x24] sm:$0xf]  ;;  %v5633_v9 = vor.u32 %v8132_v63, %v5632_v62 }
  0x4c   :  { %v5562_v7 = vld [vmem:[#allocation7 + $0x60] sm:$0xf0]  ;;  %v5768_v8 = vld [vmem:[#allocation7 + $0x1b0] sm:$0xf]  ;;  %v8157_v11 = vld [vmem:[#allocation7 + $0x1b4] sm:$0xf]  ;;  %v5637_v13 = vor.u32 %v8124_v0, %v5634_v1  ;;  %v5561_v17 = vor.u32 %v8115_v4, %v5560_v3 }
  0x4d   :  { %666 = vmatpush.bf16.msrb.mxu0 %v5545_v29  ;;  %679 = vmatpush.bf16.msrb.mxu1 %v5549_v33  ;;  %v8165_v10 = vld [vmem:[#allocation7 + $0x1ec] sm:$0xf0]  ;;  %v5770_v12 = vld [vmem:[#allocation7 + $0x1f0] sm:$0xf0]  ;;  %v5568_v14 = vld [vmem:[#allocation7 + $0x28] sm:$0xf]  ;;  %v5565_v21 = vor.u32 %v8107_v6, %v5562_v7 }
  0x4e   :  { %v8116_v15 = vld [vmem:[#allocation7 + $0x64] sm:$0xf0]  ;;  %v8108_v16 = vld [vmem:[#allocation7 + $0x2c] sm:$0xf]  ;;  %v5776_v19 = vld [vmem:[#allocation7 + $0x1b8] sm:$0xf]  ;;  %v5769_v22 = vor.u32 %v8165_v10, %v5768_v8  ;;  %v5773_v25 = vor.u32 %v8157_v11, %v5770_v12 }
  0x4f   :  { %692 = vmatpush.bf16.msrb.mxu2 %v5553_v41  ;;  %705 = vmatpush.bf16.msrb.mxu3 %v5557_v42  ;;  %v5570_v18 = vld [vmem:[#allocation7 + $0x68] sm:$0xf0]  ;;  %v8166_v20 = vld [vmem:[#allocation7 + $0x1f4] sm:$0xf0]  ;;  %v8158_v23 = vld [vmem:[#allocation7 + $0x1bc] sm:$0xf]  ;;  %v5569_v28 = vor.u32 %v8116_v15, %v5568_v14 }
  0x50   :  { %5786 = vmatmul.msk.bf16.vlgmr.msrb.gmra.mxu0 %vm603_vm0, %v9161_v52  ;;  %5787 = vmatmul.msk.bf16.vlgmr.msrb.gmra.mxu1 %vm603_vm0, %v9161_v52  ;;  %v5778_v24 = vld [vmem:[#allocation7 + $0x1f8] sm:$0xf0]  ;;  %v5704_v26 = vld [vmem:[#allocation7 + $0x130] sm:$0xf]  ;;  %v8141_v29 = vld [vmem:[#allocation7 + $0x134] sm:$0xf]  ;;  %v5573_v31 = vor.u32 %v8108_v16, %v5570_v18  ;;  %v5777_v32 = vor.u32 %v8166_v20, %v5776_v19 }
  0x51   :  { %715 = vmatpush.bf16.msra.mxu0 %v5753_v35  ;;  %728 = vmatpush.bf16.msra.mxu1 %v5757_v38  ;;  %v8149_v27 = vld [vmem:[#allocation7 + $0x16c] sm:$0xf0]  ;;  %v5706_v30 = vld [vmem:[#allocation7 + $0x170] sm:$0xf0]  ;;  %v5781_v33 = vor.u32 %v8158_v23, %v5778_v24  ;;  %v5712_v34 = vld [vmem:[#allocation7 + $0x138] sm:$0xf] }
  0x52   :  { %5788 = vmatmul.msk.bf16.vlgmr.msrb.gmra.mxu2 %vm603_vm0, %v9161_v52  ;;  %5789 = vmatmul.msk.bf16.vlgmr.msrb.gmra.mxu3 %vm603_vm0, %v9161_v52  ;;  %v8150_v35 = vld [vmem:[#allocation7 + $0x174] sm:$0xf0]  ;;  %v5705_v36 = vor.u32 %v8149_v27, %v5704_v26  ;;  %v8142_v37 = vld [vmem:[#allocation7 + $0x13c] sm:$0xf]  ;;  %v5709_v39 = vor.u32 %v8141_v29, %v5706_v30  ;;  %v5640_v40 = vld [vmem:[#allocation7 + $0xb0] sm:$0xf] }
  0x53   :  { %741 = vmatpush.bf16.msra.mxu2 %v5761_v46  ;;  %754 = vmatpush.bf16.msra.mxu3 %v5765_v48  ;;  %v5714_v38 = vld [vmem:[#allocation7 + $0x178] sm:$0xf0]  ;;  %v8133_v41 = vld [vmem:[#allocation7 + $0xec] sm:$0xf0]  ;;  %v8125_v42 = vld [vmem:[#allocation7 + $0xb4] sm:$0xf]  ;;  %v5713_v44 = vor.u32 %v8150_v35, %v5712_v34 }
  0x54   :  { %v5642_v43 = vld [vmem:[#allocation7 + $0xf0] sm:$0xf0]  ;;  %v5717_v45 = vor.u32 %v8142_v37, %v5714_v38  ;;  %v5576_v46 = vld [vmem:[#allocation7 + $0x30] sm:$0xf]  ;;  %v5648_v47 = vld [vmem:[#allocation7 + $0xb8] sm:$0xf]  ;;  %v5641_v49 = vor.u32 %v8133_v41, %v5640_v40 }
  0x55   :  { %716 = vmatpush.bf16.msra.mxu0 %v5689_v54  ;;  %729 = vmatpush.bf16.msra.mxu1 %v5693_v55  ;;  %v8134_v48 = vld [vmem:[#allocation7 + $0xf4] sm:$0xf0]  ;;  %v8117_v50 = vld [vmem:[#allocation7 + $0x6c] sm:$0xf0]  ;;  %v8126_v51 = vld [vmem:[#allocation7 + $0xbc] sm:$0xf]  ;;  %v5645_v54 = vor.u32 %v8125_v42, %v5642_v43 }
  0x56   :  { %v5650_v53 = vld [vmem:[#allocation7 + $0xf8] sm:$0xf0]  ;;  %v8109_v55 = vld [vmem:[#allocation7 + $0x34] sm:$0xf]  ;;  %v5912_v57 = vld [vmem:[#allocation10 + $0xe0] sm:$0xf] }
  0x57   :  { %742 = vmatpush.bf16.msra.mxu2 %v5697_v59  ;;  %755 = vmatpush.bf16.msra.mxu3 %v5701_v61  ;;  %v5578_v56 = vld [vmem:[#allocation7 + $0x70] sm:$0xf0]  ;;  %v8197_v58 = vld [vmem:[#allocation10 + $0xec] sm:$0xf0]  ;;  %v6040_v59 = vld [vmem:[#allocation10 + $0x1e0] sm:$0xf]  ;;  %v5649_v61 = vor.u32 %v8134_v48, %v5648_v47  ;;  %v5653_v62 = vor.u32 %v8126_v51, %v5650_v53 }
  0x58   :  { %v8229_v60 = vld [vmem:[#allocation10 + $0x1ec] sm:$0xf0]  ;;  %v5584_v63 = vld [vmem:[#allocation7 + $0x38] sm:$0xf]  ;;  %v8110_v1 = vld [vmem:[#allocation7 + $0x3c] sm:$0xf]  ;;  %v5581_v6 = vor.u32 %v8109_v55, %v5578_v56  ;;  %v5913_v7 = vor.u32 %v8197_v58, %v5912_v57 }
  0x59   :  { %717 = vmatpush.bf16.msra.mxu0 %v5625_v2  ;;  %730 = vmatpush.bf16.msra.mxu1 %v5629_v5  ;;  %v8118_v0 = vld [vmem:[#allocation7 + $0x74] sm:$0xf0]  ;;  %v5577_v2 = vor.u32 %v8117_v50, %v5576_v46  ;;  %v5586_v3 = vld [vmem:[#allocation7 + $0x78] sm:$0xf0]  ;;  %v6168_v4 = vld [vmem:[#allocation10 + $0x2e0] sm:$0xf]  ;;  %v6041_v10 = vor.u32 %v8229_v60, %v6040_v59 }
  0x5a   :  { %v8261_v5 = vld [vmem:[#allocation10 + $0x2ec] sm:$0xf0]  ;;  %v6296_v8 = vld [vmem:[#allocation10 + $0x3e0] sm:$0xf]  ;;  %v5589_v16 = vor.u32 %v8110_v1, %v5586_v3  ;;  %s9292_s21 = sld [smem:[#allocation2 + $0x2]]  ;;  %s9051_s23 = smov [#allocation19]  }
  0x5b   :  { %743 = vmatpush.bf16.msra.mxu2 %v5633_v9  ;;  %756 = vmatpush.bf16.msra.mxu3 %v5637_v13  ;;  %v8293_v9 = vld [vmem:[#allocation10 + $0x3ec] sm:$0xf0]  ;;  %v5896_v11 = vld [vmem:[#allocation10 + $0xc0] sm:$0xf]  ;;  %v5585_v13 = vor.u32 %v8118_v0, %v5584_v63  ;;  %s5525_s18 = sld [smem:[#allocation2 + $0x3]]  ;;  %s5503_s24 = sshll.u32 %s9487_s13, 4  ;;  %s5504_s24 = int_to_ptr.hbm [resolvable:$true] %s5503_s24 }
  0x5c   :  { %v8193_v12 = vld [vmem:[#allocation10 + $0xcc] sm:$0xf0]  ;;  %v6024_v14 = vld [vmem:[#allocation10 + $0x1c0] sm:$0xf]  ;;  %v6297_v18 = vor.u32 %v8293_v9, %v6296_v8  ;;  %s5492_s27 = sshll.u32 %s9486_s12, 4  ;;  %s5493_s27 = int_to_ptr.hbm [resolvable:$true] %s5492_s27 }
  0x5d   :  { %718 = vmatpush.bf16.msra.mxu0 %v5561_v17  ;;  %731 = vmatpush.bf16.msra.mxu1 %v5565_v21  ;;  %v8225_v15 = vld [vmem:[#allocation10 + $0x1cc] sm:$0xf0]  ;;  %v6169_v17 = vor.u32 %v8261_v5, %v6168_v4  ;;  %v6152_v19 = vld [vmem:[#allocation10 + $0x2c0] sm:$0xf]  ;;  %v5897_v21 = vor.u32 %v8193_v12, %v5896_v11 }
  0x5e   :  { %v8257_v20 = vld [vmem:[#allocation10 + $0x2cc] sm:$0xf0]  ;;  %v6025_v24 = vor.u32 %v8225_v15, %v6024_v14  ;;  %v6008_v27 = vld [vmem:[#allocation10 + $0x1a0] sm:$0xf] }
  0x5f   :  { %744 = vmatpush.bf16.msra.mxu2 %v5569_v28  ;;  %757 = vmatpush.bf16.msra.mxu3 %v5573_v31  ;;  %v8289_v23 = vld [vmem:[#allocation10 + $0x3cc] sm:$0xf0]  ;;  %v6153_v29 = vor.u32 %v8257_v20, %v6152_v19  ;;  %v6136_v31 = vld [vmem:[#allocation10 + $0x2a0] sm:$0xf] }
  0x60   :  { %5790 = vmatmul.msk.bf16.vlgmr.msra.gmra.mxu0 %vm603_vm0, %v9161_v52  ;;  %5791 = vmatmul.msk.bf16.vlgmr.msra.gmra.mxu1 %vm603_vm0, %v9161_v52  ;;  %v8189_v26 = vld [vmem:[#allocation10 + $0xac] sm:$0xf0]  ;;  %v6264_v34 = vld [vmem:[#allocation10 + $0x3a0] sm:$0xf] }
  0x61   :  { %767 = vmatpush.bf16.msrb.mxu0 %v5769_v22  ;;  %780 = vmatpush.bf16.msrb.mxu1 %v5773_v25  ;;  %v6280_v22 = vld [vmem:[#allocation10 + $0x3c0] sm:$0xf]  ;;  %v8221_v28 = vld [vmem:[#allocation10 + $0x1ac] sm:$0xf0] }
  0x62   :  { %5792 = vmatmul.msk.bf16.vlgmr.msra.gmra.mxu2 %vm603_vm0, %v9161_v52  ;;  %5793 = vmatmul.msk.bf16.vlgmr.msra.gmra.mxu3 %vm603_vm0, %v9161_v52  ;;  %v5880_v25 = vld [vmem:[#allocation10 + $0xa0] sm:$0xf]  ;;  %v6281_v30 = vor.u32 %v8289_v23, %v6280_v22  ;;  %v8285_v35 = vld [vmem:[#allocation10 + $0x3ac] sm:$0xf0] }
  0x63   :  { %793 = vmatpush.bf16.msrb.mxu2 %v5777_v32  ;;  %806 = vmatpush.bf16.msrb.mxu3 %v5781_v33  ;;  %v8253_v32 = vld [vmem:[#allocation10 + $0x2ac] sm:$0xf0]  ;;  %v5881_v33 = vor.u32 %v8189_v26, %v5880_v25  ;;  %v5864_v37 = vld [vmem:[#allocation10 + $0x80] sm:$0xf]  ;;  %v6265_v42 = vor.u32 %v8285_v35, %v6264_v34 }
  0x64   :  { %v8185_v38 = vld [vmem:[#allocation10 + $0x8c] sm:$0xf0]  ;;  %v6137_v41 = vor.u32 %v8253_v32, %v6136_v31  ;;  %v6120_v43 = vld [vmem:[#allocation10 + $0x280] sm:$0xf] }
  0x65   :  { %768 = vmatpush.bf16.msrb.mxu0 %v5705_v36  ;;  %781 = vmatpush.bf16.msrb.mxu1 %v5709_v39  ;;  %v6009_v36 = vor.u32 %v8221_v28, %v6008_v27  ;;  %v5992_v39 = vld [vmem:[#allocation10 + $0x180] sm:$0xf]  ;;  %v8217_v40 = vld [vmem:[#allocation10 + $0x18c] sm:$0xf0] }
  0x66   :  { %v6248_v46 = vld [vmem:[#allocation10 + $0x380] sm:$0xf]  ;;  %v8281_v47 = vld [vmem:[#allocation10 + $0x38c] sm:$0xf0]  ;;  %v5993_v48 = vor.u32 %v8217_v40, %v5992_v39 }
  0x67   :  { %794 = vmatpush.bf16.msrb.mxu2 %v5713_v44  ;;  %807 = vmatpush.bf16.msrb.mxu3 %v5717_v45  ;;  %v8249_v44 = vld [vmem:[#allocation10 + $0x28c] sm:$0xf0]  ;;  %v5865_v45 = vor.u32 %v8185_v38, %v5864_v37  ;;  %v5976_v51 = vld [vmem:[#allocation10 + $0x160] sm:$0xf]  ;;  %v6249_v55 = vor.u32 %v8281_v47, %v6248_v46 }
  0x68   :  { %v8181_v50 = vld [vmem:[#allocation10 + $0x6c] sm:$0xf0]  ;;  %v6104_v56 = vld [vmem:[#allocation10 + $0x260] sm:$0xf] }
  0x69   :  { %769 = vmatpush.bf16.msrb.mxu0 %v5641_v49  ;;  %782 = vmatpush.bf16.msrb.mxu1 %v5645_v54  ;;  %v5848_v49 = vld [vmem:[#allocation10 + $0x60] sm:$0xf]  ;;  %v8213_v53 = vld [vmem:[#allocation10 + $0x16c] sm:$0xf0]  ;;  %v6121_v54 = vor.u32 %v8249_v44, %v6120_v43 }
  0x6a   :  { %v8245_v57 = vld [vmem:[#allocation10 + $0x26c] sm:$0xf0]  ;;  %v5849_v58 = vor.u32 %v8181_v50, %v5848_v49  ;;  %v6232_v59 = vld [vmem:[#allocation10 + $0x360] sm:$0xf] }
  0x6b   :  { %795 = vmatpush.bf16.msrb.mxu2 %v5649_v61  ;;  %808 = vmatpush.bf16.msrb.mxu3 %v5653_v62  ;;  %v8277_v60 = vld [vmem:[#allocation10 + $0x36c] sm:$0xf0]  ;;  %v5977_v61 = vor.u32 %v8213_v53, %v5976_v51  ;;  %v5832_v62 = vld [vmem:[#allocation10 + $0x40] sm:$0xf] }
  0x6c   :  { %v8177_v63 = vld [vmem:[#allocation10 + $0x4c] sm:$0xf0]  ;;  %v5960_v0 = vld [vmem:[#allocation10 + $0x140] sm:$0xf]  ;;  %v6233_v3 = vor.u32 %v8277_v60, %v6232_v59 }
  0x6d   :  { %770 = vmatpush.bf16.msrb.mxu0 %v5577_v2  ;;  %783 = vmatpush.bf16.msrb.mxu1 %v5581_v6  ;;  %v8209_v1 = vld [vmem:[#allocation10 + $0x14c] sm:$0xf0]  ;;  %v6105_v2 = vor.u32 %v8245_v57, %v6104_v56  ;;  %v6088_v4 = vld [vmem:[#allocation10 + $0x240] sm:$0xf]  ;;  %v5833_v6 = vor.u32 %v8177_v63, %v5832_v62 }
  0x6e   :  { %v8241_v5 = vld [vmem:[#allocation10 + $0x24c] sm:$0xf0]  ;;  %v5961_v9 = vor.u32 %v8209_v1, %v5960_v0  ;;  %v5944_v11 = vld [vmem:[#allocation10 + $0x120] sm:$0xf] }
  0x6f   :  { %796 = vmatpush.bf16.msrb.mxu2 %v5585_v13  ;;  %809 = vmatpush.bf16.msrb.mxu3 %v5589_v16  ;;  %v8273_v8 = vld [vmem:[#allocation10 + $0x34c] sm:$0xf0]  ;;  %v6089_v13 = vor.u32 %v8241_v5, %v6088_v4  ;;  %v5800_v15 = vld [vmem:[#allocation10] sm:$0xf] }
  0x70   :  { %5794 = vmatmul.msk.bf16.vlgmr.msrb.gmra.mxu0 %vm603_vm0, %v9161_v52  ;;  %5795 = vmatmul.msk.bf16.vlgmr.msrb.gmra.mxu1 %vm603_vm0, %v9161_v52  ;;  %v8205_v12 = vld [vmem:[#allocation10 + $0x12c] sm:$0xf0]  ;;  %v5928_v20 = vld [vmem:[#allocation10 + $0x100] sm:$0xf] }
  0x71   :  { %2427 = vmatpush.bf16.msra.mxu0 %v5913_v7  ;;  %2440 = vmatpush.bf16.msra.mxu1 %v6041_v10  ;;  %v6216_v7 = vld [vmem:[#allocation10 + $0x340] sm:$0xf]  ;;  %v8169_v16 = vld [vmem:[#allocation10 + $0xc] sm:$0xf0]  ;;  %v5945_v23 = vor.u32 %v8205_v12, %v5944_v11 }
  0x72   :  { %5796 = vmatmul.msk.bf16.vlgmr.msrb.gmra.mxu2 %vm603_vm0, %v9161_v52  ;;  %5797 = vmatmul.msk.bf16.vlgmr.msrb.gmra.mxu3 %vm603_vm0, %v9161_v52  ;;  %v5816_v10 = vld [vmem:[#allocation10 + $0x20] sm:$0xf]  ;;  %v8173_v52 = vld [vmem:[#allocation10 + $0x2c] sm:$0xf0]  ;;  %v6217_v14 = vor.u32 %v8273_v8, %v6216_v7  ;;  %v5801_v34 = vor.u32 %v8169_v16, %v5800_v15 }
  0x73   :  { %2453 = vmatpush.bf16.msra.mxu2 %v6169_v17  ;;  %2466 = vmatpush.bf16.msra.mxu3 %v6297_v18  ;;  %v6072_v17 = vld [vmem:[#allocation10 + $0x220] sm:$0xf]  ;;  %v8237_v18 = vld [vmem:[#allocation10 + $0x22c] sm:$0xf0]  ;;  %v5817_v19 = vor.u32 %v8173_v52, %v5816_v10 }
  0x74   :  { %v8269_v22 = vld [vmem:[#allocation10 + $0x32c] sm:$0xf0]  ;;  %v6424_v25 = vld [vmem:[#allocation10 + $0x4e0] sm:$0xf] }
  0x75   :  { %2428 = vmatpush.bf16.msra.mxu0 %v5897_v21  ;;  %2441 = vmatpush.bf16.msra.mxu1 %v6025_v24  ;;  %v6200_v21 = vld [vmem:[#allocation10 + $0x320] sm:$0xf]  ;;  %v8201_v24 = vld [vmem:[#allocation10 + $0x10c] sm:$0xf0] }
  0x76   :  { %v8325_v26 = vld [vmem:[#allocation10 + $0x4ec] sm:$0xf0]  ;;  %v6552_v27 = vld [vmem:[#allocation10 + $0x5e0] sm:$0xf]  ;;  %v5929_v38 = vor.u32 %v8201_v24, %v5928_v20 }
  0x77   :  { %2454 = vmatpush.bf16.msra.mxu2 %v6153_v29  ;;  %2467 = vmatpush.bf16.msra.mxu3 %v6281_v30  ;;  %v8357_v28 = vld [vmem:[#allocation10 + $0x5ec] sm:$0xf0]  ;;  %v6073_v29 = vor.u32 %v8237_v18, %v6072_v17  ;;  %v6201_v30 = vor.u32 %v8269_v22, %v6200_v21  ;;  %v6056_v31 = vld [vmem:[#allocation10 + $0x200] sm:$0xf]  ;;  %v6425_v39 = vor.u32 %v8325_v26, %v6424_v25 }
  0x78   :  { %v8233_v32 = vld [vmem:[#allocation10 + $0x20c] sm:$0xf0]  ;;  %v6808_v40 = vld [vmem:[#allocation10 + $0x7e0] sm:$0xf] }
  0x79   :  { %2429 = vmatpush.bf16.msra.mxu0 %v5881_v33  ;;  %2442 = vmatpush.bf16.msra.mxu1 %v6009_v36  ;;  %v6184_v33 = vld [vmem:[#allocation10 + $0x300] sm:$0xf]  ;;  %v8265_v35 = vld [vmem:[#allocation10 + $0x30c] sm:$0xf0] }
  0x7a   :  { %v6680_v36 = vld [vmem:[#allocation10 + $0x6e0] sm:$0xf]  ;;  %v8389_v37 = vld [vmem:[#allocation10 + $0x6ec] sm:$0xf0] }
  0x7b   :  { %2455 = vmatpush.bf16.msra.mxu2 %v6137_v41  ;;  %2468 = vmatpush.bf16.msra.mxu3 %v6265_v42  ;;  %v8421_v41 = vld [vmem:[#allocation10 + $0x7ec] sm:$0xf0]  ;;  %v6553_v42 = vor.u32 %v8357_v28, %v6552_v27  ;;  %v6408_v43 = vld [vmem:[#allocation10 + $0x4c0] sm:$0xf]  ;;  %v6681_v49 = vor.u32 %v8389_v37, %v6680_v36 }
  0x7c   :  { %v8321_v44 = vld [vmem:[#allocation10 + $0x4cc] sm:$0xf0]  ;;  %v6536_v46 = vld [vmem:[#allocation10 + $0x5c0] sm:$0xf]  ;;  %v6809_v50 = vor.u32 %v8421_v41, %v6808_v40 }
  0x7d   :  { %2430 = vmatpush.bf16.msra.mxu0 %v5865_v45  ;;  %2443 = vmatpush.bf16.msra.mxu1 %v5993_v48  ;;  %v6057_v45 = vor.u32 %v8233_v32, %v6056_v31  ;;  %v8353_v47 = vld [vmem:[#allocation10 + $0x5cc] sm:$0xf0]  ;;  %v6185_v48 = vor.u32 %v8265_v35, %v6184_v33  ;;  %v6664_v51 = vld [vmem:[#allocation10 + $0x6c0] sm:$0xf] }
  0x7e   :  { %v8385_v53 = vld [vmem:[#allocation10 + $0x6cc] sm:$0xf0]  ;;  %v6537_v57 = vor.u32 %v8353_v47, %v6536_v46  ;;  %v6520_v60 = vld [vmem:[#allocation10 + $0x5a0] sm:$0xf] }
  0x7f   :  { %2456 = vmatpush.bf16.msra.mxu2 %v6121_v54  ;;  %2469 = vmatpush.bf16.msra.mxu3 %v6249_v55  ;;  %v6409_v54 = vor.u32 %v8321_v44, %v6408_v43  ;;  %v6792_v55 = vld [vmem:[#allocation10 + $0x7c0] sm:$0xf]  ;;  %v8417_v56 = vld [vmem:[#allocation10 + $0x7cc] sm:$0xf0]  ;;  %v6665_v62 = vor.u32 %v8385_v53, %v6664_v51 }
  0x80   :  { %v8317_v59 = vld [vmem:[#allocation10 + $0x4ac] sm:$0xf0]  ;;  %v6793_v63 = vor.u32 %v8417_v56, %v6792_v55  ;;  %v6648_v0 = vld [vmem:[#allocation10 + $0x6a0] sm:$0xf] }
  0x81   :  { %2431 = vmatpush.bf16.msra.mxu0 %v5849_v58  ;;  %2444 = vmatpush.bf16.msra.mxu1 %v5977_v61  ;;  %v6392_v58 = vld [vmem:[#allocation10 + $0x4a0] sm:$0xf]  ;;  %v8349_v61 = vld [vmem:[#allocation10 + $0x5ac] sm:$0xf0] }
  0x82   :  { %v8381_v1 = vld [vmem:[#allocation10 + $0x6ac] sm:$0xf0]  ;;  %v6521_v5 = vor.u32 %v8349_v61, %v6520_v60  ;;  %v6504_v8 = vld [vmem:[#allocation10 + $0x580] sm:$0xf] }
  0x83   :  { %2457 = vmatpush.bf16.msra.mxu2 %v6105_v2  ;;  %2470 = vmatpush.bf16.msra.mxu3 %v6233_v3  ;;  %v6393_v2 = vor.u32 %v8317_v59, %v6392_v58  ;;  %v6776_v3 = vld [vmem:[#allocation10 + $0x7a0] sm:$0xf]  ;;  %v8413_v4 = vld [vmem:[#allocation10 + $0x7ac] sm:$0xf0]  ;;  %v6649_v10 = vor.u32 %v8381_v1, %v6648_v0 }
  0x84   :  { %v8313_v7 = vld [vmem:[#allocation10 + $0x48c] sm:$0xf0]  ;;  %v6777_v52 = vor.u32 %v8413_v4, %v6776_v3  ;;  %v6632_v11 = vld [vmem:[#allocation10 + $0x680] sm:$0xf] }
  0x85   :  { %2432 = vmatpush.bf16.msra.mxu0 %v5833_v6  ;;  %2445 = vmatpush.bf16.msra.mxu1 %v5961_v9  ;;  %v6376_v6 = vld [vmem:[#allocation10 + $0x480] sm:$0xf]  ;;  %v8345_v9 = vld [vmem:[#allocation10 + $0x58c] sm:$0xf0] }
  0x86   :  { %v8377_v12 = vld [vmem:[#allocation10 + $0x68c] sm:$0xf0]  ;;  %v6505_v16 = vor.u32 %v8345_v9, %v6504_v8  ;;  %v6360_v17 = vld [vmem:[#allocation10 + $0x460] sm:$0xf]  ;;  %v9199_v8 = vstv %s179_s10 }
  0x87   :  { %2458 = vmatpush.bf16.msra.mxu2 %v6089_v13  ;;  %2471 = vmatpush.bf16.msra.mxu3 %v6217_v14  ;;  %v6377_v13 = vor.u32 %v8313_v7, %v6376_v6  ;;  %v6760_v14 = vld [vmem:[#allocation10 + $0x780] sm:$0xf]  ;;  %v8409_v15 = vld [vmem:[#allocation10 + $0x78c] sm:$0xf0]  ;;  %v6633_v21 = vor.u32 %v8377_v12, %v6632_v11  ;;  %v8195_v11 = vld [vmem:[#allocation10 + $0xe4] sm:$0xf] }
  0x88   :  { %v8309_v18 = vld [vmem:[#allocation10 + $0x46c] sm:$0xf0]  ;;  %v6761_v22 = vor.u32 %v8409_v15, %v6760_v14  ;;  %v6344_v25 = vld [vmem:[#allocation10 + $0x440] sm:$0xf]  ;;  %v5914_v12 = vld [vmem:[#allocation10 + $0xf0] sm:$0xf0] }
  0x89   :  { %2433 = vmatpush.bf16.msra.mxu0 %v5817_v19  ;;  %2446 = vmatpush.bf16.msra.mxu1 %v5945_v23  ;;  %v6488_v19 = vld [vmem:[#allocation10 + $0x560] sm:$0xf]  ;;  %v8341_v20 = vld [vmem:[#allocation10 + $0x56c] sm:$0xf0]  ;;  %v6361_v23 = vor.u32 %v8309_v18, %v6360_v17  ;;  %v8227_v14 = vld [vmem:[#allocation10 + $0x1e4] sm:$0xf] }
  0x8a   :  { %v6489_v24 = vor.u32 %v8341_v20, %v6488_v19  ;;  %v8305_v26 = vld [vmem:[#allocation10 + $0x44c] sm:$0xf0]  ;;  %v6472_v27 = vld [vmem:[#allocation10 + $0x540] sm:$0xf]  ;;  %v6042_v15 = vld [vmem:[#allocation10 + $0x1f0] sm:$0xf0]  ;;  %v5917_v20 = vor.u32 %v8195_v11, %v5914_v12 }
  0x8b   :  { %2459 = vmatpush.bf16.msra.mxu2 %v6073_v29  ;;  %2472 = vmatpush.bf16.msra.mxu3 %v6201_v30  ;;  %v8337_v28 = vld [vmem:[#allocation10 + $0x54c] sm:$0xf0]  ;;  %v6345_v29 = vor.u32 %v8305_v26, %v6344_v25  ;;  %v6616_v31 = vld [vmem:[#allocation10 + $0x660] sm:$0xf]  ;;  %v5898_v25 = vld [vmem:[#allocation10 + $0xd0] sm:$0xf0] }
  0x8c   :  { %v6473_v30 = vor.u32 %v8337_v28, %v6472_v27  ;;  %v8373_v32 = vld [vmem:[#allocation10 + $0x66c] sm:$0xf0]  ;;  %v6744_v33 = vld [vmem:[#allocation10 + $0x760] sm:$0xf]  ;;  %v8223_v28 = vld [vmem:[#allocation10 + $0x1c4] sm:$0xf] }
  0x8d   :  { %2434 = vmatpush.bf16.msra.mxu0 %v5801_v34  ;;  %2447 = vmatpush.bf16.msra.mxu1 %v5929_v38  ;;  %v6617_v34 = vor.u32 %v8373_v32, %v6616_v31  ;;  %v8405_v35 = vld [vmem:[#allocation10 + $0x76c] sm:$0xf0]  ;;  %v6328_v37 = vld [vmem:[#allocation10 + $0x420] sm:$0xf]  ;;  %v8251_v11 = vld [vmem:[#allocation10 + $0x2a4] sm:$0xf] }
  0x8e   :  { %v6745_v36 = vor.u32 %v8405_v35, %v6744_v33  ;;  %v8301_v38 = vld [vmem:[#allocation10 + $0x42c] sm:$0xf0]  ;;  %v6600_v43 = vld [vmem:[#allocation10 + $0x640] sm:$0xf]  ;;  %v8259_v33 = vld [vmem:[#allocation10 + $0x2e4] sm:$0xf] }
  0x8f   :  { %2460 = vmatpush.bf16.msra.mxu2 %v6057_v45  ;;  %2473 = vmatpush.bf16.msra.mxu3 %v6185_v48  ;;  %v6329_v40 = vor.u32 %v8301_v38, %v6328_v37  ;;  %v8333_v41 = vld [vmem:[#allocation10 + $0x52c] sm:$0xf0]  ;;  %v6728_v45 = vld [vmem:[#allocation10 + $0x740] sm:$0xf]  ;;  %v6170_v37 = vld [vmem:[#allocation10 + $0x2f0] sm:$0xf0] }
  0x90   :  { %v8369_v44 = vld [vmem:[#allocation10 + $0x64c] sm:$0xf0]  ;;  %v6440_v51 = vld [vmem:[#allocation10 + $0x500] sm:$0xf]  ;;  %v8291_v38 = vld [vmem:[#allocation10 + $0x3e4] sm:$0xf] }
  0x91   :  { %2479 = vmatpush.bf16.msrb.mxu0 %v6425_v39  ;;  %2492 = vmatpush.bf16.msrb.mxu1 %v6553_v42  ;;  %v6456_v39 = vld [vmem:[#allocation10 + $0x520] sm:$0xf]  ;;  %v6601_v46 = vor.u32 %v8369_v44, %v6600_v43  ;;  %v8401_v47 = vld [vmem:[#allocation10 + $0x74c] sm:$0xf0]  ;;  %v5882_v43 = vld [vmem:[#allocation10 + $0xb0] sm:$0xf0] }
  0x92   :  { %v6457_v42 = vor.u32 %v8333_v41, %v6456_v39  ;;  %v6729_v48 = vor.u32 %v8401_v47, %v6728_v45  ;;  %v6584_v56 = vld [vmem:[#allocation10 + $0x620] sm:$0xf]  ;;  %v8397_v60 = vld [vmem:[#allocation10 + $0x72c] sm:$0xf0]  ;;  %v6298_v39 = vld [vmem:[#allocation10 + $0x3f0] sm:$0xf0] }
  0x93   :  { %2505 = vmatpush.bf16.msrb.mxu2 %v6681_v49  ;;  %2518 = vmatpush.bf16.msrb.mxu3 %v6809_v50  ;;  %v6312_v49 = vld [vmem:[#allocation10 + $0x400] sm:$0xf]  ;;  %v8297_v50 = vld [vmem:[#allocation10 + $0x40c] sm:$0xf0]  ;;  %v8219_v45 = vld [vmem:[#allocation10 + $0x1a4] sm:$0xf] }
  0x94   :  { %v6313_v53 = vor.u32 %v8297_v50, %v6312_v49  ;;  %v6712_v58 = vld [vmem:[#allocation10 + $0x720] sm:$0xf]  ;;  %v9195_v4 = vld [vmem:[#allocation9] sm:$0xff] }
  0x95   :  { %2480 = vmatpush.bf16.msrb.mxu0 %v6409_v54  ;;  %2493 = vmatpush.bf16.msrb.mxu1 %v6537_v57  ;;  %v8329_v54 = vld [vmem:[#allocation10 + $0x50c] sm:$0xf0]  ;;  %v6713_v61 = vor.u32 %v8397_v60, %v6712_v58  ;;  %v6696_v1 = vld [vmem:[#allocation10 + $0x700] sm:$0xf]  ;;  %v252_v6 = vperm.slane %v9195_v4, 1  ;;  %v253_v17 = vperm.slane %v9195_v4, 2 }
  0x96   :  { %v6441_v55 = vor.u32 %v8329_v54, %v6440_v51  ;;  %v8365_v57 = vld [vmem:[#allocation10 + $0x62c] sm:$0xf0]  ;;  %v254_v19 = vperm.slane %v9195_v4, 3  ;;  %v255_v49 = vperm.slane %v9195_v4, 4  ;;  %v256_v50 = vperm.slane %v9195_v4, 5 }
  0x97   :  { %2506 = vmatpush.bf16.msrb.mxu2 %v6665_v62  ;;  %2519 = vmatpush.bf16.msrb.mxu3 %v6793_v63  ;;  %v6585_v59 = vor.u32 %v8365_v57, %v6584_v56  ;;  %v6568_v62 = vld [vmem:[#allocation10 + $0x600] sm:$0xf]  ;;  %v8361_v63 = vld [vmem:[#allocation10 + $0x60c] sm:$0xf0]  ;;  %v6301_v54 = vor.u32 %v8291_v38, %v6298_v39  ;;  %v8255_v56 = vld [vmem:[#allocation10 + $0x2c4] sm:$0xf] }
  0x98   :  { %v6569_v0 = vor.u32 %v8361_v63, %v6568_v62  ;;  %v6154_v57 = vld [vmem:[#allocation10 + $0x2d0] sm:$0xf0]  ;;  %v8287_v58 = vld [vmem:[#allocation10 + $0x3c4] sm:$0xf] }
  0x99   :  { %2481 = vmatpush.bf16.msrb.mxu0 %v6393_v2  ;;  %2494 = vmatpush.bf16.msrb.mxu1 %v6521_v5  ;;  %v8393_v2 = vld [vmem:[#allocation10 + $0x70c] sm:$0xf0]  ;;  %v251_v5 = vperm.slane %v9195_v4, 0  ;;  %v8183_v62 = vld [vmem:[#allocation10 + $0x84] sm:$0xf] }
  0x9a   :  { %v6697_v3 = vor.u32 %v8393_v2, %v6696_v1  ;;  %v5866_v63 = vld [vmem:[#allocation10 + $0x90] sm:$0xf0]  ;;  %v8215_v1 = vld [vmem:[#allocation10 + $0x184] sm:$0xf] }
  0x9b   :  { %2507 = vmatpush.bf16.msrb.mxu2 %v6649_v10  ;;  %2520 = vmatpush.bf16.msrb.mxu3 %v6777_v52  ;;  %v5994_v2 = vld [vmem:[#allocation10 + $0x190] sm:$0xf0]  ;;  %v8175_v38 = vld [vmem:[#allocation10 + $0x44] sm:$0xf] }
  0x9c   :  { %v6138_v12 = vld [vmem:[#allocation10 + $0x2b0] sm:$0xf0] }
  0x9d   :  { %2482 = vmatpush.bf16.msrb.mxu0 %v6377_v13  ;;  %2495 = vmatpush.bf16.msrb.mxu1 %v6505_v16 }
  0x9f   :  { %2508 = vmatpush.bf16.msrb.mxu2 %v6633_v21  ;;  %2521 = vmatpush.bf16.msrb.mxu3 %v6761_v22 }
  0xa1   :  { %2483 = vmatpush.bf16.msrb.mxu0 %v6361_v23  ;;  %2496 = vmatpush.bf16.msrb.mxu1 %v6489_v24  ;;  %v6045_v23 = vor.u32 %v8227_v14, %v6042_v15  ;;  %v8191_v24 = vld [vmem:[#allocation10 + $0xc4] sm:$0xf]  ;;  %v5997_v15 = vor.u32 %v8215_v1, %v5994_v2 }
  0xa3   :  { %2509 = vmatpush.bf16.msrb.mxu2 %v6617_v34  ;;  %2522 = vmatpush.bf16.msrb.mxu3 %v6745_v36  ;;  %v5901_v36 = vor.u32 %v8191_v24, %v5898_v25  ;;  %v257_v24 = vperm.slane %v9195_v4, 6  ;;  %v6141_v25 = vor.u32 %v8251_v11, %v6138_v12 }
  0xa5   :  { %2484 = vmatpush.bf16.msrb.mxu0 %v6345_v29  ;;  %2497 = vmatpush.bf16.msrb.mxu1 %v6473_v30  ;;  %v6026_v29 = vld [vmem:[#allocation10 + $0x1d0] sm:$0xf0] }
  0xa6   :  { %v6029_v41 = vor.u32 %v8223_v28, %v6026_v29  ;;  %v258_v28 = vperm.slane %v9195_v4, 7 }
  0xa7   :  { %2510 = vmatpush.bf16.msrb.mxu2 %v6601_v46  ;;  %2523 = vmatpush.bf16.msrb.mxu3 %v6729_v48  ;;  %v6010_v46 = vld [vmem:[#allocation10 + $0x1b0] sm:$0xf0]  ;;  %v6173_v48 = vor.u32 %v8259_v33, %v6170_v37 }
  0xa8   :  { %v6013_v60 = vor.u32 %v8219_v45, %v6010_v46  ;;  %v6250_v37 = vld [vmem:[#allocation10 + $0x390] sm:$0xf0]  ;;  %v8243_v46 = vld [vmem:[#allocation10 + $0x264] sm:$0xf] }
  0xa9   :  { %2485 = vmatpush.bf16.msrb.mxu0 %v6329_v40  ;;  %2498 = vmatpush.bf16.msrb.mxu1 %v6457_v42  ;;  %v8187_v42 = vld [vmem:[#allocation10 + $0xa4] sm:$0xf] }
  0xab   :  { %2511 = vmatpush.bf16.msrb.mxu2 %v6585_v59  ;;  %2524 = vmatpush.bf16.msrb.mxu3 %v6713_v61  ;;  %v6282_v61 = vld [vmem:[#allocation10 + $0x3d0] sm:$0xf0] }
  0xad   :  { %2486 = vmatpush.bf16.msrb.mxu0 %v6313_v53  ;;  %2499 = vmatpush.bf16.msrb.mxu1 %v6441_v55  ;;  %v5885_v55 = vor.u32 %v8187_v42, %v5882_v43  ;;  %v8207_v42 = vld [vmem:[#allocation10 + $0x144] sm:$0xf]  ;;  %v5962_v43 = vld [vmem:[#allocation10 + $0x150] sm:$0xf0] }
  0xaf   :  { %2512 = vmatpush.bf16.msrb.mxu2 %v6569_v0  ;;  %2525 = vmatpush.bf16.msrb.mxu3 %v6697_v3 }
  0xbd   :  { %v616_v7 = vpop.f32.mrf.mxu0  ;;  %v629_v10 = vpop.f32.mrf.mxu1 }
  0xbe   :  { %v617_v9 = vadd.f32 %v616_v7, %v251_v5  ;;  %v630_v52 = vadd.f32 %v629_v10, %v252_v6  ;;  %v6157_v6 = vor.u32 %v8255_v56, %v6154_v57  ;;  %v6285_v10 = vor.u32 %v8287_v58, %v6282_v61  ;;  %v5818_v61 = vld [vmem:[#allocation10 + $0x30] sm:$0xf0] }
  0xbf   :  { %v5965_v58 = vor.u32 %v8207_v42, %v5962_v43  ;;  %v8231_v43 = vld [vmem:[#allocation10 + $0x204] sm:$0xf] }
  0xc0   :  { %vm815_vm1 = vcmp.gt.f32.partialorder %v617_v9, 0.0  ;;  %v824_v13 = vmul.f32 %v9199_v8, %v617_v9  ;;  %vm816_vm2 = vcmp.gt.f32.partialorder %v630_v52, 0.0  ;;  %v825_v16 = vmul.f32 %v9199_v8, %v630_v52 }
  0xc2   :  { %v832_v18 = vsel %vm815_vm1, %v617_v9, %v824_v13  ;;  %v833_v22 = vsel %vm816_vm2, %v630_v52, %v825_v16  ;;  %v5869_v52 = vor.u32 %v8183_v62, %v5866_v63  ;;  %v8283_v13 = vld [vmem:[#allocation10 + $0x3a4] sm:$0xf]  ;;  %v6266_v16 = vld [vmem:[#allocation10 + $0x3b0] sm:$0xf0] }
  0xc3   :  { %v9205_v21 = vpack.c.bf16 %v832_v18, %v832_v18  ;;  %v9207_v26 = vpack.c.bf16 %v833_v22, %v833_v22  ;;  %v5850_v18 = vld [vmem:[#allocation10 + $0x70] sm:$0xf0]  ;;  %v6269_v29 = vor.u32 %v8283_v13, %v6266_v16  ;;  %v8203_v63 = vld [vmem:[#allocation10 + $0x124] sm:$0xf] }
  0xc4   :  { %v5978_v22 = vld [vmem:[#allocation10 + $0x170] sm:$0xf0]  ;;  %v8167_v13 = vld [vmem:[#allocation10 + $0x4] sm:$0xf] }
  0xc5   :  { %v642_v27 = vpop.f32.mrf.mxu2  ;;  %v655_v31 = vpop.f32.mrf.mxu3  ;;  %2435 = vmatmul.bf16.vlgmr.msra.gmra.mxu0 %v9205_v21  ;;  %2448 = vmatmul.bf16.vlgmr.msra.gmra.mxu1 %v9207_v26  ;;  %v8199_v16 = vld [vmem:[#allocation10 + $0x104] sm:$0xf] }
  0xc6   :  { %v643_v30 = vadd.f32 %v642_v27, %v253_v17  ;;  %v618_v32 = vpop.f32.mrf.mxu0  ;;  %v656_v34 = vadd.f32 %v655_v31, %v254_v19  ;;  %v631_v35 = vpop.f32.mrf.mxu1  ;;  %2531 = vmatpush.bf16.msra.mxu0 %v5917_v20  ;;  %2544 = vmatpush.bf16.msra.mxu1 %v6045_v23  ;;  %v8179_v17 = vld [vmem:[#allocation10 + $0x64] sm:$0xf]  ;;  %v6122_v31 = vld [vmem:[#allocation10 + $0x290] sm:$0xf0] }
  0xc7   :  { %v8211_v20 = vld [vmem:[#allocation10 + $0x164] sm:$0xf] }
  0xc8   :  { %vm817_vm3 = vcmp.gt.f32.partialorder %v643_v30, 0.0  ;;  %v826_v40 = vmul.f32 %v9199_v8, %v643_v30  ;;  %vm818_vm4 = vcmp.gt.f32.partialorder %v656_v34, 0.0  ;;  %v827_v44 = vmul.f32 %v9199_v8, %v656_v34 }
  0xc9   :  { %v5981_v35 = vor.u32 %v8211_v20, %v5978_v22  ;;  %v6426_v22 = vld [vmem:[#allocation10 + $0x4f0] sm:$0xf0] }
  0xca   :  { %v834_v47 = vsel %vm817_vm3, %v643_v30, %v826_v40  ;;  %v835_v53 = vsel %vm818_vm4, %v656_v34, %v827_v44  ;;  %2532 = vmatpush.bf16.msra.mxu0 %v5901_v36  ;;  %2545 = vmatpush.bf16.msra.mxu1 %v6029_v41  ;;  %v8247_v30 = vld [vmem:[#allocation10 + $0x284] sm:$0xf]  ;;  %v5853_v34 = vor.u32 %v8179_v17, %v5850_v18  ;;  %v5834_v41 = vld [vmem:[#allocation10 + $0x50] sm:$0xf0] }
  0xcb   :  { %v9215_v51 = vpack.c.bf16 %v834_v47, %v834_v47  ;;  %v9217_v59 = vpack.c.bf16 %v835_v53, %v835_v53  ;;  %v8279_v36 = vld [vmem:[#allocation10 + $0x384] sm:$0xf]  ;;  %v6125_v45 = vor.u32 %v8247_v30, %v6122_v31  ;;  %v5837_v57 = vor.u32 %v8175_v38, %v5834_v41  ;;  %v5930_v17 = vld [vmem:[#allocation10 + $0x110] sm:$0xf0] }
  0xcc   :  { %v8275_v53 = vld [vmem:[#allocation10 + $0x364] sm:$0xf]  ;;  %v5933_v30 = vor.u32 %v8199_v16, %v5930_v17  ;;  %v6410_v38 = vld [vmem:[#allocation10 + $0x4d0] sm:$0xf0] }
  0xcd   :  { %v644_v0 = vpop.f32.mrf.mxu2  ;;  %2461 = vmatmul.bf16.vlgmr.msra.gmra.mxu2 %v9215_v51  ;;  %v657_v3 = vpop.f32.mrf.mxu3  ;;  %2474 = vmatmul.bf16.vlgmr.msra.gmra.mxu3 %v9217_v59  ;;  %v8323_v18 = vld [vmem:[#allocation10 + $0x4e4] sm:$0xf]  ;;  %v6538_v41 = vld [vmem:[#allocation10 + $0x5d0] sm:$0xf0] }
  0xce   :  { %2557 = vmatpush.bf16.msra.mxu2 %v6173_v48  ;;  %v668_v5 = vpop.f32.mrf.mxu0  ;;  %2570 = vmatpush.bf16.msra.mxu3 %v6301_v54  ;;  %v681_v9 = vpop.f32.mrf.mxu1  ;;  %v6234_v54 = vld [vmem:[#allocation10 + $0x370] sm:$0xf0]  ;;  %v8267_v31 = vld [vmem:[#allocation10 + $0x324] sm:$0xf] }
  0xcf   :  { %v669_v7 = vadd.f32 %v668_v5, %v255_v49  ;;  %2533 = vmatpush.bf16.msra.mxu0 %v5885_v55  ;;  %v682_v14 = vadd.f32 %v681_v9, %v256_v50  ;;  %2546 = vmatpush.bf16.msra.mxu1 %v6013_v60  ;;  %v6253_v49 = vor.u32 %v8279_v36, %v6250_v37  ;;  %v6106_v50 = vld [vmem:[#allocation10 + $0x270] sm:$0xf0]  ;;  %v8171_v60 = vld [vmem:[#allocation10 + $0x24] sm:$0xf] }
  0xd0   :  { %v5946_v0 = vld [vmem:[#allocation10 + $0x130] sm:$0xf0]  ;;  %v6109_v2 = vor.u32 %v8243_v46, %v6106_v50  ;;  %v5821_v11 = vor.u32 %v8171_v60, %v5818_v61  ;;  %v8319_v36 = vld [vmem:[#allocation10 + $0x4c4] sm:$0xf] }
  0xd1   :  { %vm819_vm5 = vcmp.gt.f32.partialorder %v669_v7, 0.0  ;;  %v828_v19 = vmul.f32 %v9199_v8, %v669_v7  ;;  %vm820_vm6 = vcmp.gt.f32.partialorder %v682_v14, 0.0  ;;  %v829_v23 = vmul.f32 %v9199_v8, %v682_v14  ;;  %v6090_v9 = vld [vmem:[#allocation10 + $0x250] sm:$0xf0]  ;;  %v8387_v46 = vld [vmem:[#allocation10 + $0x6e4] sm:$0xf] }
  0xd2   :  { %2558 = vmatpush.bf16.msra.mxu2 %v6157_v6  ;;  %2571 = vmatpush.bf16.msra.mxu3 %v6285_v10  ;;  %v6237_v6 = vor.u32 %v8275_v53, %v6234_v54  ;;  %v8271_v10 = vld [vmem:[#allocation10 + $0x344] sm:$0xf]  ;;  %v5949_v12 = vor.u32 %v8203_v63, %v5946_v0  ;;  %v6810_v53 = vld [vmem:[#allocation10 + $0x7f0] sm:$0xf0] }
  0xd3   :  { %v836_v27 = vsel %vm819_vm5, %v669_v7, %v828_v19  ;;  %2534 = vmatpush.bf16.msra.mxu0 %v5869_v52  ;;  %v837_v33 = vsel %vm820_vm6, %v682_v14, %v829_v23  ;;  %2547 = vmatpush.bf16.msra.mxu1 %v5997_v15  ;;  %v8239_v7 = vld [vmem:[#allocation10 + $0x244] sm:$0xf]  ;;  %v5802_v14 = vld [vmem:[#allocation10 + $0x10] sm:$0xf0] }
  0xd4   :  { %v9225_v32 = vpack.c.bf16 %v836_v27, %v836_v27  ;;  %v9227_v39 = vpack.c.bf16 %v837_v33, %v837_v33  ;;  %v6093_v19 = vor.u32 %v8239_v7, %v6090_v9  ;;  %v8355_v23 = vld [vmem:[#allocation10 + $0x5e4] sm:$0xf]  ;;  %v6202_v33 = vld [vmem:[#allocation10 + $0x330] sm:$0xf0] }
  0xd5   :  { %v694_v40 = vpop.f32.mrf.mxu2  ;;  %v707_v4 = vpop.f32.mrf.mxu3  ;;  %v8235_v27 = vld [vmem:[#allocation10 + $0x224] sm:$0xf]  ;;  %v6205_v42 = vor.u32 %v8267_v31, %v6202_v33  ;;  %v6666_v0 = vld [vmem:[#allocation10 + $0x6d0] sm:$0xf0] }
  0xd6   :  { %v695_v44 = vadd.f32 %v694_v40, %v257_v24  ;;  %2559 = vmatpush.bf16.msra.mxu2 %v6141_v25  ;;  %2487 = vmatmul.bf16.vlgmr.msrb.gmra.mxu0 %v9225_v32  ;;  %v670_v47 = vpop.f32.mrf.mxu0  ;;  %v708_v48 = vadd.f32 %v707_v4, %v258_v28  ;;  %v683_v55 = vpop.f32.mrf.mxu1  ;;  %v6554_v24 = vld [vmem:[#allocation10 + $0x5f0] sm:$0xf0]  ;;  %v8351_v40 = vld [vmem:[#allocation10 + $0x5c4] sm:$0xf] }
  0xd7   :  { %2572 = vmatpush.bf16.msra.mxu3 %v6269_v29  ;;  %2500 = vmatmul.bf16.vlgmr.msrb.gmra.mxu1 %v9227_v39  ;;  %v6074_v28 = vld [vmem:[#allocation10 + $0x230] sm:$0xf0]  ;;  %v5805_v29 = vor.u32 %v8167_v13, %v5802_v14  ;;  %v8263_v4 = vld [vmem:[#allocation10 + $0x304] sm:$0xf] }
  0xd8   :  { %vm821_vm7 = vcmp.gt.f32.partialorder %v695_v44, 0.0  ;;  %v830_v56 = vmul.f32 %v9199_v8, %v695_v44  ;;  %2535 = vmatpush.bf16.msra.mxu0 %v5853_v34  ;;  %2548 = vmatpush.bf16.msra.mxu1 %v5981_v35  ;;  %vm822_vm8 = vcmp.gt.f32.partialorder %v708_v48, 0.0  ;;  %v831_v62 = vmul.f32 %v9199_v8, %v708_v48  ;;  %v6218_v8 = vld [vmem:[#allocation10 + $0x350] sm:$0xf0]  ;;  %v8419_v50 = vld [vmem:[#allocation10 + $0x7e4] sm:$0xf] }
  0xd9   :  { %v6221_v25 = vor.u32 %v8271_v10, %v6218_v8  ;;  %v6429_v34 = vor.u32 %v8323_v18, %v6426_v22  ;;  %v6557_v35 = vor.u32 %v8355_v23, %v6554_v24  ;;  %v6077_v37 = vor.u32 %v8235_v27, %v6074_v28  ;;  %v6682_v47 = vld [vmem:[#allocation10 + $0x6f0] sm:$0xf0]  ;;  %v8315_v54 = vld [vmem:[#allocation10 + $0x4a4] sm:$0xf] }
  0xda   :  { %v838_v1 = vsel %vm821_vm7, %v695_v44, %v830_v56  ;;  %2560 = vmatpush.bf16.msra.mxu2 %v6125_v45  ;;  %v839_v5 = vsel %vm822_vm8, %v708_v48, %v831_v62  ;;  %v6058_v44 = vld [vmem:[#allocation10 + $0x210] sm:$0xf0]  ;;  %v6413_v48 = vor.u32 %v8319_v36, %v6410_v38  ;;  %v6685_v61 = vor.u32 %v8387_v46, %v6682_v47  ;;  %v8383_v63 = vld [vmem:[#allocation10 + $0x6c4] sm:$0xf] }
  0xdb   :  { %v9233_v3 = vpack.c.bf16 %v838_v1, %v838_v1  ;;  %2573 = vmatpush.bf16.msra.mxu3 %v6253_v49  ;;  %v9235_v52 = vpack.c.bf16 %v839_v5, %v839_v5  ;;  %v6186_v45 = vld [vmem:[#allocation10 + $0x310] sm:$0xf0]  ;;  %v6541_v49 = vor.u32 %v8351_v40, %v6538_v41  ;;  %v6061_v55 = vor.u32 %v8231_v43, %v6058_v44  ;;  %v8415_v5 = vld [vmem:[#allocation10 + $0x7c4] sm:$0xf] }
  0xdc   :  { %2536 = vmatpush.bf16.msra.mxu0 %v5837_v57  ;;  %2549 = vmatpush.bf16.msra.mxu1 %v5965_v58  ;;  %v6394_v56 = vld [vmem:[#allocation10 + $0x4b0] sm:$0xf0]  ;;  %v8347_v57 = vld [vmem:[#allocation10 + $0x5a4] sm:$0xf]  ;;  %v6189_v60 = vor.u32 %v8263_v4, %v6186_v45  ;;  %v6813_v62 = vor.u32 %v8419_v50, %v6810_v53 }
  0xdd   :  { %2513 = vmatmul.bf16.vlgmr.msrb.gmra.mxu2 %v9233_v3  ;;  %v696_v15 = vpop.f32.mrf.mxu2  ;;  %2526 = vmatmul.bf16.vlgmr.msrb.gmra.mxu3 %v9235_v52  ;;  %v709_v20 = vpop.f32.mrf.mxu3  ;;  %v6522_v58 = vld [vmem:[#allocation10 + $0x5b0] sm:$0xf0]  ;;  %v6397_v1 = vor.u32 %v8315_v54, %v6394_v56  ;;  %v8311_v7 = vld [vmem:[#allocation10 + $0x484] sm:$0xf] }
  0xde   :  { %2561 = vmatpush.bf16.msra.mxu2 %v6109_v2  ;;  %v6525_v2 = vor.u32 %v8347_v57, %v6522_v58  ;;  %v6378_v9 = vld [vmem:[#allocation10 + $0x490] sm:$0xf0]  ;;  %v8343_v10 = vld [vmem:[#allocation10 + $0x584] sm:$0xf]  ;;  %v9241_v8 = vpop.f32.mrf.mxu0  ;;  %v9243_v22 = vpop.f32.mrf.mxu1 }
  0xdf   :  { %2574 = vmatpush.bf16.msra.mxu3 %v6237_v6  ;;  %v6794_v6 = vld [vmem:[#allocation10 + $0x7d0] sm:$0xf0]  ;;  %v8379_v14 = vld [vmem:[#allocation10 + $0x6a4] sm:$0xf]  ;;  %v6381_v16 = vor.u32 %v8311_v7, %v6378_v9 }
  0xe0   :  { %2537 = vmatpush.bf16.msra.mxu0 %v5821_v11  ;;  %2550 = vmatpush.bf16.msra.mxu1 %v5949_v12  ;;  %v6506_v11 = vld [vmem:[#allocation10 + $0x590] sm:$0xf0]  ;;  %v6669_v12 = vor.u32 %v8383_v63, %v6666_v0  ;;  %v6797_v13 = vor.u32 %v8415_v5, %v6794_v6  ;;  %v8411_v18 = vld [vmem:[#allocation10 + $0x7a4] sm:$0xf] }
  0xe1   :  { %v6650_v15 = vld [vmem:[#allocation10 + $0x6b0] sm:$0xf0]  ;;  %v6509_v17 = vor.u32 %v8343_v10, %v6506_v11  ;;  %v8307_v20 = vld [vmem:[#allocation10 + $0x464] sm:$0xf] }
  0xe2   :  { %2562 = vmatpush.bf16.msra.mxu2 %v6093_v19  ;;  %v6778_v19 = vld [vmem:[#allocation10 + $0x7b0] sm:$0xf0]  ;;  %v8339_v24 = vld [vmem:[#allocation10 + $0x564] sm:$0xf]  ;;  %v6653_v27 = vor.u32 %v8379_v14, %v6650_v15  ;;  %v8198_v14 = vld [vmem:[#allocation10 + $0xf4] sm:$0xf0] }
  0xe3   :  { %2575 = vmatpush.bf16.msra.mxu3 %v6221_v25  ;;  %v6362_v23 = vld [vmem:[#allocation10 + $0x470] sm:$0xf0]  ;;  %v8335_v41 = vld [vmem:[#allocation10 + $0x544] sm:$0xf]  ;;  %v6048_v15 = vld [vmem:[#allocation10 + $0x1e8] sm:$0xf] }
  0xe4   :  { %2538 = vmatpush.bf16.msra.mxu0 %v5805_v29  ;;  %2551 = vmatpush.bf16.msra.mxu1 %v5933_v30  ;;  %v6490_v25 = vld [vmem:[#allocation10 + $0x570] sm:$0xf0]  ;;  %v6781_v29 = vor.u32 %v8411_v18, %v6778_v19  ;;  %v8375_v30 = vld [vmem:[#allocation10 + $0x684] sm:$0xf]  ;;  %v6365_v33 = vor.u32 %v8307_v20, %v6362_v23 }
  0xe5   :  { %v9247_v28 = vpop.f32.mrf.mxu2  ;;  %v6634_v31 = vld [vmem:[#allocation10 + $0x690] sm:$0xf0]  ;;  %v9249_v38 = vpop.f32.mrf.mxu3  ;;  %v8371_v45 = vld [vmem:[#allocation10 + $0x664] sm:$0xf] }
  0xe6   :  { %2563 = vmatpush.bf16.msra.mxu2 %v6077_v37  ;;  %v6762_v36 = vld [vmem:[#allocation10 + $0x790] sm:$0xf0]  ;;  %v8303_v37 = vld [vmem:[#allocation10 + $0x444] sm:$0xf]  ;;  %v6637_v43 = vor.u32 %v8375_v30, %v6634_v31  ;;  %v722_v44 = vpop.f32.mrf.mxu0  ;;  %v735_v54 = vpop.f32.mrf.mxu1  ;;  %v5904_v30 = vld [vmem:[#allocation10 + $0xc8] sm:$0xf] }
  0xe7   :  { %2576 = vmatpush.bf16.msra.mxu3 %v6205_v42  ;;  %2539 = vmatmul.bf16.vlgmr.msra.gmra.mxu0 %v9205_v21  ;;  %v6346_v40 = vld [vmem:[#allocation10 + $0x450] sm:$0xf0]  ;;  %v8299_v53 = vld [vmem:[#allocation10 + $0x424] sm:$0xf]  ;;  %v8262_v44 = vld [vmem:[#allocation10 + $0x2f4] sm:$0xf0] }
  0xe8   :  { %2583 = vmatpush.bf16.msrb.mxu0 %v6429_v34  ;;  %2596 = vmatpush.bf16.msrb.mxu1 %v6557_v35  ;;  %v6493_v34 = vor.u32 %v8339_v24, %v6490_v25  ;;  %v8407_v35 = vld [vmem:[#allocation10 + $0x784] sm:$0xf]  ;;  %v6474_v42 = vld [vmem:[#allocation10 + $0x550] sm:$0xf0]  ;;  %v6349_v47 = vor.u32 %v8303_v37, %v6346_v40 }
  0xe9   :  { %2552 = vmatmul.bf16.vlgmr.msra.gmra.mxu1 %v9207_v26  ;;  %v6765_v4 = vor.u32 %v8407_v35, %v6762_v36  ;;  %v6618_v46 = vld [vmem:[#allocation10 + $0x670] sm:$0xf0]  ;;  %v8331_v56 = vld [vmem:[#allocation10 + $0x524] sm:$0xf]  ;;  %v8226_v35 = vld [vmem:[#allocation10 + $0x1d4] sm:$0xf0] }
  0xea   :  { %2564 = vmatpush.bf16.msra.mxu2 %v6061_v55  ;;  %v6746_v50 = vld [vmem:[#allocation10 + $0x770] sm:$0xf0]  ;;  %v6621_v58 = vor.u32 %v8371_v45, %v6618_v46  ;;  %v8399_v0 = vld [vmem:[#allocation10 + $0x744] sm:$0xf]  ;;  %v6304_v46 = vld [vmem:[#allocation10 + $0x3e8] sm:$0xf] }
  0xeb   :  { %2577 = vmatpush.bf16.msra.mxu3 %v6189_v60  ;;  %v6330_v55 = vld [vmem:[#allocation10 + $0x430] sm:$0xf0]  ;;  %v8295_v6 = vld [vmem:[#allocation10 + $0x404] sm:$0xf] }
  0xec   :  { %2584 = vmatpush.bf16.msrb.mxu0 %v6413_v48  ;;  %2597 = vmatpush.bf16.msrb.mxu1 %v6541_v49  ;;  %v6477_v48 = vor.u32 %v8335_v41, %v6474_v42  ;;  %v8403_v49 = vld [vmem:[#allocation10 + $0x764] sm:$0xf]  ;;  %v6458_v57 = vld [vmem:[#allocation10 + $0x530] sm:$0xf0] }
  0xed   :  { %2565 = vmatmul.bf16.vlgmr.msra.gmra.mxu2 %v9215_v51  ;;  %v748_v60 = vpop.f32.mrf.mxu2  ;;  %v6602_v63 = vld [vmem:[#allocation10 + $0x650] sm:$0xf0]  ;;  %v761_v9 = vpop.f32.mrf.mxu3  ;;  %v8327_v10 = vld [vmem:[#allocation10 + $0x504] sm:$0xf] }
  0xee   :  { %2609 = vmatpush.bf16.msrb.mxu2 %v6685_v61  ;;  %2578 = vmatmul.bf16.vlgmr.msra.gmra.mxu3 %v9217_v59  ;;  %v6749_v61 = vor.u32 %v8403_v49, %v6746_v50  ;;  %v6730_v5 = vld [vmem:[#allocation10 + $0x750] sm:$0xf0]  ;;  %v8363_v18 = vld [vmem:[#allocation10 + $0x624] sm:$0xf]  ;;  %v5888_v49 = vld [vmem:[#allocation10 + $0xa8] sm:$0xf]  ;;  %v9253_v9 = vpop.f32.mrf.mxu0 }
  0xef   :  { %2622 = vmatpush.bf16.msrb.mxu3 %v6813_v62  ;;  %v8367_v62 = vld [vmem:[#allocation10 + $0x644] sm:$0xf]  ;;  %v6314_v7 = vld [vmem:[#allocation10 + $0x410] sm:$0xf0]  ;;  %v8190_v50 = vld [vmem:[#allocation10 + $0xb4] sm:$0xf0] }
  0xf0   :  { %2585 = vmatpush.bf16.msrb.mxu0 %v6397_v1  ;;  %2598 = vmatpush.bf16.msrb.mxu1 %v6525_v2  ;;  %v6333_v1 = vor.u32 %v8299_v53, %v6330_v55  ;;  %v6461_v2 = vor.u32 %v8331_v56, %v6458_v57  ;;  %v6442_v11 = vld [vmem:[#allocation10 + $0x510] sm:$0xf0]  ;;  %v6317_v20 = vor.u32 %v8295_v6, %v6314_v7  ;;  %v8395_v24 = vld [vmem:[#allocation10 + $0x724] sm:$0xf]  ;;  %v6016_v55 = vld [vmem:[#allocation10 + $0x1a8] sm:$0xf] }
  0xf1   :  { %v6586_v19 = vld [vmem:[#allocation10 + $0x630] sm:$0xf0]  ;;  %v6445_v23 = vor.u32 %v8327_v10, %v6442_v11  ;;  %v8359_v37 = vld [vmem:[#allocation10 + $0x604] sm:$0xf]  ;;  %v8222_v56 = vld [vmem:[#allocation10 + $0x1b4] sm:$0xf0] }
  0xf2   :  { %2610 = vmatpush.bf16.msrb.mxu2 %v6669_v12  ;;  %v5920_v12 = vld [vmem:[#allocation10 + $0xe8] sm:$0xf]  ;;  %v6714_v25 = vld [vmem:[#allocation10 + $0x730] sm:$0xf0]  ;;  %v6589_v31 = vor.u32 %v8363_v18, %v6586_v19  ;;  %v8391_v41 = vld [vmem:[#allocation10 + $0x704] sm:$0xf] }
  0xf3   :  { %2623 = vmatpush.bf16.msrb.mxu3 %v6797_v13  ;;  %v6605_v13 = vor.u32 %v8367_v62, %v6602_v63  ;;  %v6717_v36 = vor.u32 %v8395_v24, %v6714_v25  ;;  %v6570_v40 = vld [vmem:[#allocation10 + $0x610] sm:$0xf0]  ;;  %v8258_v60 = vld [vmem:[#allocation10 + $0x2d4] sm:$0xf0]  ;;  %v6288_v62 = vld [vmem:[#allocation10 + $0x3c8] sm:$0xf] }
  0xf4   :  { %2586 = vmatpush.bf16.msrb.mxu0 %v6381_v16  ;;  %2599 = vmatpush.bf16.msrb.mxu1 %v6509_v17  ;;  %v8230_v16 = vld [vmem:[#allocation10 + $0x1f4] sm:$0xf0]  ;;  %v6733_v17 = vor.u32 %v8399_v0, %v6730_v5  ;;  %v6698_v42 = vld [vmem:[#allocation10 + $0x710] sm:$0xf0]  ;;  %v6017_v0 = vor.u32 %v8222_v56, %v6016_v55  ;;  %v6000_v6 = vld [vmem:[#allocation10 + $0x188] sm:$0xf] }
  0xf5   :  { %v6701_v53 = vor.u32 %v8391_v41, %v6698_v42  ;;  %v8290_v63 = vld [vmem:[#allocation10 + $0x3d4] sm:$0xf0]  ;;  %v6144_v11 = vld [vmem:[#allocation10 + $0x2a8] sm:$0xf]  ;;  %v9259_v25 = vpop.f32.mrf.mxu2 }
  0xf6   :  { %2611 = vmatpush.bf16.msrb.mxu2 %v6653_v27  ;;  %v5921_v27 = vor.u32 %v8198_v14, %v5920_v12  ;;  %v8218_v7 = vld [vmem:[#allocation10 + $0x194] sm:$0xf0]  ;;  %v6289_v10 = vor.u32 %v8290_v63, %v6288_v62  ;;  %v6272_v14 = vld [vmem:[#allocation10 + $0x3a8] sm:$0xf] }
  0xf7   :  { %2624 = vmatpush.bf16.msrb.mxu3 %v6781_v29  ;;  %v6049_v29 = vor.u32 %v8230_v16, %v6048_v15  ;;  %v8254_v12 = vld [vmem:[#allocation10 + $0x2b4] sm:$0xf0]  ;;  %v9256_v16 = vpop.f32.mrf.mxu1  ;;  %v5856_v18 = vld [vmem:[#allocation10 + $0x68] sm:$0xf] }
  0xf8   :  { %2587 = vmatpush.bf16.msrb.mxu0 %v6365_v33  ;;  %2600 = vmatpush.bf16.msrb.mxu1 %v6493_v34  ;;  %v8194_v33 = vld [vmem:[#allocation10 + $0xd4] sm:$0xf0]  ;;  %v6032_v34 = vld [vmem:[#allocation10 + $0x1c8] sm:$0xf] }
  0xf9   :  { %v6033_v45 = vor.u32 %v8226_v35, %v6032_v34  ;;  %v8286_v15 = vld [vmem:[#allocation10 + $0x3b4] sm:$0xf0]  ;;  %v9261_v35 = vpop.f32.mrf.mxu3  ;;  %v5968_v42 = vld [vmem:[#allocation10 + $0x148] sm:$0xf] }
  0xfa   :  { %2612 = vmatpush.bf16.msrb.mxu2 %v6637_v43  ;;  %v6176_v43 = vld [vmem:[#allocation10 + $0x2e8] sm:$0xf]  ;;  %v8182_v19 = vld [vmem:[#allocation10 + $0x74] sm:$0xf0] }
  0xfb   :  { %2625 = vmatpush.bf16.msrb.mxu3 %v6765_v4  ;;  %v5905_v4 = vor.u32 %v8194_v33, %v5904_v30  ;;  %v6177_v54 = vor.u32 %v8262_v44, %v6176_v43  ;;  %v8214_v24 = vld [vmem:[#allocation10 + $0x174] sm:$0xf0]  ;;  %v6256_v33 = vld [vmem:[#allocation10 + $0x388] sm:$0xf]  ;;  %v774_v44 = vpop.f32.mrf.mxu0 }
  0xfc   :  { %2588 = vmatpush.bf16.msrb.mxu0 %v6349_v47  ;;  %2601 = vmatpush.bf16.msrb.mxu1 %v6477_v48  ;;  %v8294_v47 = vld [vmem:[#allocation10 + $0x3f4] sm:$0xf0]  ;;  %v6573_v48 = vor.u32 %v8359_v37, %v6570_v40  ;;  %v5840_v37 = vld [vmem:[#allocation10 + $0x48] sm:$0xf] }
  0xfd   :  { %v6305_v57 = vor.u32 %v8294_v47, %v6304_v46  ;;  %v8250_v30 = vld [vmem:[#allocation10 + $0x294] sm:$0xf0]  ;;  %v6096_v62 = vld [vmem:[#allocation10 + $0x248] sm:$0xf] }
  0xfe   :  { %2613 = vmatpush.bf16.msrb.mxu2 %v6621_v58  ;;  %v6160_v58 = vld [vmem:[#allocation10 + $0x2c8] sm:$0xf]  ;;  %v8282_v34 = vld [vmem:[#allocation10 + $0x394] sm:$0xf0] }
  0xff   :  { %2626 = vmatpush.bf16.msrb.mxu3 %v6749_v61  ;;  %v5889_v61 = vor.u32 %v8190_v50, %v5888_v49  ;;  %v6161_v5 = vor.u32 %v8258_v60, %v6160_v58  ;;  %v8178_v40 = vld [vmem:[#allocation10 + $0x54] sm:$0xf0]  ;;  %v787_v50 = vpop.f32.mrf.mxu1  ;;  %v800_v60 = vpop.f32.mrf.mxu2 }
 0x100   :  { %2589 = vmatpush.bf16.msrb.mxu0 %v6333_v1  ;;  %2602 = vmatpush.bf16.msrb.mxu1 %v6461_v2  ;;  %v5872_v1 = vld [vmem:[#allocation10 + $0x88] sm:$0xf]  ;;  %v8186_v2 = vld [vmem:[#allocation10 + $0x94] sm:$0xf0]  ;;  %v5841_v47 = vor.u32 %v8178_v40, %v5840_v37 }
 0x101   :  { %v8210_v43 = vld [vmem:[#allocation10 + $0x154] sm:$0xf0]  ;;  %v6544_v40 = vld [vmem:[#allocation10 + $0x5c8] sm:$0xf] }
 0x102   :  { %2614 = vmatpush.bf16.msrb.mxu2 %v6605_v13  ;;  %v5873_v13 = vor.u32 %v8186_v2, %v5872_v1  ;;  %v8246_v46 = vld [vmem:[#allocation10 + $0x274] sm:$0xf0]  ;;  %v6224_v1 = vld [vmem:[#allocation10 + $0x348] sm:$0xf] }
 0x103   :  { %2627 = vmatpush.bf16.msrb.mxu3 %v6733_v17  ;;  %v6001_v17 = vor.u32 %v8218_v7, %v6000_v6  ;;  %v8278_v49 = vld [vmem:[#allocation10 + $0x374] sm:$0xf0]  ;;  %v813_v6 = vpop.f32.mrf.mxu3  ;;  %v6528_v60 = vld [vmem:[#allocation10 + $0x5a8] sm:$0xf] }
 0x104   :  { %2590 = vmatpush.bf16.msrb.mxu0 %v6317_v20  ;;  %2603 = vmatpush.bf16.msrb.mxu1 %v6445_v23  ;;  %v6145_v20 = vor.u32 %v8254_v12, %v6144_v11  ;;  %v5984_v23 = vld [vmem:[#allocation10 + $0x168] sm:$0xf]  ;;  %v8174_v55 = vld [vmem:[#allocation10 + $0x34] sm:$0xf0] }
 0x105   :  { %v8206_v58 = vld [vmem:[#allocation10 + $0x134] sm:$0xf0]  ;;  %v5936_v11 = vld [vmem:[#allocation10 + $0x108] sm:$0xf] }
 0x106   :  { %2615 = vmatpush.bf16.msrb.mxu2 %v6589_v31  ;;  %v5857_v31 = vor.u32 %v8182_v19, %v5856_v18  ;;  %v8242_v63 = vld [vmem:[#allocation10 + $0x254] sm:$0xf0] }
 0x107   :  { %2628 = vmatpush.bf16.msrb.mxu3 %v6717_v36  ;;  %2591 = vmatmul.bf16.vlgmr.msrb.gmra.mxu0 %v9225_v32  ;;  %v5985_v36 = vor.u32 %v8214_v24, %v5984_v23  ;;  %v8274_v2 = vld [vmem:[#allocation10 + $0x354] sm:$0xf0] }
 0x108   :  { %2635 = vmatpush.bf16.msra.mxu0 %v5921_v27  ;;  %2648 = vmatpush.bf16.msra.mxu1 %v6049_v29  ;;  %v6273_v27 = vor.u32 %v8286_v15, %v6272_v14  ;;  %v6128_v29 = vld [vmem:[#allocation10 + $0x288] sm:$0xf]  ;;  %v8202_v12 = vld [vmem:[#allocation10 + $0x114] sm:$0xf0]  ;;  %v6225_v18 = vor.u32 %v8274_v2, %v6224_v1 }
 0x109   :  { %2604 = vmatmul.bf16.vlgmr.msrb.gmra.mxu1 %v9227_v39  ;;  %v6129_v41 = vor.u32 %v8250_v30, %v6128_v29  ;;  %v6432_v14 = vld [vmem:[#allocation10 + $0x4e8] sm:$0xf]  ;;  %v8326_v15 = vld [vmem:[#allocation10 + $0x4f4] sm:$0xf0]  ;;  %v5937_v30 = vor.u32 %v8202_v12, %v5936_v11 }
 0x10a   :  { %2616 = vmatpush.bf16.msrb.mxu2 %v6573_v48  ;;  %v6240_v48 = vld [vmem:[#allocation10 + $0x368] sm:$0xf]  ;;  %v8358_v19 = vld [vmem:[#allocation10 + $0x5f4] sm:$0xf0] }
 0x10b   :  { %2629 = vmatpush.bf16.msrb.mxu3 %v6701_v53  ;;  %v5969_v53 = vor.u32 %v8210_v43, %v5968_v42  ;;  %v8238_v23 = vld [vmem:[#allocation10 + $0x234] sm:$0xf0]  ;;  %v6064_v43 = vld [vmem:[#allocation10 + $0x208] sm:$0xf] }
 0x10c   :  { %2636 = vmatpush.bf16.msra.mxu0 %v5905_v4  ;;  %2649 = vmatpush.bf16.msra.mxu1 %v6033_v45  ;;  %v6257_v4 = vor.u32 %v8282_v34, %v6256_v33  ;;  %v6112_v45 = vld [vmem:[#allocation10 + $0x268] sm:$0xf]  ;;  %v8270_v29 = vld [vmem:[#allocation10 + $0x334] sm:$0xf0] }
 0x10d   :  { %2617 = vmatmul.bf16.vlgmr.msrb.gmra.mxu2 %v9233_v3  ;;  %v6113_v56 = vor.u32 %v8246_v46, %v6112_v45  ;;  %v6416_v33 = vld [vmem:[#allocation10 + $0x4c8] sm:$0xf]  ;;  %v8322_v37 = vld [vmem:[#allocation10 + $0x4d4] sm:$0xf0] }
 0x10e   :  { %2661 = vmatpush.bf16.msra.mxu2 %v6177_v54  ;;  %2630 = vmatmul.bf16.vlgmr.msrb.gmra.mxu3 %v9235_v52  ;;  %v5824_v54 = vld [vmem:[#allocation10 + $0x28] sm:$0xf]  ;;  %v8234_v44 = vld [vmem:[#allocation10 + $0x214] sm:$0xf0] }
 0x10f   :  { %2674 = vmatpush.bf16.msra.mxu3 %v6305_v57  ;;  %v5952_v57 = vld [vmem:[#allocation10 + $0x128] sm:$0xf]  ;;  %v8266_v45 = vld [vmem:[#allocation10 + $0x314] sm:$0xf0] }
 0x110   :  { %2637 = vmatpush.bf16.msra.mxu0 %v5889_v61  ;;  %2650 = vmatpush.bf16.msra.mxu1 %v6017_v0  ;;  %v6241_v61 = vor.u32 %v8278_v49, %v6240_v48  ;;  %v5825_v0 = vor.u32 %v8174_v55, %v5824_v54  ;;  %v5953_v7 = vor.u32 %v8206_v58, %v5952_v57  ;;  %v6688_v46 = vld [vmem:[#allocation10 + $0x6e8] sm:$0xf]  ;;  %v8422_v50 = vld [vmem:[#allocation10 + $0x7f4] sm:$0xf0] }
 0x111   :  { %v6417_v48 = vor.u32 %v8322_v37, %v6416_v33  ;;  %v6816_v49 = vld [vmem:[#allocation10 + $0x7e8] sm:$0xf]  ;;  %v6065_v54 = vor.u32 %v8234_v44, %v6064_v43  ;;  %v8306_v44 = vld [vmem:[#allocation10 + $0x454] sm:$0xf0] }
 0x112   :  { %2662 = vmatpush.bf16.msra.mxu2 %v6161_v5  ;;  %v5808_v5 = vld [vmem:[#allocation10 + $0x8] sm:$0xf] }
 0x113   :  { %2675 = vmatpush.bf16.msra.mxu3 %v6289_v10  ;;  %v8170_v10 = vld [vmem:[#allocation10 + $0x14] sm:$0xf0]  ;;  %v6400_v55 = vld [vmem:[#allocation10 + $0x4a8] sm:$0xf] }
 0x114   :  { %2638 = vmatpush.bf16.msra.mxu0 %v5873_v13  ;;  %2651 = vmatpush.bf16.msra.mxu1 %v6001_v17  ;;  %v6097_v13 = vor.u32 %v8242_v63, %v6096_v62  ;;  %v6560_v17 = vld [vmem:[#allocation10 + $0x5e8] sm:$0xf]  ;;  %v5809_v24 = vor.u32 %v8170_v10, %v5808_v5  ;;  %v6817_v62 = vor.u32 %v8422_v50, %v6816_v49  ;;  %v8418_v5 = vld [vmem:[#allocation10 + $0x7d4] sm:$0xf0] }
 0x115   :  { %v6561_v34 = vor.u32 %v8358_v19, %v6560_v17  ;;  %v6672_v63 = vld [vmem:[#allocation10 + $0x6c8] sm:$0xf]  ;;  %v8314_v10 = vld [vmem:[#allocation10 + $0x494] sm:$0xf0] }
 0x116   :  { %2663 = vmatpush.bf16.msra.mxu2 %v6145_v20  ;;  %v6080_v20 = vld [vmem:[#allocation10 + $0x228] sm:$0xf]  ;;  %v8382_v17 = vld [vmem:[#allocation10 + $0x6b4] sm:$0xf0] }
 0x117   :  { %2676 = vmatpush.bf16.msra.mxu3 %v6273_v27  ;;  %v6208_v27 = vld [vmem:[#allocation10 + $0x328] sm:$0xf]  ;;  %v8374_v49 = vld [vmem:[#allocation10 + $0x674] sm:$0xf0] }
 0x118   :  { %2639 = vmatpush.bf16.msra.mxu0 %v5857_v31  ;;  %2652 = vmatpush.bf16.msra.mxu1 %v5985_v36  ;;  %v6433_v31 = vor.u32 %v8326_v15, %v6432_v14  ;;  %v6081_v36 = vor.u32 %v8238_v23, %v6080_v20  ;;  %v6209_v42 = vor.u32 %v8270_v29, %v6208_v27  ;;  %v6800_v2 = vld [vmem:[#allocation10 + $0x7c8] sm:$0xf]  ;;  %v8414_v20 = vld [vmem:[#allocation10 + $0x7b4] sm:$0xf0] }
 0x119   :  { %v6512_v12 = vld [vmem:[#allocation10 + $0x588] sm:$0xf]  ;;  %v6801_v14 = vor.u32 %v8418_v5, %v6800_v2  ;;  %v8310_v27 = vld [vmem:[#allocation10 + $0x474] sm:$0xf0] }
 0x11a   :  { %2664 = vmatpush.bf16.msra.mxu2 %v6129_v41  ;;  %v8354_v41 = vld [vmem:[#allocation10 + $0x5d4] sm:$0xf0]  ;;  %v6656_v15 = vld [vmem:[#allocation10 + $0x6a8] sm:$0xf] }
 0x11b   :  { %2677 = vmatpush.bf16.msra.mxu3 %v6257_v4  ;;  %v6192_v4 = vld [vmem:[#allocation10 + $0x308] sm:$0xf]  ;;  %v6657_v29 = vor.u32 %v8382_v17, %v6656_v15  ;;  %v8402_v5 = vld [vmem:[#allocation10 + $0x754] sm:$0xf0]  ;;  %v5922_v15 = vld [vmem:[#allocation10 + $0xf8] sm:$0xf0] }
 0x11c   :  { %2640 = vmatpush.bf16.msra.mxu0 %v5841_v47  ;;  %2653 = vmatpush.bf16.msra.mxu1 %v5969_v53  ;;  %v8390_v47 = vld [vmem:[#allocation10 + $0x6f4] sm:$0xf0]  ;;  %v6545_v53 = vor.u32 %v8354_v41, %v6544_v40  ;;  %v6193_v57 = vor.u32 %v8266_v45, %v6192_v4  ;;  %v6784_v19 = vld [vmem:[#allocation10 + $0x7a8] sm:$0xf]  ;;  %v8228_v17 = vld [vmem:[#allocation10 + $0x1ec] sm:$0xf] }
 0x11d   :  { %v6689_v58 = vor.u32 %v8390_v47, %v6688_v46  ;;  %v6785_v33 = vor.u32 %v8414_v20, %v6784_v19  ;;  %v6768_v40 = vld [vmem:[#allocation10 + $0x788] sm:$0xf]  ;;  %v8410_v41 = vld [vmem:[#allocation10 + $0x794] sm:$0xf0]  ;;  %v6050_v19 = vld [vmem:[#allocation10 + $0x1f8] sm:$0xf0] }
 0x11e   :  { %2665 = vmatpush.bf16.msra.mxu2 %v6113_v56  ;;  %v8318_v56 = vld [vmem:[#allocation10 + $0x4b4] sm:$0xf0]  ;;  %v6352_v43 = vld [vmem:[#allocation10 + $0x448] sm:$0xf]  ;;  %v6769_v47 = vor.u32 %v8410_v41, %v6768_v40  ;;  %v8224_v40 = vld [vmem:[#allocation10 + $0x1cc] sm:$0xf] }
 0x11f   :  { %2678 = vmatpush.bf16.msra.mxu3 %v6241_v61  ;;  %v8350_v61 = vld [vmem:[#allocation10 + $0x5b4] sm:$0xf0]  ;;  %v6401_v1 = vor.u32 %v8318_v56, %v6400_v55  ;;  %v6480_v45 = vld [vmem:[#allocation10 + $0x548] sm:$0xf]  ;;  %v6353_v50 = vor.u32 %v8306_v44, %v6352_v43  ;;  %v6034_v41 = vld [vmem:[#allocation10 + $0x1d8] sm:$0xf0] }
 0x120   :  { %2641 = vmatpush.bf16.msra.mxu0 %v5825_v0  ;;  %2654 = vmatpush.bf16.msra.mxu1 %v5953_v7  ;;  %v8386_v0 = vld [vmem:[#allocation10 + $0x6d4] sm:$0xf0]  ;;  %v6529_v6 = vor.u32 %v8350_v61, %v6528_v60  ;;  %v6384_v7 = vld [vmem:[#allocation10 + $0x488] sm:$0xf] }
 0x121   :  { %v6673_v11 = vor.u32 %v8386_v0, %v6672_v63  ;;  %v8338_v46 = vld [vmem:[#allocation10 + $0x554] sm:$0xf0]  ;;  %v6336_v56 = vld [vmem:[#allocation10 + $0x428] sm:$0xf] }
 0x122   :  { %2666 = vmatpush.bf16.msra.mxu2 %v6097_v13  ;;  %v8346_v13 = vld [vmem:[#allocation10 + $0x594] sm:$0xf0]  ;;  %v6481_v55 = vor.u32 %v8338_v46, %v6480_v45  ;;  %v6464_v60 = vld [vmem:[#allocation10 + $0x528] sm:$0xf]  ;;  %v8260_v46 = vld [vmem:[#allocation10 + $0x2ec] sm:$0xf] }
 0x123   :  { %2679 = vmatpush.bf16.msra.mxu3 %v6225_v18  ;;  %v6385_v18 = vor.u32 %v8314_v10, %v6384_v7  ;;  %v6513_v23 = vor.u32 %v8346_v13, %v6512_v12  ;;  %v8334_v61 = vld [vmem:[#allocation10 + $0x534] sm:$0xf0]  ;;  %v6608_v63 = vld [vmem:[#allocation10 + $0x648] sm:$0xf] }
 0x124   :  { %2642 = vmatpush.bf16.msra.mxu0 %v5809_v24  ;;  %2655 = vmatpush.bf16.msra.mxu1 %v5937_v30  ;;  %v6368_v24 = vld [vmem:[#allocation10 + $0x468] sm:$0xf]  ;;  %v8370_v0 = vld [vmem:[#allocation10 + $0x654] sm:$0xf0]  ;;  %v6465_v7 = vor.u32 %v8334_v61, %v6464_v60  ;;  %v8220_v61 = vld [vmem:[#allocation10 + $0x1ac] sm:$0xf] }
 0x125   :  { %v6496_v30 = vld [vmem:[#allocation10 + $0x568] sm:$0xf]  ;;  %v6369_v37 = vor.u32 %v8310_v27, %v6368_v24  ;;  %v8298_v10 = vld [vmem:[#allocation10 + $0x414] sm:$0xf0]  ;;  %v6609_v13 = vor.u32 %v8370_v0, %v6608_v63  ;;  %v8256_v0 = vld [vmem:[#allocation10 + $0x2cc] sm:$0xf] }
 0x126   :  { %2667 = vmatpush.bf16.msra.mxu2 %v6081_v36  ;;  %v8378_v36 = vld [vmem:[#allocation10 + $0x694] sm:$0xf0]  ;;  %v6736_v2 = vld [vmem:[#allocation10 + $0x748] sm:$0xf] }
 0x127   :  { %2680 = vmatpush.bf16.msra.mxu3 %v6209_v42  ;;  %2643 = vmatmul.bf16.vlgmr.msra.gmra.mxu0 %v9205_v21  ;;  %v8330_v12 = vld [vmem:[#allocation10 + $0x514] sm:$0xf0]  ;;  %v6592_v20 = vld [vmem:[#allocation10 + $0x628] sm:$0xf] }
 0x128   :  { %2687 = vmatpush.bf16.msrb.mxu0 %v6433_v31  ;;  %2700 = vmatpush.bf16.msrb.mxu1 %v6561_v34  ;;  %v8342_v31 = vld [vmem:[#allocation10 + $0x574] sm:$0xf0]  ;;  %v6640_v34 = vld [vmem:[#allocation10 + $0x688] sm:$0xf] }
 0x129   :  { %2656 = vmatmul.bf16.vlgmr.msra.gmra.mxu1 %v9207_v26  ;;  %v6497_v42 = vor.u32 %v8342_v31, %v6496_v30  ;;  %v6641_v4 = vor.u32 %v8378_v36, %v6640_v34  ;;  %v6720_v27 = vld [vmem:[#allocation10 + $0x728] sm:$0xf]  ;;  %v6053_v34 = vor.u32 %v8228_v17, %v6050_v19  ;;  %v8362_v44 = vld [vmem:[#allocation10 + $0x614] sm:$0xf0]  ;;  %v8252_v19 = vld [vmem:[#allocation10 + $0x2ac] sm:$0xf] }
 0x12a   :  { %2668 = vmatpush.bf16.msra.mxu2 %v6065_v54  ;;  %v8406_v54 = vld [vmem:[#allocation10 + $0x774] sm:$0xf0]  ;;  %v6576_v43 = vld [vmem:[#allocation10 + $0x608] sm:$0xf] }
 0x12b   :  { %2681 = vmatpush.bf16.msra.mxu3 %v6193_v57  ;;  %v8302_v57 = vld [vmem:[#allocation10 + $0x434] sm:$0xf0] }
 0x12c   :  { %2688 = vmatpush.bf16.msrb.mxu0 %v6417_v48  ;;  %2701 = vmatpush.bf16.msrb.mxu1 %v6545_v53  ;;  %v6624_v48 = vld [vmem:[#allocation10 + $0x668] sm:$0xf]  ;;  %v8394_v45 = vld [vmem:[#allocation10 + $0x714] sm:$0xf0] }
 0x12d   :  { %2669 = vmatmul.bf16.vlgmr.msra.gmra.mxu2 %v9215_v51  ;;  %v6752_v53 = vld [vmem:[#allocation10 + $0x768] sm:$0xf] }
 0x12e   :  { %2713 = vmatpush.bf16.msrb.mxu2 %v6689_v58  ;;  %2682 = vmatmul.bf16.vlgmr.msra.gmra.mxu3 %v9217_v59  ;;  %v6625_v58 = vor.u32 %v8374_v49, %v6624_v48  ;;  %v8292_v49 = vld [vmem:[#allocation10 + $0x3ec] sm:$0xf] }
 0x12f   :  { %2726 = vmatpush.bf16.msrb.mxu3 %v6817_v62  ;;  %v6753_v62 = vor.u32 %v8406_v54, %v6752_v53  ;;  %v6037_v53 = vor.u32 %v8224_v40, %v6034_v41  ;;  %v6577_v54 = vor.u32 %v8362_v44, %v6576_v43  ;;  %v8212_v40 = vld [vmem:[#allocation10 + $0x16c] sm:$0xf]  ;;  %v5986_v41 = vld [vmem:[#allocation10 + $0x178] sm:$0xf0] }
 0x130   :  { %2689 = vmatpush.bf16.msrb.mxu0 %v6401_v1  ;;  %2702 = vmatpush.bf16.msrb.mxu1 %v6529_v6  ;;  %v6337_v1 = vor.u32 %v8302_v57, %v6336_v56  ;;  %v6320_v6 = vld [vmem:[#allocation10 + $0x408] sm:$0xf]  ;;  %v5890_v56 = vld [vmem:[#allocation10 + $0xb8] sm:$0xf0]  ;;  %v9270_v57 = vld [vmem:[%s9479_s5] sm:$0xf] }
 0x131   :  { %v6321_v24 = vor.u32 %v8298_v10, %v6320_v6  ;;  %v8288_v6 = vld [vmem:[#allocation10 + $0x3cc] sm:$0xf]  ;;  %v6130_v44 = vld [vmem:[#allocation10 + $0x298] sm:$0xf0] }
 0x132   :  { %2714 = vmatpush.bf16.msrb.mxu2 %v6673_v11  ;;  %v6448_v11 = vld [vmem:[#allocation10 + $0x508] sm:$0xf]  ;;  %v8248_v43 = vld [vmem:[#allocation10 + $0x28c] sm:$0xf] }
 0x133   :  { %2727 = vmatpush.bf16.msrb.mxu3 %v6801_v14  ;;  %v8196_v14 = vld [vmem:[#allocation10 + $0xec] sm:$0xf]  ;;  %v6449_v30 = vor.u32 %v8330_v12, %v6448_v11  ;;  %v5874_v12 = vld [vmem:[#allocation10 + $0x98] sm:$0xf0] }
 0x134   :  { %2690 = vmatpush.bf16.msrb.mxu0 %v6385_v18  ;;  %2703 = vmatpush.bf16.msrb.mxu1 %v6513_v23  ;;  %v6737_v18 = vor.u32 %v8402_v5, %v6736_v2  ;;  %v8366_v23 = vld [vmem:[#allocation10 + $0x634] sm:$0xf0]  ;;  %v5925_v31 = vor.u32 %v8196_v14, %v5922_v15  ;;  %v1139_v5 = vperm.slane %v9270_v57, 0  ;;  %v8184_v11 = vld [vmem:[#allocation10 + $0x8c] sm:$0xf] }
 0x135   :  { %v6593_v36 = vor.u32 %v8366_v23, %v6592_v20  ;;  %v8216_v14 = vld [vmem:[#allocation10 + $0x18c] sm:$0xf]  ;;  %v6002_v15 = vld [vmem:[#allocation10 + $0x198] sm:$0xf0] }
 0x136   :  { %2715 = vmatpush.bf16.msrb.mxu2 %v6657_v29  ;;  %v8398_v29 = vld [vmem:[#allocation10 + $0x734] sm:$0xf0]  ;;  %v6146_v20 = vld [vmem:[#allocation10 + $0x2b8] sm:$0xf0] }
 0x137   :  { %2728 = vmatpush.bf16.msrb.mxu3 %v6785_v33  ;;  %v8192_v33 = vld [vmem:[#allocation10 + $0xcc] sm:$0xf] }
 0x138   :  { %2691 = vmatpush.bf16.msrb.mxu0 %v6369_v37  ;;  %2704 = vmatpush.bf16.msrb.mxu1 %v6497_v42  ;;  %v5906_v37 = vld [vmem:[#allocation10 + $0xd8] sm:$0xf0]  ;;  %v6721_v42 = vor.u32 %v8398_v29, %v6720_v27  ;;  %v5877_v27 = vor.u32 %v8184_v11, %v5874_v12  ;;  %v8284_v29 = vld [vmem:[#allocation10 + $0x3ac] sm:$0xf] }
 0x139   :  { %v5909_v48 = vor.u32 %v8192_v33, %v5906_v37  ;;  %v8180_v33 = vld [vmem:[#allocation10 + $0x6c] sm:$0xf]  ;;  %v6149_v37 = vor.u32 %v8252_v19, %v6146_v20 }
 0x13a   :  { %2716 = vmatpush.bf16.msrb.mxu2 %v6641_v4  ;;  %v6704_v4 = vld [vmem:[#allocation10 + $0x708] sm:$0xf]  ;;  %v8240_v12 = vld [vmem:[#allocation10 + $0x24c] sm:$0xf] }
 0x13b   :  { %2729 = vmatpush.bf16.msrb.mxu3 %v6769_v47  ;;  %v6178_v47 = vld [vmem:[#allocation10 + $0x2f8] sm:$0xf0]  ;;  %v8168_v19 = vld [vmem:[#allocation10 + $0xc] sm:$0xf] }
 0x13c   :  { %2692 = vmatpush.bf16.msrb.mxu0 %v6353_v50  ;;  %2705 = vmatpush.bf16.msrb.mxu1 %v6481_v55  ;;  %v6306_v50 = vld [vmem:[#allocation10 + $0x3f8] sm:$0xf0]  ;;  %v8188_v55 = vld [vmem:[#allocation10 + $0xac] sm:$0xf]  ;;  %v6181_v60 = vor.u32 %v8260_v46, %v6178_v47  ;;  %v5989_v47 = vor.u32 %v8212_v40, %v5986_v41 }
 0x13d   :  { %v6309_v63 = vor.u32 %v8292_v49, %v6306_v50  ;;  %v5893_v2 = vor.u32 %v8188_v55, %v5890_v56  ;;  %v6258_v46 = vld [vmem:[#allocation10 + $0x398] sm:$0xf0]  ;;  %v6133_v50 = vor.u32 %v8248_v43, %v6130_v44  ;;  %v8236_v44 = vld [vmem:[#allocation10 + $0x22c] sm:$0xf] }
 0x13e   :  { %2717 = vmatpush.bf16.msrb.mxu2 %v6625_v58  ;;  %v6705_v58 = vor.u32 %v8394_v45, %v6704_v4  ;;  %v8280_v45 = vld [vmem:[#allocation10 + $0x38c] sm:$0xf]  ;;  %v5842_v49 = vld [vmem:[#allocation10 + $0x58] sm:$0xf0] }
 0x13f   :  { %2730 = vmatpush.bf16.msrb.mxu3 %v6753_v62  ;;  %v6018_v62 = vld [vmem:[#allocation10 + $0x1b8] sm:$0xf0]  ;;  %v6261_v56 = vor.u32 %v8280_v45, %v6258_v46  ;;  %v8268_v46 = vld [vmem:[#allocation10 + $0x32c] sm:$0xf] }
 0x140   :  { %2693 = vmatpush.bf16.msrb.mxu0 %v6337_v1  ;;  %2706 = vmatpush.bf16.msrb.mxu1 %v6465_v7  ;;  %v6162_v1 = vld [vmem:[#allocation10 + $0x2d8] sm:$0xf0]  ;;  %v6021_v10 = vor.u32 %v8220_v61, %v6018_v62 }
 0x141   :  { %v6290_v7 = vld [vmem:[#allocation10 + $0x3d8] sm:$0xf0] }
 0x142   :  { %2718 = vmatpush.bf16.msrb.mxu2 %v6609_v13  ;;  %v6165_v13 = vor.u32 %v8256_v0, %v6162_v1  ;;  %v2436_v17 = vpop.f32.mrf.mxu0  ;;  %v6242_v0 = vld [vmem:[#allocation10 + $0x378] sm:$0xf0] }
 0x143   :  { %2731 = vmatpush.bf16.msrb.mxu3 %v6737_v18  ;;  %v6293_v18 = vor.u32 %v8288_v6, %v6290_v7  ;;  %v2437_v23 = vadd.f32 %v2436_v17, %v1139_v5  ;;  %v5826_v5 = vld [vmem:[#allocation10 + $0x38] sm:$0xf0]  ;;  %v8204_v7 = vld [vmem:[#allocation10 + $0x12c] sm:$0xf] }
 0x144   :  { %2694 = vmatpush.bf16.msrb.mxu0 %v6321_v24  ;;  %2707 = vmatpush.bf16.msrb.mxu1 %v6449_v30  ;;  %v2449_v24 = vpop.f32.mrf.mxu1  ;;  %v6274_v30 = vld [vmem:[#allocation10 + $0x3b8] sm:$0xf0]  ;;  %v8272_v17 = vld [vmem:[#allocation10 + $0x34c] sm:$0xf] }
 0x145   :  { %v6562_v43 = vld [vmem:[#allocation10 + $0x5f8] sm:$0xf0] }
 0x146   :  { %2719 = vmatpush.bf16.msrb.mxu2 %v6593_v36  ;;  %v2450_v36 = vadd.f32 %v2449_v24, %v2437_v23 }
 0x147   :  { %2732 = vmatpush.bf16.msrb.mxu3 %v6721_v42  ;;  %2695 = vmatmul.bf16.vlgmr.msrb.gmra.mxu0 %v9225_v32  ;;  %v6277_v42 = vor.u32 %v8284_v29, %v6274_v30  ;;  %v8200_v29 = vld [vmem:[#allocation10 + $0x10c] sm:$0xf]  ;;  %v5938_v30 = vld [vmem:[#allocation10 + $0x118] sm:$0xf0] }
 0x148   :  { %2739 = vmatpush.bf16.msra.mxu0 %v5925_v31  ;;  %2752 = vmatpush.bf16.msra.mxu1 %v6053_v34  ;;  %v6005_v31 = vor.u32 %v8216_v14, %v6002_v15  ;;  %v5858_v34 = vld [vmem:[#allocation10 + $0x78] sm:$0xf0] }
 0x149   :  { %2708 = vmatmul.bf16.vlgmr.msrb.gmra.mxu1 %v9227_v39  ;;  %v5861_v4 = vor.u32 %v8180_v33, %v5858_v34  ;;  %v8324_v33 = vld [vmem:[#allocation10 + $0x4ec] sm:$0xf]  ;;  %v6434_v34 = vld [vmem:[#allocation10 + $0x4f8] sm:$0xf0] }
 0x14a   :  { %2720 = vmatpush.bf16.msrb.mxu2 %v6577_v54  ;;  %v5970_v54 = vld [vmem:[#allocation10 + $0x158] sm:$0xf0]  ;;  %v2438_v55 = vpop.f32.mrf.mxu0 }
 0x14b   :  { %2733 = vmatpush.bf16.msrb.mxu3 %v6705_v58  ;;  %v8244_v58 = vld [vmem:[#allocation10 + $0x26c] sm:$0xf] }
 0x14c   :  { %2740 = vmatpush.bf16.msra.mxu0 %v5909_v48  ;;  %2753 = vmatpush.bf16.msra.mxu1 %v6037_v53  ;;  %v8176_v48 = vld [vmem:[#allocation10 + $0x4c] sm:$0xf]  ;;  %v2451_v61 = vpop.f32.mrf.mxu1 }
 0x14d   :  { %2721 = vmatmul.bf16.vlgmr.msrb.gmra.mxu2 %v9233_v3  ;;  %v8208_v53 = vld [vmem:[#allocation10 + $0x14c] sm:$0xf]  ;;  %v5845_v62 = vor.u32 %v8176_v48, %v5842_v49  ;;  %v5941_v49 = vor.u32 %v8200_v29, %v5938_v30 }
 0x14e   :  { %2765 = vmatpush.bf16.msra.mxu2 %v6181_v60  ;;  %2734 = vmatmul.bf16.vlgmr.msrb.gmra.mxu3 %v9235_v52  ;;  %v6114_v60 = vld [vmem:[#allocation10 + $0x278] sm:$0xf0]  ;;  %v5973_v1 = vor.u32 %v8208_v53, %v5970_v54  ;;  %v8320_v53 = vld [vmem:[#allocation10 + $0x4cc] sm:$0xf] }
 0x14f   :  { %2778 = vmatpush.bf16.msra.mxu3 %v6309_v63  ;;  %v8276_v63 = vld [vmem:[#allocation10 + $0x36c] sm:$0xf]  ;;  %v6117_v6 = vor.u32 %v8244_v58, %v6114_v60  ;;  %v6546_v60 = vld [vmem:[#allocation10 + $0x5d8] sm:$0xf0] }
 0x150   :  { %2741 = vmatpush.bf16.msra.mxu0 %v5893_v2  ;;  %2754 = vmatpush.bf16.msra.mxu1 %v6021_v10  ;;  %v8172_v2 = vld [vmem:[#allocation10 + $0x2c] sm:$0xf]  ;;  %v5954_v10 = vld [vmem:[#allocation10 + $0x138] sm:$0xf0]  ;;  %v6245_v11 = vor.u32 %v8276_v63, %v6242_v0  ;;  %v2462_v14 = vpop.f32.mrf.mxu2  ;;  %v2475_v23 = vpop.f32.mrf.mxu3 }
 0x151   :  { %v5829_v15 = vor.u32 %v8172_v2, %v5826_v5  ;;  %v2463_v20 = vadd.f32 %v2462_v14, %v2450_v36  ;;  %v5957_v24 = vor.u32 %v8204_v7, %v5954_v10  ;;  %v8352_v58 = vld [vmem:[#allocation10 + $0x5cc] sm:$0xf]  ;;  %v6066_v0 = vld [vmem:[#allocation10 + $0x218] sm:$0xf0] }
 0x152   :  { %2766 = vmatpush.bf16.msra.mxu2 %v6165_v13  ;;  %v6098_v13 = vld [vmem:[#allocation10 + $0x258] sm:$0xf0]  ;;  %v8232_v63 = vld [vmem:[#allocation10 + $0x20c] sm:$0xf]  ;;  %v6549_v14 = vor.u32 %v8352_v58, %v6546_v60 }
 0x153   :  { %2779 = vmatpush.bf16.msra.mxu3 %v6293_v18  ;;  %v6226_v18 = vld [vmem:[#allocation10 + $0x358] sm:$0xf0]  ;;  %v2476_v40 = vadd.f32 %v2475_v23, %v2463_v20  ;;  %v2488_v41 = vpop.f32.mrf.mxu0 }
 0x154   :  { %2742 = vmatpush.bf16.msra.mxu0 %v5877_v27  ;;  %2755 = vmatpush.bf16.msra.mxu1 %v6005_v31  ;;  %v5810_v27 = vld [vmem:[#allocation10 + $0x18] sm:$0xf0]  ;;  %v6101_v31 = vor.u32 %v8240_v12, %v6098_v13  ;;  %v2501_v45 = vpop.f32.mrf.mxu1  ;;  %v8420_v12 = vld [vmem:[#allocation10 + $0x7ec] sm:$0xf] }
 0x155   :  { %v5813_v36 = vor.u32 %v8168_v19, %v5810_v27  ;;  %v2489_v48 = vadd.f32 %v2488_v41, %v2476_v40  ;;  %v6194_v5 = vld [vmem:[#allocation10 + $0x318] sm:$0xf0] }
 0x156   :  { %2767 = vmatpush.bf16.msra.mxu2 %v6149_v37  ;;  %v8356_v37 = vld [vmem:[#allocation10 + $0x5ec] sm:$0xf]  ;;  %v6690_v7 = vld [vmem:[#allocation10 + $0x6f8] sm:$0xf0] }
 0x157   :  { %2780 = vmatpush.bf16.msra.mxu3 %v6277_v42  ;;  %v6229_v42 = vor.u32 %v8272_v17, %v6226_v18  ;;  %v6565_v54 = vor.u32 %v8356_v37, %v6562_v43  ;;  %v2502_v61 = vadd.f32 %v2501_v45, %v2489_v48  ;;  %v6818_v13 = vld [vmem:[#allocation10 + $0x7f8] sm:$0xf0]  ;;  %v8316_v17 = vld [vmem:[#allocation10 + $0x4ac] sm:$0xf] }
 0x158   :  { %2743 = vmatpush.bf16.msra.mxu0 %v5861_v4  ;;  %2756 = vmatpush.bf16.msra.mxu1 %v5989_v47  ;;  %v6082_v4 = vld [vmem:[#allocation10 + $0x238] sm:$0xf0]  ;;  %v2464_v2 = vpop.f32.mrf.mxu2  ;;  %v2477_v10 = vpop.f32.mrf.mxu3  ;;  %v6821_v30 = vor.u32 %v8420_v12, %v6818_v13  ;;  %v8416_v37 = vld [vmem:[#allocation10 + $0x7cc] sm:$0xf] }
 0x159   :  { %v6210_v47 = vld [vmem:[#allocation10 + $0x338] sm:$0xf0]  ;;  %v6085_v55 = vor.u32 %v8236_v44, %v6082_v4  ;;  %v8344_v44 = vld [vmem:[#allocation10 + $0x58c] sm:$0xf] }
 0x15a   :  { %2768 = vmatpush.bf16.msra.mxu2 %v6133_v50  ;;  %v6437_v50 = vor.u32 %v8324_v33, %v6434_v34  ;;  %v6402_v18 = vld [vmem:[#allocation10 + $0x4b8] sm:$0xf0]  ;;  %v8304_v12 = vld [vmem:[#allocation10 + $0x44c] sm:$0xf] }
 0x15b   :  { %2781 = vmatpush.bf16.msra.mxu3 %v6261_v56  ;;  %v6418_v56 = vld [vmem:[#allocation10 + $0x4d8] sm:$0xf0]  ;;  %v2490_v19 = vpop.f32.mrf.mxu0  ;;  %v6405_v34 = vor.u32 %v8316_v17, %v6402_v18  ;;  %v8336_v17 = vld [vmem:[#allocation10 + $0x54c] sm:$0xf] }
 0x15c   :  { %2744 = vmatpush.bf16.msra.mxu0 %v5845_v62  ;;  %2757 = vmatpush.bf16.msra.mxu1 %v5973_v1  ;;  %v6213_v62 = vor.u32 %v8268_v46, %v6210_v47  ;;  %v8264_v1 = vld [vmem:[#allocation10 + $0x30c] sm:$0xf]  ;;  %v6530_v27 = vld [vmem:[#allocation10 + $0x5b8] sm:$0xf0]  ;;  %v2503_v29 = vpop.f32.mrf.mxu1 }
 0x15d   :  { %v6197_v20 = vor.u32 %v8264_v1, %v6194_v5  ;;  %v6674_v33 = vld [vmem:[#allocation10 + $0x6d8] sm:$0xf0]  ;;  %v8376_v1 = vld [vmem:[#allocation10 + $0x68c] sm:$0xf] }
 0x15e   :  { %2769 = vmatpush.bf16.msra.mxu2 %v6117_v6  ;;  %v8388_v6 = vld [vmem:[#allocation10 + $0x6ec] sm:$0xf]  ;;  %v6802_v40 = vld [vmem:[#allocation10 + $0x7d8] sm:$0xf0] }
 0x15f   :  { %2782 = vmatpush.bf16.msra.mxu3 %v6245_v11  ;;  %v6421_v11 = vor.u32 %v8320_v53, %v6418_v56  ;;  %v6693_v23 = vor.u32 %v8388_v6, %v6690_v7  ;;  %v6514_v4 = vld [vmem:[#allocation10 + $0x598] sm:$0xf0]  ;;  %v6805_v45 = vor.u32 %v8416_v37, %v6802_v40  ;;  %v8412_v53 = vld [vmem:[#allocation10 + $0x7ac] sm:$0xf] }
 0x160   :  { %2745 = vmatpush.bf16.msra.mxu0 %v5829_v15  ;;  %2758 = vmatpush.bf16.msra.mxu1 %v5957_v24  ;;  %v6069_v15 = vor.u32 %v8232_v63, %v6066_v0  ;;  %v8348_v24 = vld [vmem:[#allocation10 + $0x5ac] sm:$0xf]  ;;  %v6658_v46 = vld [vmem:[#allocation10 + $0x6b8] sm:$0xf0]  ;;  %v2527_v48 = vpop.f32.mrf.mxu3 }
 0x161   :  { %v6533_v41 = vor.u32 %v8348_v24, %v6530_v27  ;;  %v8308_v56 = vld [vmem:[#allocation10 + $0x46c] sm:$0xf]  ;;  %v6370_v58 = vld [vmem:[#allocation10 + $0x478] sm:$0xf0] }
 0x162   :  { %2770 = vmatpush.bf16.msra.mxu2 %v6101_v31  ;;  %v8384_v31 = vld [vmem:[#allocation10 + $0x6cc] sm:$0xf]  ;;  %v6498_v63 = vld [vmem:[#allocation10 + $0x578] sm:$0xf0]  ;;  %v6373_v7 = vor.u32 %v8308_v56, %v6370_v58  ;;  %v8453_v56 = vld [vmem:[#allocation12 + $0xec] sm:$0xf0] }
 0x163   :  { %2783 = vmatpush.bf16.msra.mxu3 %v6229_v42  ;;  %v8312_v42 = vld [vmem:[#allocation10 + $0x48c] sm:$0xf]  ;;  %v6677_v43 = vor.u32 %v8384_v31, %v6674_v33  ;;  %v6642_v2 = vld [vmem:[#allocation10 + $0x698] sm:$0xf0]  ;;  %v7064_v58 = vld [vmem:[#allocation12 + $0x1e0] sm:$0xf] }
 0x164   :  { %2746 = vmatpush.bf16.msra.mxu0 %v5813_v36  ;;  %2759 = vmatpush.bf16.msra.mxu1 %v5941_v49  ;;  %v8380_v36 = vld [vmem:[#allocation10 + $0x6ac] sm:$0xf]  ;;  %v1140_v49 = vperm.slane %v9270_v57, 1  ;;  %v6770_v10 = vld [vmem:[#allocation10 + $0x798] sm:$0xf0] }
 0x165   :  { %v6354_v13 = vld [vmem:[#allocation10 + $0x458] sm:$0xf0] }
 0x166   :  { %2771 = vmatpush.bf16.msra.mxu2 %v6085_v55  ;;  %v6517_v55 = vor.u32 %v8344_v44, %v6514_v4  ;;  %v2553_v6 = vpop.f32.mrf.mxu1  ;;  %v6482_v18 = vld [vmem:[#allocation10 + $0x558] sm:$0xf0]  ;;  %v6357_v29 = vor.u32 %v8304_v12, %v6354_v13  ;;  %v8368_v44 = vld [vmem:[#allocation10 + $0x64c] sm:$0xf] }
 0x167   :  { %2784 = vmatpush.bf16.msra.mxu3 %v6213_v62  ;;  %2747 = vmatmul.bf16.vlgmr.msra.gmra.mxu0 %v9205_v21  ;;  %v6386_v21 = vld [vmem:[#allocation10 + $0x498] sm:$0xf0]  ;;  %v6661_v62 = vor.u32 %v8380_v36, %v6658_v46  ;;  %v6485_v33 = vor.u32 %v8336_v17, %v6482_v18  ;;  %v8400_v36 = vld [vmem:[#allocation10 + $0x74c] sm:$0xf]  ;;  %v7048_v17 = vld [vmem:[#allocation12 + $0x1c0] sm:$0xf] }
 0x168   :  { %2791 = vmatpush.bf16.msrb.mxu0 %v6437_v50  ;;  %2804 = vmatpush.bf16.msrb.mxu1 %v6565_v54  ;;  %v6389_v50 = vor.u32 %v8312_v42, %v6386_v21  ;;  %v6786_v54 = vld [vmem:[#allocation10 + $0x7b8] sm:$0xf0]  ;;  %v2529_v27 = vpop.f32.mrf.mxu3  ;;  %v8481_v18 = vld [vmem:[#allocation12 + $0x1cc] sm:$0xf0] }
 0x169   :  { %2760 = vmatmul.bf16.vlgmr.msra.gmra.mxu1 %v9207_v26  ;;  %v2514_v26 = vpop.f32.mrf.mxu2  ;;  %v6789_v0 = vor.u32 %v8412_v53, %v6786_v54  ;;  %v6626_v24 = vld [vmem:[#allocation10 + $0x678] sm:$0xf0]  ;;  %v8392_v27 = vld [vmem:[#allocation10 + $0x70c] sm:$0xf] }
 0x16a   :  { %2772 = vmatpush.bf16.msra.mxu2 %v6069_v15  ;;  %v2515_v47 = vadd.f32 %v2514_v26, %v2502_v61  ;;  %v8340_v61 = vld [vmem:[#allocation10 + $0x56c] sm:$0xf]  ;;  %v6645_v15 = vor.u32 %v8376_v1, %v6642_v2  ;;  %v6754_v31 = vld [vmem:[#allocation10 + $0x778] sm:$0xf0] }
 0x16b   :  { %2785 = vmatpush.bf16.msra.mxu3 %v6197_v20  ;;  %v6338_v37 = vld [vmem:[#allocation10 + $0x438] sm:$0xf0] }
 0x16c   :  { %2792 = vmatpush.bf16.msrb.mxu0 %v6421_v11  ;;  %2805 = vmatpush.bf16.msrb.mxu1 %v6549_v14  ;;  %v9282_v60 = vadd.f32 %v2527_v48, %v2515_v47  ;;  %v6501_v11 = vor.u32 %v8340_v61, %v6498_v63  ;;  %v6466_v42 = vld [vmem:[#allocation10 + $0x538] sm:$0xf0]  ;;  %v8296_v47 = vld [vmem:[#allocation10 + $0x40c] sm:$0xf]  ;;  %v8485_v61 = vld [vmem:[#allocation12 + $0x1ec] sm:$0xf0] }
 0x16d   :  { %2773 = vmatmul.bf16.vlgmr.msra.gmra.mxu2 %v9215_v51  ;;  %v2540_v51 = vpop.f32.mrf.mxu0  ;;  %v6610_v4 = vld [vmem:[#allocation10 + $0x658] sm:$0xf0]  ;;  %v8364_v63 = vld [vmem:[#allocation10 + $0x62c] sm:$0xf]  ;;  %v7065_v12 = vor.u32 %v8485_v61, %v7064_v58  ;;  %v8473_v58 = vld [vmem:[#allocation12 + $0x18c] sm:$0xf0] }
 0x16e   :  { %2817 = vmatpush.bf16.msrb.mxu2 %v6693_v23  ;;  %2786 = vmatmul.bf16.vlgmr.msra.gmra.mxu3 %v9217_v59  ;;  %v2541_v5 = vadd.f32 %v2540_v51, %v1140_v49  ;;  %v8408_v59 = vld [vmem:[#allocation10 + $0x78c] sm:$0xf]  ;;  %v2555_v26 = vpop.f32.mrf.mxu1  ;;  %v6738_v46 = vld [vmem:[#allocation10 + $0x758] sm:$0xf0]  ;;  %v6613_v54 = vor.u32 %v8368_v44, %v6610_v4  ;;  %v7032_v44 = vld [vmem:[#allocation12 + $0x1a0] sm:$0xf] }
 0x16f   :  { %2830 = vmatpush.bf16.msrb.mxu3 %v6821_v30  ;;  %v6773_v20 = vor.u32 %v8408_v59, %v6770_v10  ;;  %v8372_v23 = vld [vmem:[#allocation10 + $0x66c] sm:$0xf]  ;;  %v6322_v49 = vld [vmem:[#allocation10 + $0x418] sm:$0xf0]  ;;  %v8477_v4 = vld [vmem:[#allocation12 + $0x1ac] sm:$0xf0] }
 0x170   :  { %2793 = vmatpush.bf16.msrb.mxu0 %v6405_v34  ;;  %2806 = vmatpush.bf16.msrb.mxu1 %v6533_v41  ;;  %v2554_v14 = vadd.f32 %v2553_v6, %v2541_v5  ;;  %v8404_v30 = vld [vmem:[#allocation10 + $0x76c] sm:$0xf]  ;;  %v6629_v40 = vor.u32 %v8372_v23, %v6626_v24  ;;  %v6450_v53 = vld [vmem:[#allocation10 + $0x518] sm:$0xf0]  ;;  %v6325_v2 = vor.u32 %v8296_v47, %v6322_v49  ;;  %v8513_v47 = vld [vmem:[#allocation12 + $0x2cc] sm:$0xf0] }
 0x171   :  { %v2516_v19 = vpop.f32.mrf.mxu2  ;;  %v8300_v34 = vld [vmem:[#allocation10 + $0x42c] sm:$0xf]  ;;  %v6594_v51 = vld [vmem:[#allocation10 + $0x638] sm:$0xf0]  ;;  %v2579_v1 = vpop.f32.mrf.mxu3  ;;  %v7304_v49 = vld [vmem:[#allocation12 + $0x3c0] sm:$0xf] }
 0x172   :  { %2818 = vmatpush.bf16.msrb.mxu2 %v6677_v43  ;;  %v8332_v41 = vld [vmem:[#allocation10 + $0x52c] sm:$0xf]  ;;  %v6757_v43 = vor.u32 %v8404_v30, %v6754_v31  ;;  %v6722_v6 = vld [vmem:[#allocation10 + $0x738] sm:$0xf0]  ;;  %v6597_v13 = vor.u32 %v8364_v63, %v6594_v51  ;;  %v8517_v30 = vld [vmem:[#allocation12 + $0x2ec] sm:$0xf0] }
 0x173   :  { %2831 = vmatpush.bf16.msrb.mxu3 %v6805_v45  ;;  %v6341_v45 = vor.u32 %v8300_v34, %v6338_v37  ;;  %v6469_v48 = vor.u32 %v8332_v41, %v6466_v42  ;;  %v8396_v5 = vld [vmem:[#allocation10 + $0x72c] sm:$0xf]  ;;  %v6578_v24 = vld [vmem:[#allocation10 + $0x618] sm:$0xf0]  ;;  %v8549_v34 = vld [vmem:[#allocation12 + $0x3ec] sm:$0xf0]  ;;  %v7049_v37 = vor.u32 %v8481_v18, %v7048_v17 }
 0x174   :  { %2794 = vmatpush.bf16.msrb.mxu0 %v6389_v50  ;;  %2807 = vmatpush.bf16.msrb.mxu1 %v6517_v55  ;;  %v8328_v50 = vld [vmem:[#allocation10 + $0x50c] sm:$0xf]  ;;  %v6936_v55 = vld [vmem:[#allocation12 + $0xe0] sm:$0xf]  ;;  %v8445_v42 = vld [vmem:[#allocation12 + $0xac] sm:$0xf0] }
 0x175   :  { %v2542_v21 = vpop.f32.mrf.mxu0  ;;  %v6453_v59 = vor.u32 %v8328_v50, %v6450_v53  ;;  %v6937_v10 = vor.u32 %v8453_v56, %v6936_v55  ;;  %v8360_v23 = vld [vmem:[#allocation10 + $0x60c] sm:$0xf]  ;;  %v6904_v41 = vld [vmem:[#allocation12 + $0xa0] sm:$0xf]  ;;  %v8545_v50 = vld [vmem:[#allocation12 + $0x3cc] sm:$0xf0]  ;;  %v7033_v53 = vor.u32 %v8477_v4, %v7032_v44 }
 0x176   :  { %2819 = vmatpush.bf16.msrb.mxu2 %v6661_v62  ;;  %v6741_v62 = vor.u32 %v8400_v36, %v6738_v46  ;;  %v7176_v46 = vld [vmem:[#allocation12 + $0x2c0] sm:$0xf]  ;;  %v8509_v61 = vld [vmem:[#allocation12 + $0x2ac] sm:$0xf0]  ;;  %v9288_v63 = vld [vmem:[#allocation9 + $0x8] sm:$0xff]  ;;  %vm2843_vm1 = vcmp.gt.f32.partialorder %v9282_v60, 0.0 }
 0x177   :  { %2832 = vmatpush.bf16.msrb.mxu3 %v6789_v0  ;;  %v7177_v55 = vor.u32 %v8513_v47, %v7176_v46  ;;  %v7016_v56 = vld [vmem:[#allocation12 + $0x180] sm:$0xf]  ;;  %v8461_v47 = vld [vmem:[#allocation12 + $0x12c] sm:$0xf0] }
 0x178   :  { %2795 = vmatpush.bf16.msrb.mxu0 %v6373_v7  ;;  %2808 = vmatpush.bf16.msrb.mxu1 %v6501_v11  ;;  %v6920_v11 = vld [vmem:[#allocation12 + $0xc0] sm:$0xf] }
 0x179   :  { %v2566_v0 = vpop.f32.mrf.mxu2  ;;  %v6840_v4 = vld [vmem:[#allocation12 + $0x20] sm:$0xf] }
 0x17a   :  { %2820 = vmatpush.bf16.msrb.mxu2 %v6645_v15  ;;  %v2567_v7 = vadd.f32 %v2566_v0, %v2554_v14  ;;  %v8449_v15 = vld [vmem:[#allocation12 + $0xcc] sm:$0xf0]  ;;  %v7192_v14 = vld [vmem:[#allocation12 + $0x2e0] sm:$0xf] }
 0x17b   :  { %2833 = vmatpush.bf16.msrb.mxu3 %v6773_v20  ;;  %v6725_v20 = vor.u32 %v8396_v5, %v6722_v6  ;;  %v6921_v31 = vor.u32 %v8449_v15, %v6920_v11  ;;  %v7288_v0 = vld [vmem:[#allocation12 + $0x3a0] sm:$0xf]  ;;  %v8437_v6 = vld [vmem:[#allocation12 + $0x6c] sm:$0xf0]  ;;  %v259_v11 = vperm.slane %v9288_v63, 0 }
 0x17c   :  { %2796 = vmatpush.bf16.msrb.mxu0 %v6357_v29  ;;  %2809 = vmatpush.bf16.msrb.mxu1 %v6485_v33  ;;  %v9284_v19 = vadd.f32 %v2579_v1, %v2567_v7  ;;  %v6706_v29 = vld [vmem:[#allocation10 + $0x718] sm:$0xf0]  ;;  %v7320_v33 = vld [vmem:[#allocation12 + $0x3e0] sm:$0xf]  ;;  %v8541_v1 = vld [vmem:[#allocation12 + $0x3ac] sm:$0xf0] }
 0x17d   :  { %v6709_v21 = vor.u32 %v8392_v27, %v6706_v29  ;;  %v7321_v36 = vor.u32 %v8549_v34, %v7320_v33  ;;  %v6872_v5 = vld [vmem:[#allocation12 + $0x60] sm:$0xf]  ;;  %v8505_v15 = vld [vmem:[#allocation12 + $0x28c] sm:$0xf0]  ;;  %v9297_v34 = vadd.f32 %v9241_v8, %v259_v11 }
 0x17e   :  { %2821 = vmatpush.bf16.msrb.mxu2 %v6629_v40  ;;  %v6581_v40 = vor.u32 %v8360_v23, %v6578_v24  ;;  %v6873_v18 = vor.u32 %v8437_v6, %v6872_v5  ;;  %v8537_v23 = vld [vmem:[#allocation12 + $0x38c] sm:$0xf0]  ;;  %v6856_v27 = vld [vmem:[#allocation12 + $0x40] sm:$0xf] }
 0x17f   :  { %2834 = vmatpush.bf16.msrb.mxu3 %v6757_v43  ;;  %v7193_v43 = vor.u32 %v8517_v30, %v7192_v14  ;;  %v8433_v29 = vld [vmem:[#allocation12 + $0x4c] sm:$0xf0]  ;;  %v6968_v46 = vld [vmem:[#allocation12 + $0x120] sm:$0xf]  ;;  %vm848_vm9 = vcmp.gt.f32.partialorder %v9297_v34, 0.0 }
 0x180   :  { %2797 = vmatpush.bf16.msrb.mxu0 %v6341_v45  ;;  %2810 = vmatpush.bf16.msrb.mxu1 %v6469_v48  ;;  %v2581_v45 = vpop.f32.mrf.mxu3  ;;  %v6905_v48 = vor.u32 %v8445_v42, %v6904_v41  ;;  %v8465_v33 = vld [vmem:[#allocation12 + $0x14c] sm:$0xf0]  ;;  %v6857_v42 = vor.u32 %v8433_v29, %v6856_v27  ;;  %v7448_v5 = vld [vmem:[#allocation12 + $0x4e0] sm:$0xf] }
 0x181   :  { %v2568_v26 = vpop.f32.mrf.mxu2  ;;  %v8501_v41 = vld [vmem:[#allocation12 + $0x26c] sm:$0xf0]  ;;  %v9301_v45 = vstv %s9292_s21 }
 0x182   :  { %2822 = vmatpush.bf16.msrb.mxu2 %v6613_v54  ;;  %v6888_v54 = vld [vmem:[#allocation12 + $0x80] sm:$0xf]  ;;  %v8429_v26 = vld [vmem:[#allocation12 + $0x2c] sm:$0xf0] }
 0x183   :  { %2835 = vmatpush.bf16.msrb.mxu3 %v6741_v62  ;;  %v7160_v62 = vld [vmem:[#allocation12 + $0x2a0] sm:$0xf]  ;;  %v8581_v6 = vld [vmem:[#allocation12 + $0x4ec] sm:$0xf0] }
 0x184   :  { %2798 = vmatpush.bf16.msrb.mxu0 %v6325_v2  ;;  %2811 = vmatpush.bf16.msrb.mxu1 %v6453_v59  ;;  %v7017_v2 = vor.u32 %v8473_v58, %v7016_v56  ;;  %v7161_v7 = vor.u32 %v8509_v61, %v7160_v62  ;;  %v7000_v59 = vld [vmem:[#allocation12 + $0x160] sm:$0xf]  ;;  %v6841_v56 = vor.u32 %v8429_v26, %v6840_v4  ;;  %v8521_v4 = vld [vmem:[#allocation12 + $0x30c] sm:$0xf0] }
 0x185   :  { %v7240_v58 = vld [vmem:[#allocation12 + $0x340] sm:$0xf]  ;;  %v6969_v61 = vor.u32 %v8461_v47, %v6968_v46  ;;  %v7449_v29 = vor.u32 %v8581_v6, %v7448_v5  ;;  %v8645_v26 = vld [vmem:[#allocation12 + $0x6ec] sm:$0xf0] }
 0x186   :  { %2823 = vmatpush.bf16.msrb.mxu2 %v6597_v13  ;;  %v7144_v13 = vld [vmem:[#allocation12 + $0x280] sm:$0xf] }
 0x187   :  { %2836 = vmatpush.bf16.msrb.mxu3 %v6725_v20  ;;  %2799 = vmatmul.bf16.vlgmr.msrb.gmra.mxu0 %v9225_v32  ;;  %v8441_v32 = vld [vmem:[#allocation12 + $0x8c] sm:$0xf0]  ;;  %v7272_v20 = vld [vmem:[#allocation12 + $0x380] sm:$0xf]  ;;  %v7145_v30 = vor.u32 %v8505_v15, %v7144_v13 }
 0x188   :  { %4406 = vmatpush.bf16.msra.mxu0 %v6937_v10  ;;  %4419 = vmatpush.bf16.msra.mxu1 %v7065_v12  ;;  %v6889_v51 = vor.u32 %v8441_v32, %v6888_v54  ;;  %v8469_v10 = vld [vmem:[#allocation12 + $0x16c] sm:$0xf0]  ;;  %v7289_v12 = vor.u32 %v8541_v1, %v7288_v0  ;;  %v7112_v54 = vld [vmem:[#allocation12 + $0x240] sm:$0xf] }
 0x189   :  { %2812 = vmatmul.bf16.vlgmr.msrb.gmra.mxu1 %v9227_v39  ;;  %v7305_v39 = vor.u32 %v8545_v50, %v7304_v49  ;;  %v7001_v24 = vor.u32 %v8469_v10, %v7000_v59  ;;  %v262_v49 = vperm.slane %v9288_v63, 3  ;;  %v8497_v32 = vld [vmem:[#allocation12 + $0x24c] sm:$0xf0]  ;;  %v6824_v62 = vld [vmem:[#allocation12] sm:$0xf] }
 0x18a   :  { %2824 = vmatpush.bf16.msrb.mxu2 %v6581_v40  ;;  %v7128_v40 = vld [vmem:[#allocation12 + $0x260] sm:$0xf]  ;;  %v8457_v1 = vld [vmem:[#allocation12 + $0x10c] sm:$0xf0] }
 0x18b   :  { %2837 = vmatpush.bf16.msrb.mxu3 %v6709_v21  ;;  %v7256_v21 = vld [vmem:[#allocation12 + $0x360] sm:$0xf]  ;;  %v7129_v8 = vor.u32 %v8501_v41, %v7128_v40  ;;  %v8493_v13 = vld [vmem:[#allocation12 + $0x22c] sm:$0xf0] }
 0x18c   :  { %4407 = vmatpush.bf16.msra.mxu0 %v6921_v31  ;;  %4420 = vmatpush.bf16.msra.mxu1 %v7049_v37  ;;  %v6984_v31 = vld [vmem:[#allocation12 + $0x140] sm:$0xf]  ;;  %v7273_v37 = vor.u32 %v8537_v23, %v7272_v20  ;;  %v8525_v23 = vld [vmem:[#allocation12 + $0x32c] sm:$0xf0] }
 0x18d   :  { %2825 = vmatmul.bf16.vlgmr.msrb.gmra.mxu2 %v9233_v3  ;;  %v2592_v3 = vpop.f32.mrf.mxu0  ;;  %v6985_v44 = vor.u32 %v8465_v33, %v6984_v31  ;;  %v6952_v0 = vld [vmem:[#allocation12 + $0x100] sm:$0xf]  ;;  %v8609_v40 = vld [vmem:[#allocation12 + $0x5cc] sm:$0xf0] }
 0x18e   :  { %4432 = vmatpush.bf16.msra.mxu2 %v7193_v43  ;;  %2838 = vmatmul.bf16.vlgmr.msrb.gmra.mxu3 %v9235_v52  ;;  %v2593_v17 = vadd.f32 %v2592_v3, %v9284_v19  ;;  %v2605_v52 = vpop.f32.mrf.mxu1  ;;  %v260_v19 = vperm.slane %v9288_v63, 1  ;;  %v8533_v43 = vld [vmem:[#allocation12 + $0x36c] sm:$0xf0]  ;;  %v7224_v20 = vld [vmem:[#allocation12 + $0x320] sm:$0xf]  ;;  %v6953_v27 = vor.u32 %v8457_v1, %v6952_v0 }
 0x18f   :  { %4445 = vmatpush.bf16.msra.mxu3 %v7321_v36  ;;  %v261_v36 = vperm.slane %v9288_v63, 2  ;;  %v8613_v3 = vld [vmem:[#allocation12 + $0x5ec] sm:$0xf0]  ;;  %v7832_v47 = vld [vmem:[#allocation12 + $0x7e0] sm:$0xf] }
 0x190   :  { %4408 = vmatpush.bf16.msra.mxu0 %v6905_v48  ;;  %4421 = vmatpush.bf16.msra.mxu1 %v7033_v53  ;;  %v2606_v14 = vadd.f32 %v2605_v52, %v2593_v17  ;;  %v734_v48 = vadd.f32 %v9243_v22, %v260_v19  ;;  %v7257_v53 = vor.u32 %v8533_v43, %v7256_v21  ;;  %v2618_v10 = vpop.f32.mrf.mxu2  ;;  %v8577_v19 = vld [vmem:[#allocation12 + $0x4cc] sm:$0xf0]  ;;  %v7208_v43 = vld [vmem:[#allocation12 + $0x300] sm:$0xf] }
 0x191   :  { %v857_v22 = vmul.f32 %v9301_v45, %v9297_v34  ;;  %v747_v15 = vadd.f32 %v9247_v28, %v261_v36  ;;  %v2631_v52 = vpop.f32.mrf.mxu3  ;;  %v8489_v21 = vld [vmem:[#allocation12 + $0x20c] sm:$0xf0]  ;;  %v7688_v1 = vld [vmem:[#allocation12 + $0x6c0] sm:$0xf] }
 0x192   :  { %4433 = vmatpush.bf16.msra.mxu2 %v7177_v55  ;;  %v858_v59 = vmul.f32 %v9301_v45, %v734_v48  ;;  %vm849_vm10 = vcmp.gt.f32.partialorder %v734_v48, 0.0  ;;  %v2619_v17 = vadd.f32 %v2618_v10, %v2606_v14  ;;  %v7816_v6 = vld [vmem:[#allocation12 + $0x7c0] sm:$0xf] }
 0x193   :  { %4446 = vmatpush.bf16.msra.mxu3 %v7305_v39  ;;  %v8529_v39 = vld [vmem:[#allocation12 + $0x34c] sm:$0xf0]  ;;  %v865_v31 = vsel %vm848_vm9, %v9297_v34, %v857_v22  ;;  %v7704_v34 = vld [vmem:[#allocation12 + $0x6e0] sm:$0xf]  ;;  %vm850_vm11 = vcmp.gt.f32.partialorder %v747_v15, 0.0 }
 0x194   :  { %4409 = vmatpush.bf16.msra.mxu0 %v6889_v51  ;;  %4422 = vmatpush.bf16.msra.mxu1 %v7017_v2  ;;  %v8425_v51 = vld [vmem:[#allocation12 + $0xc] sm:$0xf0]  ;;  %v7113_v2 = vor.u32 %v8497_v32, %v7112_v54  ;;  %v7241_v11 = vor.u32 %v8529_v39, %v7240_v58  ;;  %v9315_v33 = vadd.f32 %v2631_v52, %v2619_v17  ;;  %v7416_v54 = vld [vmem:[#allocation12 + $0x4a0] sm:$0xf] }
 0x195   :  { %v2594_v50 = vpop.f32.mrf.mxu0  ;;  %v866_v41 = vsel %vm849_vm10, %v734_v48, %v858_v59  ;;  %v9319_v36 = vpack.c.bf16 %v865_v31, %v865_v31  ;;  %v8677_v48 = vld [vmem:[#allocation12 + $0x7ec] sm:$0xf0]  ;;  %v7705_v58 = vor.u32 %v8645_v26, %v7704_v34  ;;  %v7544_v39 = vld [vmem:[#allocation12 + $0x5a0] sm:$0xf] }
 0x196   :  { %4434 = vmatpush.bf16.msra.mxu2 %v7161_v7  ;;  %v2607_v55 = vpop.f32.mrf.mxu1  ;;  %v7576_v7 = vld [vmem:[#allocation12 + $0x5e0] sm:$0xf]  ;;  %v8573_v32 = vld [vmem:[#allocation12 + $0x4ac] sm:$0xf0]  ;;  %v7833_v0 = vor.u32 %v8677_v48, %v7832_v47  ;;  %vm2844_vm2 = vcmp.gt.f32.partialorder %v9315_v33, 0.0 }
 0x197   :  { %4447 = vmatpush.bf16.msra.mxu3 %v7289_v12  ;;  %v7096_v12 = vld [vmem:[#allocation12 + $0x220] sm:$0xf]  ;;  %v7577_v28 = vor.u32 %v8613_v3, %v7576_v7  ;;  %v8641_v22 = vld [vmem:[#allocation12 + $0x6cc] sm:$0xf0]  ;;  %v7417_v5 = vor.u32 %v8573_v32, %v7416_v54  ;;  %v264_v32 = vperm.slane %v9288_v63, 5 }
 0x198   :  { %4410 = vmatpush.bf16.msra.mxu0 %v6873_v18  ;;  %4423 = vmatpush.bf16.msra.mxu1 %v7001_v24  ;;  %v6825_v18 = vor.u32 %v8425_v51, %v6824_v62  ;;  %v760_v24 = vadd.f32 %v9249_v38, %v262_v49  ;;  %v7097_v14 = vor.u32 %v8493_v13, %v7096_v12  ;;  %v2620_v55 = vpop.f32.mrf.mxu2  ;;  %v8605_v62 = vld [vmem:[#allocation12 + $0x5ac] sm:$0xf0]  ;;  %v7400_v10 = vld [vmem:[#allocation12 + $0x480] sm:$0xf] }
 0x199   :  { %v7225_v38 = vor.u32 %v8525_v23, %v7224_v20  ;;  %v9322_v49 = vpack.c.bf16 %v866_v41, %v866_v41  ;;  %v2633_v51 = vpop.f32.mrf.mxu3  ;;  %v8673_v7 = vld [vmem:[#allocation12 + $0x7cc] sm:$0xf0]  ;;  %v7545_v59 = vor.u32 %v8605_v62, %v7544_v39  ;;  %v7689_v12 = vor.u32 %v8641_v22, %v7688_v1  ;;  %v7528_v13 = vld [vmem:[#allocation12 + $0x580] sm:$0xf] }
 0x19a   :  { %4435 = vmatpush.bf16.msra.mxu2 %v7145_v30  ;;  %v7432_v30 = vld [vmem:[#allocation12 + $0x4c0] sm:$0xf]  ;;  %vm851_vm12 = vcmp.gt.f32.partialorder %v760_v24, 0.0  ;;  %v7817_v52 = vor.u32 %v8673_v7, %v7816_v6  ;;  %v8637_v20 = vld [vmem:[#allocation12 + $0x6ac] sm:$0xf0]  ;;  %v1141_v23 = vperm.slane %v9270_v57, 2 }
 0x19b   :  { %4448 = vmatpush.bf16.msra.mxu3 %v7273_v37  ;;  %v7560_v37 = vld [vmem:[#allocation12 + $0x5c0] sm:$0xf]  ;;  %v7433_v46 = vor.u32 %v8577_v19, %v7432_v30  ;;  %v8633_v57 = vld [vmem:[#allocation12 + $0x68c] sm:$0xf0]  ;;  %v265_v6 = vperm.slane %v9288_v63, 6  ;;  %v266_v7 = vperm.slane %v9288_v63, 7 }
 0x19c   :  { %4411 = vmatpush.bf16.msra.mxu0 %v6857_v42  ;;  %4424 = vmatpush.bf16.msra.mxu1 %v6985_v44  ;;  %v7080_v42 = vld [vmem:[#allocation12 + $0x200] sm:$0xf]  ;;  %v859_v44 = vmul.f32 %v9301_v45, %v747_v15  ;;  %v7561_v50 = vor.u32 %v8609_v40, %v7560_v37  ;;  %v8597_v40 = vld [vmem:[#allocation12 + $0x56c] sm:$0xf0] }
 0x19d   :  { %v7384_v31 = vld [vmem:[#allocation12 + $0x460] sm:$0xf]  ;;  %v8665_v34 = vld [vmem:[#allocation12 + $0x78c] sm:$0xf0] }
 0x19e   :  { %4436 = vmatpush.bf16.msra.mxu2 %v7129_v8  ;;  %v860_v8 = vmul.f32 %v9301_v45, %v760_v24  ;;  %v7512_v37 = vld [vmem:[#allocation12 + $0x560] sm:$0xf]  ;;  %v8593_v54 = vld [vmem:[#allocation12 + $0x54c] sm:$0xf0] }
 0x19f   :  { %4449 = vmatpush.bf16.msra.mxu3 %v7257_v53  ;;  %v7081_v53 = vor.u32 %v8489_v21, %v7080_v42  ;;  %v7656_v42 = vld [vmem:[#allocation12 + $0x680] sm:$0xf]  ;;  %v7513_v26 = vor.u32 %v8597_v40, %v7512_v37  ;;  %v7066_v40 = vld [vmem:[#allocation12 + $0x1f0] sm:$0xf0] }
 0x1a0   :  { %4412 = vmatpush.bf16.msra.mxu0 %v6841_v56  ;;  %4425 = vmatpush.bf16.msra.mxu1 %v6969_v61  ;;  %v7209_v56 = vor.u32 %v8521_v4, %v7208_v43  ;;  %v867_v61 = vsel %vm850_vm11, %v747_v15, %v859_v44  ;;  %v8601_v15 = vld [vmem:[#allocation12 + $0x58c] sm:$0xf0]  ;;  %v7784_v4 = vld [vmem:[#allocation12 + $0x780] sm:$0xf] }
 0x1a1   :  { %v9328_v3 = vpack.c.bf16 %v867_v61, %v867_v61  ;;  %v7529_v30 = vor.u32 %v8601_v15, %v7528_v13  ;;  %v7785_v55 = vor.u32 %v8665_v34, %v7784_v4  ;;  %v7768_v62 = vld [vmem:[#allocation12 + $0x760] sm:$0xf]  ;;  %v8661_v61 = vld [vmem:[#allocation12 + $0x76c] sm:$0xf0]  ;;  %v812_v34 = vadd.f32 %v9261_v35, %v266_v7 }
 0x1a2   :  { %4437 = vmatpush.bf16.msra.mxu2 %v7113_v2  ;;  %v868_v2 = vsel %vm851_vm12, %v760_v24, %v860_v8  ;;  %v7368_v8 = vld [vmem:[#allocation12 + $0x440] sm:$0xf]  ;;  %v8653_v4 = vld [vmem:[#allocation12 + $0x72c] sm:$0xf0] }
 0x1a3   :  { %4450 = vmatpush.bf16.msra.mxu3 %v7241_v11  ;;  %v8569_v11 = vld [vmem:[#allocation12 + $0x48c] sm:$0xf0]  ;;  %v9330_v17 = vpack.c.bf16 %v868_v2, %v868_v2  ;;  %v7480_v22 = vld [vmem:[#allocation12 + $0x520] sm:$0xf]  ;;  %vm855_vm0 = vcmp.gt.f32.partialorder %v812_v34, 0.0 }
 0x1a4   :  { %4413 = vmatpush.bf16.msra.mxu0 %v6825_v18  ;;  %4426 = vmatpush.bf16.msra.mxu1 %v6953_v27  ;;  %v7672_v18 = vld [vmem:[#allocation12 + $0x6a0] sm:$0xf]  ;;  %v7401_v24 = vor.u32 %v8569_v11, %v7400_v10  ;;  %v2644_v41 = vpop.f32.mrf.mxu0  ;;  %v8589_v2 = vld [vmem:[#allocation12 + $0x52c] sm:$0xf0]  ;;  %v7769_v10 = vor.u32 %v8661_v61, %v7768_v62 }
 0x1a5   :  { %v7800_v27 = vld [vmem:[#allocation12 + $0x7a0] sm:$0xf]  ;;  %v7673_v19 = vor.u32 %v8637_v20, %v7672_v18  ;;  %v2645_v21 = vadd.f32 %v2644_v41, %v1141_v23  ;;  %v8657_v18 = vld [vmem:[#allocation12 + $0x74c] sm:$0xf0]  ;;  %v7481_v23 = vor.u32 %v8589_v2, %v7480_v22  ;;  %v8547_v2 = vld [vmem:[#allocation12 + $0x3e4] sm:$0xf] }
 0x1a6   :  { %4438 = vmatpush.bf16.msra.mxu2 %v7097_v14  ;;  %v263_v14 = vperm.slane %v9288_v63, 4  ;;  %v2657_v43 = vpop.f32.mrf.mxu1  ;;  %v7624_v11 = vld [vmem:[#allocation12 + $0x640] sm:$0xf] }
 0x1a7   :  { %4451 = vmatpush.bf16.msra.mxu3 %v7225_v38  ;;  %4414 = vmatmul.bf16.vlgmr.msra.gmra.mxu0 %v9319_v36  ;;  %v2658_v48 = vadd.f32 %v2657_v43, %v2645_v21  ;;  %v7336_v20 = vld [vmem:[#allocation12 + $0x400] sm:$0xf] }
 0x1a8   :  { %4458 = vmatpush.bf16.msrb.mxu0 %v7449_v29  ;;  %4471 = vmatpush.bf16.msrb.mxu1 %v7577_v28  ;;  %v8669_v29 = vld [vmem:[#allocation12 + $0x7ac] sm:$0xf0]  ;;  %v9337_v47 = vadd.f32 %v9253_v9, %v263_v14  ;;  %v7608_v41 = vld [vmem:[#allocation12 + $0x620] sm:$0xf] }
 0x1a9   :  { %4427 = vmatmul.bf16.vlgmr.msra.gmra.mxu1 %v9322_v49  ;;  %v8565_v28 = vld [vmem:[#allocation12 + $0x46c] sm:$0xf0]  ;;  %v7801_v38 = vor.u32 %v8669_v29, %v7800_v27  ;;  %v7464_v27 = vld [vmem:[#allocation12 + $0x500] sm:$0xf] }
 0x1aa   :  { %4439 = vmatpush.bf16.msra.mxu2 %v7081_v53  ;;  %v7385_v44 = vor.u32 %v8565_v28, %v7384_v31  ;;  %v7496_v53 = vld [vmem:[#allocation12 + $0x540] sm:$0xf]  ;;  %v8557_v9 = vld [vmem:[#allocation12 + $0x42c] sm:$0xf0]  ;;  %vm852_vm13 = vcmp.gt.f32.partialorder %v9337_v47, 0.0  ;;  %v861_v29 = vmul.f32 %v9301_v45, %v9337_v47 }
 0x1ab   :  { %4452 = vmatpush.bf16.msra.mxu3 %v7209_v56  ;;  %v7640_v56 = vld [vmem:[#allocation12 + $0x660] sm:$0xf]  ;;  %v7497_v51 = vor.u32 %v8593_v54, %v7496_v53  ;;  %v6938_v31 = vld [vmem:[#allocation12 + $0xf0] sm:$0xf0]  ;;  %v8483_v28 = vld [vmem:[#allocation12 + $0x1e4] sm:$0xf] }
 0x1ac   :  { %4459 = vmatpush.bf16.msrb.mxu0 %v7433_v46  ;;  %4472 = vmatpush.bf16.msrb.mxu1 %v7561_v50  ;;  %v8561_v46 = vld [vmem:[#allocation12 + $0x44c] sm:$0xf0]  ;;  %v7657_v50 = vor.u32 %v8633_v57, %v7656_v42  ;;  %v799_v42 = vadd.f32 %v9259_v25, %v265_v6  ;;  %v7069_v25 = vor.u32 %v8483_v28, %v7066_v40  ;;  %v6922_v54 = vld [vmem:[#allocation12 + $0xd0] sm:$0xf0]  ;;  %v7720_v62 = vld [vmem:[#allocation12 + $0x700] sm:$0xf] }
 0x1ad   :  { %4440 = vmatmul.bf16.vlgmr.msra.gmra.mxu2 %v9328_v3  ;;  %v7369_v39 = vor.u32 %v8561_v46, %v7368_v8  ;;  %v8447_v46 = vld [vmem:[#allocation12 + $0xc4] sm:$0xf] }
 0x1ae   :  { %4484 = vmatpush.bf16.msrb.mxu2 %v7705_v58  ;;  %4453 = vmatmul.bf16.vlgmr.msra.gmra.mxu3 %v9330_v17  ;;  %v8629_v58 = vld [vmem:[#allocation12 + $0x66c] sm:$0xf0]  ;;  %v2659_v13 = vpop.f32.mrf.mxu1  ;;  %v863_v61 = vmul.f32 %v9301_v45, %v799_v42  ;;  %vm854_vm15 = vcmp.gt.f32.partialorder %v799_v42, 0.0  ;;  %v6925_v22 = vor.u32 %v8447_v46, %v6922_v54  ;;  %v8439_v28 = vld [vmem:[#allocation12 + $0x84] sm:$0xf] }
 0x1af   :  { %4497 = vmatpush.bf16.msrb.mxu3 %v7833_v0  ;;  %v7352_v0 = vld [vmem:[#allocation12 + $0x420] sm:$0xf]  ;;  %v7641_v1 = vor.u32 %v8629_v58, %v7640_v56  ;;  %v8471_v40 = vld [vmem:[#allocation12 + $0x184] sm:$0xf] }
 0x1b0   :  { %4460 = vmatpush.bf16.msrb.mxu0 %v7417_v5  ;;  %4473 = vmatpush.bf16.msrb.mxu1 %v7545_v59  ;;  %v786_v5 = vadd.f32 %v9256_v16, %v264_v32  ;;  %v2646_v59 = vpop.f32.mrf.mxu0  ;;  %v7353_v15 = vor.u32 %v8557_v9, %v7352_v0  ;;  %v8585_v16 = vld [vmem:[#allocation12 + $0x50c] sm:$0xf0]  ;;  %v8479_v32 = vld [vmem:[#allocation12 + $0x1c4] sm:$0xf]  ;;  %v7592_v58 = vld [vmem:[#allocation12 + $0x600] sm:$0xf] }
 0x1b1   :  { %v2683_v21 = vpop.f32.mrf.mxu3  ;;  %v7194_v0 = vld [vmem:[#allocation12 + $0x2f0] sm:$0xf0] }
 0x1b2   :  { %4485 = vmatpush.bf16.msrb.mxu2 %v7689_v12  ;;  %v8625_v12 = vld [vmem:[#allocation12 + $0x64c] sm:$0xf0]  ;;  %v862_v14 = vmul.f32 %v9301_v45, %v786_v5  ;;  %vm853_vm14 = vcmp.gt.f32.partialorder %v786_v5, 0.0 }
 0x1b3   :  { %4498 = vmatpush.bf16.msrb.mxu3 %v7817_v52  ;;  %v7752_v52 = vld [vmem:[#allocation12 + $0x740] sm:$0xf]  ;;  %v7625_v63 = vor.u32 %v8625_v12, %v7624_v11  ;;  %v6906_v11 = vld [vmem:[#allocation12 + $0xb0] sm:$0xf0] }
 0x1b4   :  { %4461 = vmatpush.bf16.msrb.mxu0 %v7401_v24  ;;  %4474 = vmatpush.bf16.msrb.mxu1 %v7529_v30  ;;  %v8553_v24 = vld [vmem:[#allocation12 + $0x40c] sm:$0xf0]  ;;  %v8451_v30 = vld [vmem:[#allocation12 + $0xe4] sm:$0xf]  ;;  %v7753_v37 = vor.u32 %v8657_v18, %v7752_v52  ;;  %v870_v56 = vsel %vm853_vm14, %v786_v5, %v862_v14  ;;  %v7322_v5 = vld [vmem:[#allocation12 + $0x3f0] sm:$0xf0]  ;;  %v871_v18 = vsel %vm854_vm15, %v799_v42, %v863_v61 }
 0x1b5   :  { %v7337_v43 = vor.u32 %v8553_v24, %v7336_v20  ;;  %v6941_v8 = vor.u32 %v8451_v30, %v6938_v31  ;;  %v9359_v6 = vpack.c.bf16 %v870_v56, %v870_v56  ;;  %v7034_v52 = vld [vmem:[#allocation12 + $0x1b0] sm:$0xf0]  ;;  %v8511_v24 = vld [vmem:[#allocation12 + $0x2c4] sm:$0xf] }
 0x1b6   :  { %4486 = vmatpush.bf16.msrb.mxu2 %v7673_v19  ;;  %v2670_v19 = vpop.f32.mrf.mxu2  ;;  %v7306_v30 = vld [vmem:[#allocation12 + $0x3d0] sm:$0xf0] }
 0x1b7   :  { %4499 = vmatpush.bf16.msrb.mxu3 %v7801_v38  ;;  %v8621_v38 = vld [vmem:[#allocation12 + $0x62c] sm:$0xf0]  ;;  %v2671_v57 = vadd.f32 %v2670_v19, %v2658_v48  ;;  %v6890_v14 = vld [vmem:[#allocation12 + $0x90] sm:$0xf0]  ;;  %v9365_v19 = vpack.c.bf16 %v871_v18, %v871_v18 }
 0x1b8   :  { %4462 = vmatpush.bf16.msrb.mxu0 %v7385_v44  ;;  %4475 = vmatpush.bf16.msrb.mxu1 %v7513_v26  ;;  %v7736_v44 = vld [vmem:[#allocation12 + $0x720] sm:$0xf]  ;;  %v7465_v26 = vor.u32 %v8585_v16, %v7464_v27  ;;  %v7609_v48 = vor.u32 %v8621_v38, %v7608_v41  ;;  %v7178_v27 = vld [vmem:[#allocation12 + $0x2d0] sm:$0xf0] }
 0x1b9   :  { %v9352_v53 = vadd.f32 %v2683_v21, %v2671_v57  ;;  %v7737_v35 = vor.u32 %v8653_v4, %v7736_v44  ;;  %v2685_v20 = vpop.f32.mrf.mxu3  ;;  %v7018_v41 = vld [vmem:[#allocation12 + $0x190] sm:$0xf0]  ;;  %v8507_v57 = vld [vmem:[#allocation12 + $0x2a4] sm:$0xf] }
 0x1ba   :  { %4487 = vmatpush.bf16.msrb.mxu2 %v7657_v50  ;;  %v869_v50 = vsel %vm852_vm13, %v9337_v47, %v861_v29  ;;  %v8515_v47 = vld [vmem:[#allocation12 + $0x2e4] sm:$0xf]  ;;  %v7162_v21 = vld [vmem:[#allocation12 + $0x2b0] sm:$0xf0] }
 0x1bb   :  { %4500 = vmatpush.bf16.msrb.mxu3 %v7785_v55  ;;  %v7050_v55 = vld [vmem:[#allocation12 + $0x1d0] sm:$0xf0]  ;;  %v9356_v9 = vpack.c.bf16 %v869_v50, %v869_v50  ;;  %v8539_v44 = vld [vmem:[#allocation12 + $0x3a4] sm:$0xf]  ;;  %v7165_v46 = vor.u32 %v8507_v57, %v7162_v21 }
 0x1bc   :  { %4463 = vmatpush.bf16.msrb.mxu0 %v7369_v39  ;;  %4476 = vmatpush.bf16.msrb.mxu1 %v7497_v51  ;;  %v8617_v39 = vld [vmem:[#allocation12 + $0x60c] sm:$0xf0]  ;;  %v7053_v7 = vor.u32 %v8479_v32, %v7050_v55  ;;  %v7290_v4 = vld [vmem:[#allocation12 + $0x3b0] sm:$0xf0]  ;;  %v8467_v50 = vld [vmem:[#allocation12 + $0x164] sm:$0xf] }
 0x1bd   :  { %v8649_v51 = vld [vmem:[#allocation12 + $0x70c] sm:$0xf0]  ;;  %v7593_v59 = vor.u32 %v8617_v39, %v7592_v58  ;;  %v7293_v54 = vor.u32 %v8539_v44, %v7290_v4  ;;  %v8503_v32 = vld [vmem:[#allocation12 + $0x284] sm:$0xf]  ;;  %v7146_v55 = vld [vmem:[#allocation12 + $0x290] sm:$0xf0] }
 0x1be   :  { %4488 = vmatpush.bf16.msrb.mxu2 %v7641_v1  ;;  %v864_v1 = vmul.f32 %v9301_v45, %v812_v34  ;;  %v2672_v12 = vpop.f32.mrf.mxu2  ;;  %v7721_v13 = vor.u32 %v8649_v51, %v7720_v62  ;;  %v7197_v45 = vor.u32 %v8515_v47, %v7194_v0  ;;  %v8535_v39 = vld [vmem:[#allocation12 + $0x384] sm:$0xf]  ;;  %v7274_v62 = vld [vmem:[#allocation12 + $0x390] sm:$0xf0] }
 0x1bf   :  { %4501 = vmatpush.bf16.msrb.mxu3 %v7769_v10  ;;  %v8443_v10 = vld [vmem:[#allocation12 + $0xa4] sm:$0xf]  ;;  %v6858_v47 = vld [vmem:[#allocation12 + $0x50] sm:$0xf0] }
 0x1c0   :  { %4464 = vmatpush.bf16.msrb.mxu0 %v7353_v15  ;;  %4477 = vmatpush.bf16.msrb.mxu1 %v7481_v23  ;;  %v8475_v15 = vld [vmem:[#allocation12 + $0x1a4] sm:$0xf]  ;;  %v7325_v23 = vor.u32 %v8547_v2, %v7322_v5  ;;  %v872_v16 = vsel %vm855_vm0, %v812_v34, %v864_v1  ;;  %v6909_v29 = vor.u32 %v8443_v10, %v6906_v11  ;;  %v6986_v2 = vld [vmem:[#allocation12 + $0x150] sm:$0xf0] }
 0x1c1   :  { %v7037_v31 = vor.u32 %v8475_v15, %v7034_v52  ;;  %v9367_v38 = vpack.c.bf16 %v872_v16, %v872_v16  ;;  %v7021_v34 = vor.u32 %v8471_v40, %v7018_v41  ;;  %v8431_v51 = vld [vmem:[#allocation12 + $0x44] sm:$0xf]  ;;  %v7149_v1 = vor.u32 %v8503_v32, %v7146_v55  ;;  %v7258_v11 = vld [vmem:[#allocation12 + $0x370] sm:$0xf0] }
 0x1c2   :  { %4489 = vmatpush.bf16.msrb.mxu2 %v7625_v63  ;;  %v8543_v63 = vld [vmem:[#allocation12 + $0x3c4] sm:$0xf]  ;;  %v7277_v5 = vor.u32 %v8535_v39, %v7274_v62  ;;  %v6970_v18 = vld [vmem:[#allocation12 + $0x130] sm:$0xf0] }
 0x1c3   :  { %4502 = vmatpush.bf16.msrb.mxu3 %v7753_v37  ;;  %v7181_v37 = vor.u32 %v8511_v24, %v7178_v27  ;;  %v7309_v42 = vor.u32 %v8543_v63, %v7306_v30  ;;  %v8531_v10 = vld [vmem:[#allocation12 + $0x364] sm:$0xf]  ;;  %v7114_v27 = vld [vmem:[#allocation12 + $0x250] sm:$0xf0] }
 0x1c4   :  { %4465 = vmatpush.bf16.msrb.mxu0 %v7337_v43  ;;  %4478 = vmatpush.bf16.msrb.mxu1 %v7465_v26  ;;  %v6893_v43 = vor.u32 %v8439_v28, %v6890_v14  ;;  %v8435_v26 = vld [vmem:[#allocation12 + $0x64] sm:$0xf]  ;;  %v7242_v30 = vld [vmem:[#allocation12 + $0x350] sm:$0xf0] }
 0x1c5   :  { %v8459_v52 = vld [vmem:[#allocation12 + $0x124] sm:$0xf]  ;;  %v6826_v14 = vld [vmem:[#allocation12 + $0x10] sm:$0xf0] }
 0x1c6   :  { %4490 = vmatpush.bf16.msrb.mxu2 %v7609_v48  ;;  %v2696_v48 = vpop.f32.mrf.mxu0  ;;  %v8495_v24 = vld [vmem:[#allocation12 + $0x244] sm:$0xf]  ;;  %v6973_v28 = vor.u32 %v8459_v52, %v6970_v18  ;;  %v6954_v40 = vld [vmem:[#allocation12 + $0x110] sm:$0xf0] }
 0x1c7   :  { %4503 = vmatpush.bf16.msrb.mxu3 %v7737_v35  ;;  %4466 = vmatmul.bf16.vlgmr.msrb.gmra.mxu0 %v9356_v9  ;;  %v2697_v56 = vadd.f32 %v2696_v48, %v9352_v53  ;;  %v2709_v35 = vpop.f32.mrf.mxu1  ;;  %v6861_v53 = vor.u32 %v8431_v51, %v6858_v47  ;;  %v8527_v63 = vld [vmem:[#allocation12 + $0x344] sm:$0xf]  ;;  %v7117_v41 = vor.u32 %v8495_v24, %v7114_v27  ;;  %v7450_v57 = vld [vmem:[#allocation12 + $0x4f0] sm:$0xf0] }
 0x1c8   :  { %4510 = vmatpush.bf16.msra.mxu0 %v6941_v8  ;;  %4523 = vmatpush.bf16.msra.mxu1 %v7069_v25  ;;  %v6874_v8 = vld [vmem:[#allocation12 + $0x70] sm:$0xf0]  ;;  %v8611_v21 = vld [vmem:[#allocation12 + $0x5e4] sm:$0xf]  ;;  %v7245_v44 = vor.u32 %v8527_v63, %v7242_v30 }
 0x1c9   :  { %4479 = vmatmul.bf16.vlgmr.msrb.gmra.mxu1 %v9359_v6  ;;  %v7002_v25 = vld [vmem:[#allocation12 + $0x170] sm:$0xf0]  ;;  %v6877_v58 = vor.u32 %v8435_v26, %v6874_v8  ;;  %v2710_v0 = vadd.f32 %v2709_v35, %v2697_v56  ;;  %v8575_v55 = vld [vmem:[#allocation12 + $0x4c4] sm:$0xf] }
 0x1ca   :  { %4491 = vmatpush.bf16.msrb.mxu2 %v7593_v59  ;;  %v7005_v61 = vor.u32 %v8467_v50, %v7002_v25  ;;  %v7130_v59 = vld [vmem:[#allocation12 + $0x270] sm:$0xf0]  ;;  %v8523_v25 = vld [vmem:[#allocation12 + $0x324] sm:$0xf] }
 0x1cb   :  { %4504 = vmatpush.bf16.msrb.mxu3 %v7721_v13  ;;  %v8427_v13 = vld [vmem:[#allocation12 + $0x24] sm:$0xf]  ;;  %v7578_v4 = vld [vmem:[#allocation12 + $0x5f0] sm:$0xf0] }
 0x1cc   :  { %4511 = vmatpush.bf16.msra.mxu0 %v6925_v22  ;;  %4524 = vmatpush.bf16.msra.mxu1 %v7053_v7  ;;  %v8463_v22 = vld [vmem:[#allocation12 + $0x144] sm:$0xf]  ;;  %v7098_v26 = vld [vmem:[#allocation12 + $0x230] sm:$0xf0]  ;;  %v7581_v35 = vor.u32 %v8611_v21, %v7578_v4 }
 0x1cd   :  { %4492 = vmatmul.bf16.vlgmr.msrb.gmra.mxu2 %v9365_v19  ;;  %v8499_v7 = vld [vmem:[#allocation12 + $0x264] sm:$0xf]  ;;  %v6989_v12 = vor.u32 %v8463_v22, %v6986_v2  ;;  %v7226_v48 = vld [vmem:[#allocation12 + $0x330] sm:$0xf0] }
 0x1ce   :  { %4536 = vmatpush.bf16.msra.mxu2 %v7197_v45  ;;  %4505 = vmatmul.bf16.vlgmr.msrb.gmra.mxu3 %v9367_v38  ;;  %v6842_v45 = vld [vmem:[#allocation12 + $0x30] sm:$0xf0]  ;;  %v7133_v15 = vor.u32 %v8499_v7, %v7130_v59  ;;  %v2698_v20 = vpop.f32.mrf.mxu0  ;;  %v8607_v62 = vld [vmem:[#allocation12 + $0x5c4] sm:$0xf]  ;;  %v7229_v51 = vor.u32 %v8523_v25, %v7226_v48 }
 0x1cf   :  { %4549 = vmatpush.bf16.msra.mxu3 %v7325_v23  ;;  %v7261_v23 = vor.u32 %v8531_v10, %v7258_v11  ;;  %v2711_v16 = vpop.f32.mrf.mxu1  ;;  %v7434_v39 = vld [vmem:[#allocation12 + $0x4d0] sm:$0xf0]  ;;  %v8487_v47 = vld [vmem:[#allocation12 + $0x204] sm:$0xf] }
 0x1d0   :  { %4512 = vmatpush.bf16.msra.mxu0 %v6909_v29  ;;  %4525 = vmatpush.bf16.msra.mxu1 %v7037_v31  ;;  %v6845_v29 = vor.u32 %v8427_v13, %v6842_v45  ;;  %v8423_v31 = vld [vmem:[#allocation12 + $0x4] sm:$0xf]  ;;  %v7210_v22 = vld [vmem:[#allocation12 + $0x310] sm:$0xf0]  ;;  %v7437_v7 = vor.u32 %v8575_v55, %v7434_v39 }
 0x1d1   :  { %v6829_v50 = vor.u32 %v8423_v31, %v6826_v14  ;;  %v8643_v2 = vld [vmem:[#allocation12 + $0x6e4] sm:$0xf]  ;;  %v7418_v13 = vld [vmem:[#allocation12 + $0x4b0] sm:$0xf0] }
 0x1d2   :  { %4537 = vmatpush.bf16.msra.mxu2 %v7181_v37  ;;  %v8455_v37 = vld [vmem:[#allocation12 + $0x104] sm:$0xf]  ;;  %v7546_v20 = vld [vmem:[#allocation12 + $0x5b0] sm:$0xf0] }
 0x1d3   :  { %4550 = vmatpush.bf16.msra.mxu3 %v7309_v42  ;;  %v8579_v42 = vld [vmem:[#allocation12 + $0x4e4] sm:$0xf]  ;;  %v7690_v16 = vld [vmem:[#allocation12 + $0x6d0] sm:$0xf0] }
 0x1d4   :  { %4513 = vmatpush.bf16.msra.mxu0 %v6893_v43  ;;  %4526 = vmatpush.bf16.msra.mxu1 %v7021_v34  ;;  %v2722_v43 = vpop.f32.mrf.mxu2  ;;  %v8491_v34 = vld [vmem:[#allocation12 + $0x224] sm:$0xf]  ;;  %v7453_v32 = vor.u32 %v8579_v42, %v7450_v57  ;;  %v7818_v30 = vld [vmem:[#allocation12 + $0x7d0] sm:$0xf0] }
 0x1d5   :  { %v2723_v8 = vadd.f32 %v2722_v43, %v2710_v0  ;;  %v7082_v0 = vld [vmem:[#allocation12 + $0x210] sm:$0xf0]  ;;  %v8675_v59 = vld [vmem:[#allocation12 + $0x7e4] sm:$0xf]  ;;  %v8767_v43 = vld [vmem:[%s9479_s5] sm:$0xf] }
 0x1d6   :  { %4538 = vmatpush.bf16.msra.mxu2 %v7165_v46  ;;  %v2735_v46 = vpop.f32.mrf.mxu3  ;;  %v7085_v11 = vor.u32 %v8487_v47, %v7082_v0  ;;  %v8603_v18 = vld [vmem:[#allocation12 + $0x5a4] sm:$0xf]  ;;  %v7402_v14 = vld [vmem:[#allocation12 + $0x490] sm:$0xf0]  ;;  %s5523_s5 = sld [smem:[#allocation2 + $0x1]] }
 0x1d7   :  { %4551 = vmatpush.bf16.msra.mxu3 %v7293_v54  ;;  %v6957_v54 = vor.u32 %v8455_v37, %v6954_v40  ;;  %v9372_v56 = vadd.f32 %v2735_v46, %v2723_v8  ;;  %v8639_v27 = vld [vmem:[#allocation12 + $0x6c4] sm:$0xf]  ;;  %v7549_v31 = vor.u32 %v8603_v18, %v7546_v20  ;;  %v7674_v21 = vld [vmem:[#allocation12 + $0x6b0] sm:$0xf0] }
 0x1d8   :  { %4514 = vmatpush.bf16.msra.mxu0 %v6877_v58  ;;  %4527 = vmatpush.bf16.msra.mxu1 %v7005_v61  ;;  %v7101_v58 = vor.u32 %v8491_v34, %v7098_v26  ;;  %v7562_v61 = vld [vmem:[#allocation12 + $0x5d0] sm:$0xf0]  ;;  %v8671_v63 = vld [vmem:[#allocation12 + $0x7c4] sm:$0xf]  ;;  %v7693_v37 = vor.u32 %v8639_v27, %v7690_v16 }
 0x1d9   :  { %v7565_v10 = vor.u32 %v8607_v62, %v7562_v61  ;;  %v8599_v40 = vld [vmem:[#allocation12 + $0x584] sm:$0xf]  ;;  %v7821_v42 = vor.u32 %v8671_v63, %v7818_v30  ;;  %v7802_v26 = vld [vmem:[#allocation12 + $0x7b0] sm:$0xf0]  ;;  %vm2845_vm3 = vcmp.gt.f32.partialorder %v9372_v56, 0.0 }
 0x1da   :  { %4539 = vmatpush.bf16.msra.mxu2 %v7149_v1  ;;  %v8519_v1 = vld [vmem:[#allocation12 + $0x304] sm:$0xf]  ;;  %v7786_v47 = vld [vmem:[#allocation12 + $0x790] sm:$0xf0] }
 0x1db   :  { %4552 = vmatpush.bf16.msra.mxu3 %v7277_v5  ;;  %v7706_v5 = vld [vmem:[#allocation12 + $0x6f0] sm:$0xf0]  ;;  %v8635_v57 = vld [vmem:[#allocation12 + $0x6a4] sm:$0xf] }
 0x1dc   :  { %4515 = vmatpush.bf16.msra.mxu0 %v6861_v53  ;;  %4528 = vmatpush.bf16.msra.mxu1 %v6989_v12  ;;  %v7834_v53 = vld [vmem:[#allocation12 + $0x7f0] sm:$0xf0]  ;;  %v8571_v12 = vld [vmem:[#allocation12 + $0x4a4] sm:$0xf]  ;;  %v2724_v45 = vpop.f32.mrf.mxu2  ;;  %v7709_v52 = vor.u32 %v8643_v2, %v7706_v5  ;;  %v7677_v25 = vor.u32 %v8635_v57, %v7674_v21 }
 0x1dd   :  { %v7837_v24 = vor.u32 %v8675_v59, %v7834_v53  ;;  %v8667_v34 = vld [vmem:[#allocation12 + $0x7a4] sm:$0xf]  ;;  %v7498_v59 = vld [vmem:[#allocation12 + $0x550] sm:$0xf0] }
 0x1de   :  { %4540 = vmatpush.bf16.msra.mxu2 %v7133_v15  ;;  %v7213_v15 = vor.u32 %v8519_v1, %v7210_v22  ;;  %v8563_v46 = vld [vmem:[#allocation12 + $0x464] sm:$0xf]  ;;  %v7805_v55 = vor.u32 %v8667_v34, %v7802_v26  ;;  %v7370_v22 = vld [vmem:[#allocation12 + $0x450] sm:$0xf0] }
 0x1df   :  { %4553 = vmatpush.bf16.msra.mxu3 %v7261_v23  ;;  %v2737_v23 = vpop.f32.mrf.mxu3  ;;  %v8595_v48 = vld [vmem:[#allocation12 + $0x564] sm:$0xf]  ;;  %v7770_v45 = vld [vmem:[#allocation12 + $0x770] sm:$0xf0] }
 0x1e0   :  { %4516 = vmatpush.bf16.msra.mxu0 %v6845_v29  ;;  %4529 = vmatpush.bf16.msra.mxu1 %v6973_v28  ;;  %v7421_v29 = vor.u32 %v8571_v12, %v7418_v13  ;;  %v8567_v28 = vld [vmem:[#allocation12 + $0x484] sm:$0xf]  ;;  %v7354_v18 = vld [vmem:[#allocation12 + $0x430] sm:$0xf0] }
 0x1e1   :  { %v7405_v4 = vor.u32 %v8567_v28, %v7402_v14  ;;  %v8559_v1 = vld [vmem:[#allocation12 + $0x444] sm:$0xf]  ;;  %v7626_v63 = vld [vmem:[#allocation12 + $0x650] sm:$0xf0] }
 0x1e2   :  { %4541 = vmatpush.bf16.msra.mxu2 %v7117_v41  ;;  %v7530_v41 = vld [vmem:[#allocation12 + $0x590] sm:$0xf0]  ;;  %v7373_v12 = vor.u32 %v8559_v1, %v7370_v22  ;;  %v8659_v13 = vld [vmem:[#allocation12 + $0x764] sm:$0xf]  ;;  %v8482_v1 = vld [vmem:[#allocation12 + $0x1d4] sm:$0xf0] }
 0x1e3   :  { %4554 = vmatpush.bf16.msra.mxu3 %v7245_v44  ;;  %v1142_v44 = vperm.slane %v8767_v43, 3  ;;  %v7533_v8 = vor.u32 %v8599_v40, %v7530_v41  ;;  %v8587_v23 = vld [vmem:[#allocation12 + $0x524] sm:$0xf]  ;;  %v7773_v16 = vor.u32 %v8659_v13, %v7770_v45  ;;  %v7754_v14 = vld [vmem:[#allocation12 + $0x750] sm:$0xf0] }
 0x1e4   :  { %4517 = vmatpush.bf16.msra.mxu0 %v6829_v50  ;;  %4530 = vmatpush.bf16.msra.mxu1 %v6957_v54  ;;  %v7386_v50 = vld [vmem:[#allocation12 + $0x470] sm:$0xf0]  ;;  %v8655_v28 = vld [vmem:[#allocation12 + $0x744] sm:$0xf]  ;;  %v6944_v43 = vld [vmem:[#allocation12 + $0xe8] sm:$0xf] }
 0x1e5   :  { %v7514_v54 = vld [vmem:[#allocation12 + $0x570] sm:$0xf0]  ;;  %v7389_v61 = vor.u32 %v8563_v46, %v7386_v50  ;;  %v7757_v26 = vor.u32 %v8655_v28, %v7754_v14  ;;  %v8619_v46 = vld [vmem:[#allocation12 + $0x624] sm:$0xf]  ;;  %v8550_v13 = vld [vmem:[#allocation12 + $0x3f4] sm:$0xf0] }
 0x1e6   :  { %4542 = vmatpush.bf16.msra.mxu2 %v7101_v58  ;;  %v7658_v58 = vld [vmem:[#allocation12 + $0x690] sm:$0xf0]  ;;  %v2761_v62 = vpop.f32.mrf.mxu1  ;;  %v7517_v0 = vor.u32 %v8595_v48, %v7514_v54  ;;  %v7312_v14 = vld [vmem:[#allocation12 + $0x3c8] sm:$0xf] }
 0x1e7   :  { %4555 = vmatpush.bf16.msra.mxu3 %v7229_v51  ;;  %4518 = vmatmul.bf16.vlgmr.msra.gmra.mxu0 %v9319_v36  ;;  %v8663_v51 = vld [vmem:[#allocation12 + $0x784] sm:$0xf]  ;;  %v7338_v41 = vld [vmem:[#allocation12 + $0x410] sm:$0xf0] }
 0x1e8   :  { %4562 = vmatpush.bf16.msrb.mxu0 %v7453_v32  ;;  %4575 = vmatpush.bf16.msrb.mxu1 %v7581_v35  ;;  %v2748_v32 = vpop.f32.mrf.mxu0  ;;  %v8631_v35 = vld [vmem:[#allocation12 + $0x684] sm:$0xf]  ;;  %v7789_v53 = vor.u32 %v8663_v51, %v7786_v47  ;;  %v7466_v57 = vld [vmem:[#allocation12 + $0x510] sm:$0xf0]  ;;  %v8450_v47 = vld [vmem:[#allocation12 + $0xd4] sm:$0xf0] }
 0x1e9   :  { %4531 = vmatmul.bf16.vlgmr.msra.gmra.mxu1 %v9322_v49  ;;  %v2749_v39 = vadd.f32 %v2748_v32, %v1142_v44  ;;  %v7661_v5 = vor.u32 %v8631_v35, %v7658_v58  ;;  %v8454_v44 = vld [vmem:[#allocation12 + $0xf4] sm:$0xf0]  ;;  %v7610_v50 = vld [vmem:[#allocation12 + $0x630] sm:$0xf0]  ;;  %v8651_v32 = vld [vmem:[#allocation12 + $0x724] sm:$0xf] }
 0x1ea   :  { %4543 = vmatpush.bf16.msra.mxu2 %v7085_v11  ;;  %v7642_v11 = vld [vmem:[#allocation12 + $0x670] sm:$0xf0]  ;;  %v6945_v58 = vor.u32 %v8454_v44, %v6944_v43  ;;  %v7613_v51 = vor.u32 %v8619_v46, %v7610_v50  ;;  %v8474_v43 = vld [vmem:[#allocation12 + $0x194] sm:$0xf0] }
 0x1eb   :  { %4556 = vmatpush.bf16.msra.mxu3 %v7213_v15  ;;  %v2762_v2 = vadd.f32 %v2761_v62, %v2749_v39  ;;  %v6928_v39 = vld [vmem:[#allocation12 + $0xc8] sm:$0xf]  ;;  %v8542_v46 = vld [vmem:[#allocation12 + $0x3b4] sm:$0xf0] }
 0x1ec   :  { %4563 = vmatpush.bf16.msrb.mxu0 %v7437_v7  ;;  %4576 = vmatpush.bf16.msrb.mxu1 %v7565_v10  ;;  %v8591_v7 = vld [vmem:[#allocation12 + $0x544] sm:$0xf] }
 0x1ed   :  { %4544 = vmatmul.bf16.vlgmr.msra.gmra.mxu2 %v9328_v3  ;;  %v8627_v10 = vld [vmem:[#allocation12 + $0x664] sm:$0xf]  ;;  %v7501_v15 = vor.u32 %v8591_v7, %v7498_v59  ;;  %v7722_v59 = vld [vmem:[#allocation12 + $0x710] sm:$0xf0] }
 0x1ee   :  { %4588 = vmatpush.bf16.msrb.mxu2 %v7709_v52  ;;  %4557 = vmatmul.bf16.vlgmr.msra.gmra.mxu3 %v9330_v17  ;;  %v8555_v52 = vld [vmem:[#allocation12 + $0x424] sm:$0xf]  ;;  %v7645_v20 = vor.u32 %v8627_v10, %v7642_v11  ;;  %v2763_v30 = vpop.f32.mrf.mxu1  ;;  %v8518_v10 = vld [vmem:[#allocation12 + $0x2f4] sm:$0xf0]  ;;  %v6929_v11 = vor.u32 %v8450_v47, %v6928_v39  ;;  %v7152_v39 = vld [vmem:[#allocation12 + $0x288] sm:$0xf] }
 0x1ef   :  { %4601 = vmatpush.bf16.msrb.mxu3 %v7837_v24  ;;  %v7482_v24 = vld [vmem:[#allocation12 + $0x530] sm:$0xf0]  ;;  %v8647_v7 = vld [vmem:[#allocation12 + $0x704] sm:$0xf]  ;;  %v7184_v30 = vld [vmem:[#allocation12 + $0x2c8] sm:$0xf] }
 0x1f0   :  { %4564 = vmatpush.bf16.msrb.mxu0 %v7421_v29  ;;  %4577 = vmatpush.bf16.msrb.mxu1 %v7549_v31  ;;  %v2750_v27 = vpop.f32.mrf.mxu0  ;;  %v8623_v29 = vld [vmem:[#allocation12 + $0x644] sm:$0xf]  ;;  %v7357_v31 = vor.u32 %v8555_v52, %v7354_v18  ;;  %v7485_v40 = vor.u32 %v8587_v23, %v7482_v24  ;;  %v2774_v34 = vpop.f32.mrf.mxu2  ;;  %v6912_v52 = vld [vmem:[#allocation12 + $0xa8] sm:$0xf]  ;;  %v8446_v18 = vld [vmem:[#allocation12 + $0xb4] sm:$0xf0]  ;;  %v7725_v23 = vor.u32 %v8647_v7, %v7722_v59 }
 0x1f1   :  { %v7629_v21 = vor.u32 %v8623_v29, %v7626_v63  ;;  %v2787_v48 = vpop.f32.mrf.mxu3  ;;  %v7040_v27 = vld [vmem:[#allocation12 + $0x1a8] sm:$0xf]  ;;  %v6913_v28 = vor.u32 %v8446_v18, %v6912_v52  ;;  %v8434_v7 = vld [vmem:[#allocation12 + $0x54] sm:$0xf0] }
 0x1f2   :  { %4589 = vmatpush.bf16.msrb.mxu2 %v7693_v37  ;;  %v8551_v37 = vld [vmem:[#allocation12 + $0x404] sm:$0xf]  ;;  %v8534_v52 = vld [vmem:[#allocation12 + $0x374] sm:$0xf0] }
 0x1f3   :  { %4602 = vmatpush.bf16.msrb.mxu3 %v7821_v42  ;;  %v8583_v42 = vld [vmem:[#allocation12 + $0x504] sm:$0xf]  ;;  %v7341_v54 = vor.u32 %v8551_v37, %v7338_v41  ;;  %v8546_v37 = vld [vmem:[#allocation12 + $0x3d4] sm:$0xf0]  ;;  %v6896_v41 = vld [vmem:[#allocation12 + $0x88] sm:$0xf] }
 0x1f4   :  { %4565 = vmatpush.bf16.msrb.mxu0 %v7405_v4  ;;  %4578 = vmatpush.bf16.msrb.mxu1 %v7533_v8  ;;  %v7072_v4 = vld [vmem:[#allocation12 + $0x1e8] sm:$0xf]  ;;  %v8486_v8 = vld [vmem:[#allocation12 + $0x1f4] sm:$0xf0]  ;;  %v7469_v35 = vor.u32 %v8583_v42, %v7466_v57  ;;  %v7313_v44 = vor.u32 %v8546_v37, %v7312_v14 }
 0x1f5   :  { %v8442_v42 = vld [vmem:[#allocation12 + $0x94] sm:$0xf0]  ;;  %v7248_v37 = vld [vmem:[#allocation12 + $0x348] sm:$0xf] }
 0x1f6   :  { %4590 = vmatpush.bf16.msrb.mxu2 %v7677_v25  ;;  %v2775_v25 = vadd.f32 %v2774_v34, %v2762_v2  ;;  %v8615_v2 = vld [vmem:[#allocation12 + $0x604] sm:$0xf]  ;;  %v8510_v34 = vld [vmem:[#allocation12 + $0x2b4] sm:$0xf0] }
 0x1f7   :  { %4603 = vmatpush.bf16.msrb.mxu3 %v7805_v55  ;;  %v7738_v55 = vld [vmem:[#allocation12 + $0x730] sm:$0xf0] }
 0x1f8   :  { %4566 = vmatpush.bf16.msrb.mxu0 %v7389_v61  ;;  %4579 = vmatpush.bf16.msrb.mxu1 %v7517_v0  ;;  %v9381_v62 = vadd.f32 %v2787_v48, %v2775_v25  ;;  %v7073_v61 = vor.u32 %v8486_v8, %v7072_v4  ;;  %v7056_v0 = vld [vmem:[#allocation12 + $0x1c8] sm:$0xf]  ;;  %v7741_v22 = vor.u32 %v8651_v32, %v7738_v55  ;;  %v8438_v48 = vld [vmem:[#allocation12 + $0x74] sm:$0xf0] }
 0x1f9   :  { %v7057_v45 = vor.u32 %v8482_v1, %v7056_v0  ;;  %v2789_v29 = vpop.f32.mrf.mxu3  ;;  %v7168_v4 = vld [vmem:[#allocation12 + $0x2a8] sm:$0xf]  ;;  %v8470_v55 = vld [vmem:[#allocation12 + $0x174] sm:$0xf0] }
 0x1fa   :  { %4591 = vmatpush.bf16.msrb.mxu2 %v7661_v5  ;;  %v7594_v5 = vld [vmem:[#allocation12 + $0x610] sm:$0xf0]  ;;  %v7296_v8 = vld [vmem:[#allocation12 + $0x3a8] sm:$0xf] }
 0x1fb   :  { %4604 = vmatpush.bf16.msrb.mxu3 %v7789_v53  ;;  %v7200_v53 = vld [vmem:[#allocation12 + $0x2e8] sm:$0xf] }
 0x1fc   :  { %4567 = vmatpush.bf16.msrb.mxu0 %v7373_v12  ;;  %4580 = vmatpush.bf16.msrb.mxu1 %v7501_v15  ;;  %v7328_v12 = vld [vmem:[#allocation12 + $0x3e8] sm:$0xf]  ;;  %v7597_v15 = vor.u32 %v8615_v2, %v7594_v5  ;;  %v7201_v24 = vor.u32 %v8518_v10, %v7200_v53 }
 0x1fd   :  { %v7329_v63 = vor.u32 %v8550_v13, %v7328_v12  ;;  %v6880_v25 = vld [vmem:[#allocation12 + $0x68] sm:$0xf] }
 0x1fe   :  { %4592 = vmatpush.bf16.msrb.mxu2 %v7645_v20  ;;  %v2776_v20 = vpop.f32.mrf.mxu2  ;;  %v7008_v32 = vld [vmem:[#allocation12 + $0x168] sm:$0xf]  ;;  %v6881_v0 = vor.u32 %v8438_v48, %v6880_v25  ;;  %v8494_v48 = vld [vmem:[#allocation12 + $0x234] sm:$0xf0] }
 0x1ff   :  { %4605 = vmatpush.bf16.msrb.mxu3 %v7773_v16  ;;  %v8478_v16 = vld [vmem:[#allocation12 + $0x1b4] sm:$0xf0]  ;;  %v7280_v1 = vld [vmem:[#allocation12 + $0x388] sm:$0xf]  ;;  %v7009_v2 = vor.u32 %v8470_v55, %v7008_v32 }
 0x200   :  { %4568 = vmatpush.bf16.msrb.mxu0 %v7357_v31  ;;  %4581 = vmatpush.bf16.msrb.mxu1 %v7485_v40  ;;  %v8514_v31 = vld [vmem:[#allocation12 + $0x2d4] sm:$0xf0]  ;;  %v7041_v40 = vor.u32 %v8478_v16, %v7040_v27  ;;  %v6864_v5 = vld [vmem:[#allocation12 + $0x48] sm:$0xf] }
 0x201   :  { %v7185_v57 = vor.u32 %v8514_v31, %v7184_v30  ;;  %v6992_v10 = vld [vmem:[#allocation12 + $0x148] sm:$0xf]  ;;  %v8462_v16 = vld [vmem:[#allocation12 + $0x134] sm:$0xf0] }
 0x202   :  { %4593 = vmatpush.bf16.msrb.mxu2 %v7629_v21  ;;  %v7024_v21 = vld [vmem:[#allocation12 + $0x188] sm:$0xf]  ;;  %v8498_v31 = vld [vmem:[#allocation12 + $0x254] sm:$0xf0] }
 0x203   :  { %4606 = vmatpush.bf16.msrb.mxu3 %v7757_v26  ;;  %v6897_v26 = vor.u32 %v8442_v42, %v6896_v41  ;;  %v7025_v50 = vor.u32 %v8474_v43, %v7024_v21  ;;  %v7136_v13 = vld [vmem:[#allocation12 + $0x268] sm:$0xf]  ;;  %v8458_v43 = vld [vmem:[#allocation12 + $0x114] sm:$0xf0] }
 0x204   :  { %4569 = vmatpush.bf16.msrb.mxu0 %v7341_v54  ;;  %4582 = vmatpush.bf16.msrb.mxu1 %v7469_v35  ;;  %v7169_v54 = vor.u32 %v8510_v34, %v7168_v4  ;;  %v2800_v35 = vpop.f32.mrf.mxu0  ;;  %v6848_v20 = vld [vmem:[#allocation12 + $0x28] sm:$0xf]  ;;  %v8582_v34 = vld [vmem:[#allocation12 + $0x4f4] sm:$0xf0] }
 0x205   :  { %v6976_v27 = vld [vmem:[#allocation12 + $0x128] sm:$0xf] }
 0x206   :  { %4594 = vmatpush.bf16.msrb.mxu2 %v7613_v51  ;;  %v2801_v51 = vadd.f32 %v2800_v35, %v9381_v62  ;;  %v2813_v47 = vpop.f32.mrf.mxu1  ;;  %v6865_v62 = vor.u32 %v8434_v7, %v6864_v5  ;;  %v7120_v30 = vld [vmem:[#allocation12 + $0x248] sm:$0xf]  ;;  %v6977_v42 = vor.u32 %v8462_v16, %v6976_v27  ;;  %v8610_v5 = vld [vmem:[#allocation12 + $0x5d4] sm:$0xf0] }
 0x207   :  { %4607 = vmatpush.bf16.msrb.mxu3 %v7741_v22  ;;  %4570 = vmatmul.bf16.vlgmr.msrb.gmra.mxu0 %v9356_v9  ;;  %v8538_v22 = vld [vmem:[#allocation12 + $0x394] sm:$0xf0]  ;;  %v6832_v41 = vld [vmem:[#allocation12 + $0x8] sm:$0xf] }
 0x208   :  { %4614 = vmatpush.bf16.msra.mxu0 %v6945_v58  ;;  %4627 = vmatpush.bf16.msra.mxu1 %v7073_v61  ;;  %v7297_v58 = vor.u32 %v8542_v46, %v7296_v8  ;;  %v8506_v61 = vld [vmem:[#allocation12 + $0x294] sm:$0xf0]  ;;  %v2814_v59 = vadd.f32 %v2813_v47, %v2801_v51  ;;  %v7281_v12 = vor.u32 %v8538_v22, %v7280_v1  ;;  %v6960_v21 = vld [vmem:[#allocation12 + $0x108] sm:$0xf] }
 0x209   :  { %4583 = vmatmul.bf16.vlgmr.msrb.gmra.mxu1 %v9359_v6  ;;  %v7153_v53 = vor.u32 %v8506_v61, %v7152_v39  ;;  %v7456_v4 = vld [vmem:[#allocation12 + $0x4e8] sm:$0xf]  ;;  %v6961_v39 = vor.u32 %v8458_v43, %v6960_v21  ;;  %v8578_v22 = vld [vmem:[#allocation12 + $0x4d4] sm:$0xf0] }
 0x20a   :  { %4595 = vmatpush.bf16.msrb.mxu2 %v7597_v15  ;;  %v7264_v15 = vld [vmem:[#allocation12 + $0x368] sm:$0xf]  ;;  %v7457_v61 = vor.u32 %v8582_v34, %v7456_v4  ;;  %v8570_v43 = vld [vmem:[#allocation12 + $0x494] sm:$0xf0] }
 0x20b   :  { %4608 = vmatpush.bf16.msrb.mxu3 %v7725_v23  ;;  %v8430_v23 = vld [vmem:[#allocation12 + $0x34] sm:$0xf0]  ;;  %v7104_v25 = vld [vmem:[#allocation12 + $0x228] sm:$0xf] }
 0x20c   :  { %4615 = vmatpush.bf16.msra.mxu0 %v6929_v11  ;;  %4628 = vmatpush.bf16.msra.mxu1 %v7057_v45  ;;  %v8466_v11 = vld [vmem:[#allocation12 + $0x154] sm:$0xf0]  ;;  %v2802_v29 = vpop.f32.mrf.mxu0  ;;  %v6849_v14 = vor.u32 %v8430_v23, %v6848_v20  ;;  %v7232_v35 = vld [vmem:[#allocation12 + $0x328] sm:$0xf]  ;;  %v7105_v1 = vor.u32 %v8494_v48, %v7104_v25 }
 0x20d   :  { %4596 = vmatmul.bf16.vlgmr.msrb.gmra.mxu2 %v9365_v19  ;;  %v8502_v45 = vld [vmem:[#allocation12 + $0x274] sm:$0xf0]  ;;  %v6993_v18 = vor.u32 %v8466_v11, %v6992_v10  ;;  %v7440_v51 = vld [vmem:[#allocation12 + $0x4c8] sm:$0xf] }
 0x20e   :  { %4640 = vmatpush.bf16.msra.mxu2 %v7201_v24  ;;  %4609 = vmatmul.bf16.vlgmr.msrb.gmra.mxu3 %v9367_v38  ;;  %v7137_v24 = vor.u32 %v8502_v45, %v7136_v13  ;;  %v7216_v10 = vld [vmem:[#allocation12 + $0x308] sm:$0xf]  ;;  %v8522_v11 = vld [vmem:[#allocation12 + $0x314] sm:$0xf0]  ;;  %v7441_v45 = vor.u32 %v8578_v22, %v7440_v51 }
 0x20f   :  { %4653 = vmatpush.bf16.msra.mxu3 %v7329_v63  ;;  %v7265_v63 = vor.u32 %v8534_v52, %v7264_v15  ;;  %v8646_v13 = vld [vmem:[#allocation12 + $0x6f4] sm:$0xf0]  ;;  %v7424_v20 = vld [vmem:[#allocation12 + $0x4a8] sm:$0xf]  ;;  %v7217_v27 = vor.u32 %v8522_v11, %v7216_v10 }
 0x210   :  { %4616 = vmatpush.bf16.msra.mxu0 %v6913_v28  ;;  %4629 = vmatpush.bf16.msra.mxu1 %v7041_v40  ;;  %v2815_v28 = vpop.f32.mrf.mxu1  ;;  %v8530_v40 = vld [vmem:[#allocation12 + $0x354] sm:$0xf0]  ;;  %v2826_v8 = vpop.f32.mrf.mxu2  ;;  %v7552_v29 = vld [vmem:[#allocation12 + $0x5a8] sm:$0xf] }
 0x211   :  { %v7249_v46 = vor.u32 %v8530_v40, %v7248_v37  ;;  %v2839_v32 = vpop.f32.mrf.mxu3  ;;  %v8678_v15 = vld [vmem:[#allocation12 + $0x7f4] sm:$0xf0]  ;;  %v7696_v28 = vld [vmem:[#allocation12 + $0x6c8] sm:$0xf] }
 0x212   :  { %4641 = vmatpush.bf16.msra.mxu2 %v7185_v57  ;;  %v8426_v57 = vld [vmem:[#allocation12 + $0x14] sm:$0xf0]  ;;  %v7824_v40 = vld [vmem:[#allocation12 + $0x7c8] sm:$0xf] }
 0x213   :  { %4654 = vmatpush.bf16.msra.mxu3 %v7313_v44  ;;  %v7121_v44 = vor.u32 %v8498_v31, %v7120_v30  ;;  %v6833_v55 = vor.u32 %v8426_v57, %v6832_v41  ;;  %v8574_v23 = vld [vmem:[#allocation12 + $0x4b4] sm:$0xf0]  ;;  %v9392_v57 = vld [vmem:[#allocation13] sm:$0xf]  ;;  %v7408_v21 = vld [vmem:[#allocation12 + $0x488] sm:$0xf] }
 0x214   :  { %4617 = vmatpush.bf16.msra.mxu0 %v6897_v26  ;;  %4630 = vmatpush.bf16.msra.mxu1 %v7025_v50  ;;  %v7584_v26 = vld [vmem:[#allocation12 + $0x5e8] sm:$0xf]  ;;  %v8614_v50 = vld [vmem:[#allocation12 + $0x5f4] sm:$0xf0]  ;;  %v7425_v37 = vor.u32 %v8574_v23, %v7424_v20  ;;  %v7409_v25 = vor.u32 %v8570_v43, %v7408_v21 }
 0x215   :  { %v8674_v41 = vld [vmem:[#allocation12 + $0x7d4] sm:$0xf0]  ;;  %v7536_v4 = vld [vmem:[#allocation12 + $0x588] sm:$0xf] }
 0x216   :  { %4642 = vmatpush.bf16.msra.mxu2 %v7169_v54  ;;  %v2827_v54 = vadd.f32 %v2826_v8, %v2814_v59  ;;  %v7088_v59 = vld [vmem:[#allocation12 + $0x208] sm:$0xf]  ;;  %v8602_v34 = vld [vmem:[#allocation12 + $0x594] sm:$0xf0] }
 0x217   :  { %4655 = vmatpush.bf16.msra.mxu3 %v7297_v58  ;;  %v8526_v58 = vld [vmem:[#allocation12 + $0x334] sm:$0xf0]  ;;  %v7680_v8 = vld [vmem:[#allocation12 + $0x6a8] sm:$0xf] }
 0x218   :  { %4618 = vmatpush.bf16.msra.mxu0 %v6881_v0  ;;  %4631 = vmatpush.bf16.msra.mxu1 %v7009_v2  ;;  %v9388_v47 = vadd.f32 %v2839_v32, %v2827_v54  ;;  %v7585_v0 = vor.u32 %v8614_v50, %v7584_v26  ;;  %v7568_v2 = vld [vmem:[#allocation12 + $0x5c8] sm:$0xf]  ;;  %v7233_v7 = vor.u32 %v8526_v58, %v7232_v35  ;;  %v3118_v50 = vperm.slane %v9392_v57, 0  ;;  %v8670_v54 = vld [vmem:[#allocation12 + $0x7b4] sm:$0xf0] }
 0x219   :  { %v7569_v52 = vor.u32 %v8610_v5, %v7568_v2  ;;  %v2841_v30 = vpop.f32.mrf.mxu3  ;;  %v7825_v26 = vor.u32 %v8674_v41, %v7824_v40  ;;  %v7808_v48 = vld [vmem:[#allocation12 + $0x7a8] sm:$0xf]  ;;  %v7537_v32 = vor.u32 %v8602_v34, %v7536_v4  ;;  %v8566_v35 = vld [vmem:[#allocation12 + $0x474] sm:$0xf0] }
 0x21a   :  { %4643 = vmatpush.bf16.msra.mxu2 %v7153_v53  ;;  %v8490_v53 = vld [vmem:[#allocation12 + $0x214] sm:$0xf0]  ;;  %v7376_v11 = vld [vmem:[#allocation12 + $0x448] sm:$0xf]  ;;  %vm2846_vm4 = vcmp.gt.f32.partialorder %v9388_v47, 0.0 }
 0x21b   :  { %4656 = vmatpush.bf16.msra.mxu3 %v7281_v12  ;;  %v7712_v12 = vld [vmem:[#allocation12 + $0x6e8] sm:$0xf]  ;;  %v8634_v22 = vld [vmem:[#allocation12 + $0x694] sm:$0xf0] }
 0x21c   :  { %4619 = vmatpush.bf16.msra.mxu0 %v6865_v62  ;;  %4632 = vmatpush.bf16.msra.mxu1 %v6993_v18  ;;  %v7840_v62 = vld [vmem:[#allocation12 + $0x7e8] sm:$0xf]  ;;  %v7089_v18 = vor.u32 %v8490_v53, %v7088_v59  ;;  %v7713_v16 = vor.u32 %v8646_v13, %v7712_v12  ;;  %v8666_v53 = vld [vmem:[#allocation12 + $0x794] sm:$0xf0] }
 0x21d   :  { %v7841_v31 = vor.u32 %v8678_v15, %v7840_v62  ;;  %v7792_v59 = vld [vmem:[#allocation12 + $0x788] sm:$0xf]  ;;  %v8562_v12 = vld [vmem:[#allocation12 + $0x454] sm:$0xf0] }
 0x21e   :  { %4644 = vmatpush.bf16.msra.mxu2 %v7137_v24  ;;  %v2828_v24 = vpop.f32.mrf.mxu2  ;;  %v7504_v62 = vld [vmem:[#allocation12 + $0x548] sm:$0xf]  ;;  %v8594_v15 = vld [vmem:[#allocation12 + $0x554] sm:$0xf0]  ;;  %v7377_v23 = vor.u32 %v8562_v12, %v7376_v11  ;;  %v6930_v11 = vld [vmem:[#allocation12 + $0xd8] sm:$0xf0] }
 0x21f   :  { %4657 = vmatpush.bf16.msra.mxu3 %v7265_v63  ;;  %v8606_v63 = vld [vmem:[#allocation12 + $0x5b4] sm:$0xf0]  ;;  %v7776_v24 = vld [vmem:[#allocation12 + $0x768] sm:$0xf]  ;;  %v8480_v12 = vld [vmem:[#allocation12 + $0x1cc] sm:$0xf] }
 0x220   :  { %4620 = vmatpush.bf16.msra.mxu0 %v6849_v14  ;;  %4633 = vmatpush.bf16.msra.mxu1 %v6977_v42  ;;  %v8642_v14 = vld [vmem:[#allocation12 + $0x6d4] sm:$0xf0]  ;;  %v7553_v42 = vor.u32 %v8606_v63, %v7552_v29  ;;  %v7360_v29 = vld [vmem:[#allocation12 + $0x428] sm:$0xf] }
 0x221   :  { %v8630_v20 = vld [vmem:[#allocation12 + $0x674] sm:$0xf0]  ;;  %v7632_v40 = vld [vmem:[#allocation12 + $0x648] sm:$0xf] }
 0x222   :  { %4645 = vmatpush.bf16.msra.mxu2 %v7121_v44  ;;  %v7697_v44 = vor.u32 %v8642_v14, %v7696_v28  ;;  %v8558_v63 = vld [vmem:[#allocation12 + $0x434] sm:$0xf0]  ;;  %v7760_v43 = vld [vmem:[#allocation12 + $0x748] sm:$0xf] }
 0x223   :  { %4658 = vmatpush.bf16.msra.mxu3 %v7249_v46  ;;  %v8638_v46 = vld [vmem:[#allocation12 + $0x6b4] sm:$0xf0]  ;;  %v7361_v21 = vor.u32 %v8558_v63, %v7360_v29  ;;  %v7344_v4 = vld [vmem:[#allocation12 + $0x408] sm:$0xf] }
 0x224   :  { %4621 = vmatpush.bf16.msra.mxu0 %v6833_v55  ;;  %4634 = vmatpush.bf16.msra.mxu1 %v6961_v39  ;;  %v7392_v55 = vld [vmem:[#allocation12 + $0x468] sm:$0xf]  ;;  %v7681_v58 = vor.u32 %v8638_v46, %v7680_v8  ;;  %v4415_v51 = vpop.f32.mrf.mxu0  ;;  %v8590_v28 = vld [vmem:[#allocation12 + $0x534] sm:$0xf0] }
 0x225   :  { %v7520_v39 = vld [vmem:[#allocation12 + $0x568] sm:$0xf]  ;;  %v4416_v2 = vadd.f32 %v4415_v51, %v3118_v50  ;;  %v8626_v41 = vld [vmem:[#allocation12 + $0x654] sm:$0xf0] }
 0x226   :  { %4646 = vmatpush.bf16.msra.mxu2 %v7105_v1  ;;  %v7664_v1 = vld [vmem:[#allocation12 + $0x688] sm:$0xf]  ;;  %v4428_v5 = vpop.f32.mrf.mxu1  ;;  %v8586_v46 = vld [vmem:[#allocation12 + $0x514] sm:$0xf0]  ;;  %v7633_v50 = vor.u32 %v8626_v41, %v7632_v40  ;;  %v8476_v40 = vld [vmem:[#allocation12 + $0x1ac] sm:$0xf] }
 0x227   :  { %4659 = vmatpush.bf16.msra.mxu3 %v7233_v7  ;;  %4622 = vmatmul.bf16.vlgmr.msra.gmra.mxu0 %v9319_v36  ;;  %v7393_v7 = vor.u32 %v8566_v35, %v7392_v55  ;;  %v4429_v13 = vadd.f32 %v4428_v5, %v4416_v2  ;;  %v7472_v8 = vld [vmem:[#allocation12 + $0x508] sm:$0xf]  ;;  %v7074_v35 = vld [vmem:[#allocation12 + $0x1f8] sm:$0xf0] }
 0x228   :  { %4666 = vmatpush.bf16.msrb.mxu0 %v7457_v61  ;;  %4679 = vmatpush.bf16.msrb.mxu1 %v7585_v0  ;;  %v8598_v61 = vld [vmem:[#allocation12 + $0x574] sm:$0xf0]  ;;  %v7809_v0 = vor.u32 %v8670_v54, %v7808_v48  ;;  %v6946_v48 = vld [vmem:[#allocation12 + $0xf8] sm:$0xf0]  ;;  %v8484_v54 = vld [vmem:[#allocation12 + $0x1ec] sm:$0xf]  ;;  %v7473_v2 = vor.u32 %v8586_v46, %v7472_v8 }
 0x229   :  { %4635 = vmatmul.bf16.vlgmr.msra.gmra.mxu1 %v9322_v49  ;;  %v7521_v10 = vor.u32 %v8598_v61, %v7520_v39  ;;  %v8622_v39 = vld [vmem:[#allocation12 + $0x634] sm:$0xf0]  ;;  %v7042_v41 = vld [vmem:[#allocation12 + $0x1b8] sm:$0xf0]  ;;  %v8440_v46 = vld [vmem:[#allocation12 + $0x8c] sm:$0xf] }
 0x22a   :  { %4647 = vmatpush.bf16.msra.mxu2 %v7089_v18  ;;  %v7648_v18 = vld [vmem:[#allocation12 + $0x668] sm:$0xf]  ;;  %v7045_v8 = vor.u32 %v8476_v40, %v7042_v41  ;;  %v6850_v40 = vld [vmem:[#allocation12 + $0x38] sm:$0xf0] }
 0x22b   :  { %4660 = vmatpush.bf16.msra.mxu3 %v7217_v27  ;;  %v8662_v27 = vld [vmem:[#allocation12 + $0x774] sm:$0xf0]  ;;  %v7649_v30 = vor.u32 %v8630_v20, %v7648_v18  ;;  %v8516_v20 = vld [vmem:[#allocation12 + $0x2ec] sm:$0xf] }
 0x22c   :  { %4667 = vmatpush.bf16.msrb.mxu0 %v7441_v45  ;;  %4680 = vmatpush.bf16.msrb.mxu1 %v7569_v52  ;;  %v7665_v45 = vor.u32 %v8634_v22, %v7664_v1  ;;  %v7793_v52 = vor.u32 %v8666_v53, %v7792_v59  ;;  %v4417_v14 = vpop.f32.mrf.mxu0  ;;  %v7744_v1 = vld [vmem:[#allocation12 + $0x728] sm:$0xf]  ;;  %v8654_v22 = vld [vmem:[#allocation12 + $0x734] sm:$0xf0]  ;;  %v7077_v53 = vor.u32 %v8484_v54, %v7074_v35  ;;  %v7026_v54 = vld [vmem:[#allocation12 + $0x198] sm:$0xf0] }
 0x22d   :  { %4648 = vmatmul.bf16.vlgmr.msra.gmra.mxu2 %v9328_v3  ;;  %v8650_v18 = vld [vmem:[#allocation12 + $0x714] sm:$0xf0]  ;;  %v7170_v35 = vld [vmem:[#allocation12 + $0x2b8] sm:$0xf0] }
 0x22e   :  { %4692 = vmatpush.bf16.msrb.mxu2 %v7713_v16  ;;  %4661 = vmatmul.bf16.vlgmr.msra.gmra.mxu3 %v9330_v17  ;;  %v7505_v16 = vor.u32 %v8594_v15, %v7504_v62  ;;  %v7745_v62 = vor.u32 %v8654_v22, %v7744_v1  ;;  %v8618_v15 = vld [vmem:[#allocation12 + $0x614] sm:$0xf0]  ;;  %v6882_v1 = vld [vmem:[#allocation12 + $0x78] sm:$0xf0] }
 0x22f   :  { %4705 = vmatpush.bf16.msrb.mxu3 %v7841_v31  ;;  %v7488_v31 = vld [vmem:[#allocation12 + $0x528] sm:$0xf] }
 0x230   :  { %4668 = vmatpush.bf16.msrb.mxu0 %v7425_v37  ;;  %4681 = vmatpush.bf16.msrb.mxu1 %v7553_v42  ;;  %v7777_v37 = vor.u32 %v8662_v27, %v7776_v24  ;;  %v4430_v42 = vpop.f32.mrf.mxu1  ;;  %v7489_v34 = vor.u32 %v8590_v28, %v7488_v31  ;;  %v8548_v27 = vld [vmem:[#allocation12 + $0x3ec] sm:$0xf]  ;;  %v6914_v31 = vld [vmem:[#allocation12 + $0xb8] sm:$0xf0] }
 0x231   :  { %v4454_v51 = vpop.f32.mrf.mxu3 }
 0x232   :  { %4693 = vmatpush.bf16.msrb.mxu2 %v7697_v44  ;;  %v8658_v44 = vld [vmem:[#allocation12 + $0x754] sm:$0xf0] }
 0x233   :  { %4706 = vmatpush.bf16.msrb.mxu3 %v7825_v26  ;;  %v8554_v26 = vld [vmem:[#allocation12 + $0x414] sm:$0xf0]  ;;  %v7761_v55 = vor.u32 %v8658_v44, %v7760_v43  ;;  %v8512_v43 = vld [vmem:[#allocation12 + $0x2cc] sm:$0xf]  ;;  %v7186_v44 = vld [vmem:[#allocation12 + $0x2d8] sm:$0xf0] }
 0x234   :  { %4669 = vmatpush.bf16.msrb.mxu0 %v7409_v25  ;;  %4682 = vmatpush.bf16.msrb.mxu1 %v7537_v32  ;;  %v8452_v25 = vld [vmem:[#allocation12 + $0xec] sm:$0xf]  ;;  %v4441_v32 = vpop.f32.mrf.mxu2 }
 0x235   :  { %v4442_v61 = vadd.f32 %v4441_v32, %v4429_v13  ;;  %v6949_v5 = vor.u32 %v8452_v25, %v6946_v48  ;;  %v7600_v13 = vld [vmem:[#allocation12 + $0x608] sm:$0xf]  ;;  %v7189_v25 = vor.u32 %v8512_v43, %v7186_v44  ;;  %v8472_v48 = vld [vmem:[#allocation12 + $0x18c] sm:$0xf] }
 0x236   :  { %4694 = vmatpush.bf16.msrb.mxu2 %v7681_v58  ;;  %v7616_v58 = vld [vmem:[#allocation12 + $0x628] sm:$0xf]  ;;  %v7601_v63 = vor.u32 %v8618_v15, %v7600_v13  ;;  %v8536_v13 = vld [vmem:[#allocation12 + $0x38c] sm:$0xf]  ;;  %v7282_v15 = vld [vmem:[#allocation12 + $0x398] sm:$0xf0] }
 0x237   :  { %4707 = vmatpush.bf16.msrb.mxu3 %v7809_v0  ;;  %v7345_v0 = vor.u32 %v8554_v26, %v7344_v4  ;;  %v9397_v59 = vadd.f32 %v4454_v51, %v4442_v61  ;;  %v7314_v26 = vld [vmem:[#allocation12 + $0x3d8] sm:$0xf0]  ;;  %v7029_v51 = vor.u32 %v8472_v48, %v7026_v54 }
 0x238   :  { %4670 = vmatpush.bf16.msrb.mxu0 %v7393_v7  ;;  %4683 = vmatpush.bf16.msrb.mxu1 %v7521_v10  ;;  %v8448_v7 = vld [vmem:[#allocation12 + $0xcc] sm:$0xf]  ;;  %v7617_v10 = vor.u32 %v8622_v39, %v7616_v58  ;;  %v7298_v61 = vld [vmem:[#allocation12 + $0x3b8] sm:$0xf0] }
 0x239   :  { %v6933_v24 = vor.u32 %v8448_v7, %v6930_v11  ;;  %v4456_v42 = vpop.f32.mrf.mxu3  ;;  %v8540_v39 = vld [vmem:[#allocation12 + $0x3ac] sm:$0xf]  ;;  %v7154_v11 = vld [vmem:[#allocation12 + $0x298] sm:$0xf0] }
 0x23a   :  { %4695 = vmatpush.bf16.msrb.mxu2 %v7665_v45  ;;  %v7058_v45 = vld [vmem:[#allocation12 + $0x1d8] sm:$0xf0]  ;;  %v8460_v42 = vld [vmem:[#allocation12 + $0x12c] sm:$0xf] }
 0x23b   :  { %4708 = vmatpush.bf16.msrb.mxu3 %v7793_v52  ;;  %v7728_v52 = vld [vmem:[#allocation12 + $0x708] sm:$0xf]  ;;  %v7061_v29 = vor.u32 %v8480_v12, %v7058_v45  ;;  %v6834_v54 = vld [vmem:[#allocation12 + $0x18] sm:$0xf0] }
 0x23c   :  { %4671 = vmatpush.bf16.msrb.mxu0 %v7377_v23  ;;  %4684 = vmatpush.bf16.msrb.mxu1 %v7505_v16  ;;  %v7202_v23 = vld [vmem:[#allocation12 + $0x2f8] sm:$0xf0]  ;;  %v4443_v28 = vpop.f32.mrf.mxu2  ;;  %v7729_v14 = vor.u32 %v8650_v18, %v7728_v52  ;;  %v8432_v18 = vld [vmem:[#allocation12 + $0x4c] sm:$0xf] }
 0x23d   :  { %v7330_v16 = vld [vmem:[#allocation12 + $0x3f8] sm:$0xf0] }
 0x23e   :  { %4696 = vmatpush.bf16.msrb.mxu2 %v7649_v30  ;;  %v8444_v30 = vld [vmem:[#allocation12 + $0xac] sm:$0xf]  ;;  %v7266_v28 = vld [vmem:[#allocation12 + $0x378] sm:$0xf0] }
 0x23f   :  { %4709 = vmatpush.bf16.msrb.mxu3 %v7777_v37  ;;  %v7205_v37 = vor.u32 %v8516_v20, %v7202_v23  ;;  %v6917_v4 = vor.u32 %v8444_v30, %v6914_v31  ;;  %v6866_v20 = vld [vmem:[#allocation12 + $0x58] sm:$0xf0]  ;;  %v8532_v31 = vld [vmem:[#allocation12 + $0x36c] sm:$0xf] }
 0x240   :  { %4672 = vmatpush.bf16.msrb.mxu0 %v7361_v21  ;;  %4685 = vmatpush.bf16.msrb.mxu1 %v7489_v34  ;;  %v7333_v21 = vor.u32 %v8548_v27, %v7330_v16  ;;  %v8544_v34 = vld [vmem:[#allocation12 + $0x3cc] sm:$0xf]  ;;  %v6994_v16 = vld [vmem:[#allocation12 + $0x158] sm:$0xf0]  ;;  %v7269_v44 = vor.u32 %v8532_v31, %v7266_v28 }
 0x241   :  { %v7317_v32 = vor.u32 %v8544_v34, %v7314_v26  ;;  %v8464_v27 = vld [vmem:[#allocation12 + $0x14c] sm:$0xf]  ;;  %v7138_v30 = vld [vmem:[#allocation12 + $0x278] sm:$0xf0] }
 0x242   :  { %4697 = vmatpush.bf16.msrb.mxu2 %v7633_v50  ;;  %v6898_v50 = vld [vmem:[#allocation12 + $0x98] sm:$0xf0]  ;;  %v8676_v28 = vld [vmem:[#allocation12 + $0x7ec] sm:$0xf] }
 0x243   :  { %4710 = vmatpush.bf16.msrb.mxu3 %v7761_v55  ;;  %v8508_v55 = vld [vmem:[#allocation12 + $0x2ac] sm:$0xf]  ;;  %v6901_v58 = vor.u32 %v8440_v46, %v6898_v50  ;;  %v7122_v34 = vld [vmem:[#allocation12 + $0x258] sm:$0xf0] }
 0x244   :  { %4673 = vmatpush.bf16.msrb.mxu0 %v7345_v0  ;;  %4686 = vmatpush.bf16.msrb.mxu1 %v7473_v2  ;;  %v8436_v0 = vld [vmem:[#allocation12 + $0x6c] sm:$0xf]  ;;  %v7173_v22 = vor.u32 %v8508_v55, %v7170_v35  ;;  %v4467_v7 = vpop.f32.mrf.mxu0  ;;  %v7250_v50 = vld [vmem:[#allocation12 + $0x358] sm:$0xf0] }
 0x245   :  { %v8468_v2 = vld [vmem:[#allocation12 + $0x16c] sm:$0xf]  ;;  %v4468_v12 = vadd.f32 %v4467_v7, %v9397_v59  ;;  %v6869_v59 = vor.u32 %v8432_v18, %v6866_v20  ;;  %v6962_v55 = vld [vmem:[#allocation12 + $0x118] sm:$0xf0] }
 0x246   :  { %4698 = vmatpush.bf16.msrb.mxu2 %v7617_v10  ;;  %v8504_v10 = vld [vmem:[#allocation12 + $0x28c] sm:$0xf]  ;;  %v4480_v45 = vpop.f32.mrf.mxu1  ;;  %v7442_v18 = vld [vmem:[#allocation12 + $0x4d8] sm:$0xf0] }
 0x247   :  { %4711 = vmatpush.bf16.msrb.mxu3 %v7745_v62  ;;  %4674 = vmatmul.bf16.vlgmr.msrb.gmra.mxu0 %v9356_v9  ;;  %v6885_v62 = vor.u32 %v8436_v0, %v6882_v1  ;;  %v4481_v23 = vadd.f32 %v4480_v45, %v4468_v12  ;;  %v8528_v46 = vld [vmem:[#allocation12 + $0x34c] sm:$0xf]  ;;  %v7586_v1 = vld [vmem:[#allocation12 + $0x5f8] sm:$0xf0] }
 0x248   :  { %4718 = vmatpush.bf16.msra.mxu0 %v6949_v5  ;;  %4731 = vmatpush.bf16.msra.mxu1 %v7077_v53  ;;  %v7010_v5 = vld [vmem:[#allocation12 + $0x178] sm:$0xf0]  ;;  %v7301_v53 = vor.u32 %v8540_v39, %v7298_v61  ;;  %v8612_v61 = vld [vmem:[#allocation12 + $0x5ec] sm:$0xf]  ;;  %v7253_v0 = vor.u32 %v8528_v46, %v7250_v50 }
 0x249   :  { %4687 = vmatmul.bf16.vlgmr.msrb.gmra.mxu1 %v9359_v6  ;;  %v7013_v52 = vor.u32 %v8468_v2, %v7010_v5  ;;  %v7458_v39 = vld [vmem:[#allocation12 + $0x4f8] sm:$0xf0]  ;;  %v8608_v20 = vld [vmem:[#allocation12 + $0x5cc] sm:$0xf] }
 0x24a   :  { %4699 = vmatpush.bf16.msrb.mxu2 %v7601_v63  ;;  %v8500_v63 = vld [vmem:[#allocation12 + $0x26c] sm:$0xf]  ;;  %v7106_v2 = vld [vmem:[#allocation12 + $0x238] sm:$0xf0] }
 0x24b   :  { %4712 = vmatpush.bf16.msrb.mxu3 %v7729_v14  ;;  %v6997_v14 = vor.u32 %v8464_v27, %v6994_v16  ;;  %v7141_v41 = vor.u32 %v8500_v63, %v7138_v30  ;;  %v7090_v16 = vld [vmem:[#allocation12 + $0x218] sm:$0xf0]  ;;  %v8644_v30 = vld [vmem:[#allocation12 + $0x6ec] sm:$0xf] }
 0x24c   :  { %4719 = vmatpush.bf16.msra.mxu0 %v6933_v24  ;;  %4732 = vmatpush.bf16.msra.mxu1 %v7061_v29  ;;  %v7157_v24 = vor.u32 %v8504_v10, %v7154_v11  ;;  %v7285_v29 = vor.u32 %v8536_v13, %v7282_v15  ;;  %v4469_v43 = vpop.f32.mrf.mxu0  ;;  %v8524_v10 = vld [vmem:[#allocation12 + $0x32c] sm:$0xf]  ;;  %v7234_v11 = vld [vmem:[#allocation12 + $0x338] sm:$0xf0]  ;;  %v7589_v15 = vor.u32 %v8612_v61, %v7586_v1 }
 0x24d   :  { %4700 = vmatmul.bf16.vlgmr.msrb.gmra.mxu2 %v9365_v19  ;;  %v7237_v27 = vor.u32 %v8524_v10, %v7234_v11  ;;  %v7218_v63 = vld [vmem:[#allocation12 + $0x318] sm:$0xf0]  ;;  %v8640_v46 = vld [vmem:[#allocation12 + $0x6cc] sm:$0xf] }
 0x24e   :  { %4744 = vmatpush.bf16.msra.mxu2 %v7205_v37  ;;  %4713 = vmatmul.bf16.vlgmr.msrb.gmra.mxu3 %v9367_v38  ;;  %v8428_v37 = vld [vmem:[#allocation12 + $0x2c] sm:$0xf]  ;;  %v4482_v26 = vpop.f32.mrf.mxu1  ;;  %v7698_v50 = vld [vmem:[#allocation12 + $0x6d8] sm:$0xf0] }
 0x24f   :  { %4757 = vmatpush.bf16.msra.mxu3 %v7333_v21  ;;  %v6978_v21 = vld [vmem:[#allocation12 + $0x138] sm:$0xf0]  ;;  %v8668_v1 = vld [vmem:[#allocation12 + $0x7ac] sm:$0xf] }
 0x250   :  { %4720 = vmatpush.bf16.msra.mxu0 %v6917_v4  ;;  %4733 = vmatpush.bf16.msra.mxu1 %v7045_v8  ;;  %v8496_v4 = vld [vmem:[#allocation12 + $0x24c] sm:$0xf]  ;;  %v6853_v8 = vor.u32 %v8428_v37, %v6850_v40  ;;  %v6981_v48 = vor.u32 %v8460_v42, %v6978_v21  ;;  %v7426_v42 = vld [vmem:[#allocation12 + $0x4b8] sm:$0xf0] }
 0x251   :  { %v7125_v35 = vor.u32 %v8496_v4, %v7122_v34  ;;  %v4506_v7 = vpop.f32.mrf.mxu3  ;;  %v8604_v4 = vld [vmem:[#allocation12 + $0x5ac] sm:$0xf]  ;;  %v7554_v34 = vld [vmem:[#allocation12 + $0x5b8] sm:$0xf0] }
 0x252   :  { %4745 = vmatpush.bf16.msra.mxu2 %v7189_v25  ;;  %v8424_v25 = vld [vmem:[#allocation12 + $0xc] sm:$0xf]  ;;  %v7522_v11 = vld [vmem:[#allocation12 + $0x578] sm:$0xf0] }
 0x253   :  { %4758 = vmatpush.bf16.msra.mxu3 %v7317_v32  ;;  %v8456_v32 = vld [vmem:[#allocation12 + $0x10c] sm:$0xf] }
 0x254   :  { %4721 = vmatpush.bf16.msra.mxu0 %v6901_v58  ;;  %4734 = vmatpush.bf16.msra.mxu1 %v7029_v51  ;;  %v8580_v58 = vld [vmem:[#allocation12 + $0x4ec] sm:$0xf]  ;;  %v4493_v51 = vpop.f32.mrf.mxu2  ;;  %v6965_v12 = vor.u32 %v8456_v32, %v6962_v55  ;;  %v7557_v32 = vor.u32 %v8604_v4, %v7554_v34 }
 0x255   :  { %v4494_v5 = vadd.f32 %v4493_v51, %v4481_v23  ;;  %v7461_v45 = vor.u32 %v8580_v58, %v7458_v39  ;;  %v8488_v23 = vld [vmem:[#allocation12 + $0x20c] sm:$0xf]  ;;  %v7538_v39 = vld [vmem:[#allocation12 + $0x598] sm:$0xf0] }
 0x256   :  { %4746 = vmatpush.bf16.msra.mxu2 %v7173_v22  ;;  %v8492_v22 = vld [vmem:[#allocation12 + $0x22c] sm:$0xf]  ;;  %v7093_v40 = vor.u32 %v8488_v23, %v7090_v16  ;;  %v7682_v51 = vld [vmem:[#allocation12 + $0x6b8] sm:$0xf0] }
 0x257   :  { %4759 = vmatpush.bf16.msra.mxu3 %v7301_v53  ;;  %v6837_v53 = vor.u32 %v8424_v25, %v6834_v54  ;;  %v9404_v13 = vadd.f32 %v4506_v7, %v4494_v5  ;;  %v7826_v54 = vld [vmem:[#allocation12 + $0x7d8] sm:$0xf0]  ;;  %v8568_v55 = vld [vmem:[#allocation12 + $0x48c] sm:$0xf] }
 0x258   :  { %4722 = vmatpush.bf16.msra.mxu0 %v6885_v62  ;;  %4735 = vmatpush.bf16.msra.mxu1 %v7013_v52  ;;  %v8576_v62 = vld [vmem:[#allocation12 + $0x4cc] sm:$0xf]  ;;  %v7109_v52 = vor.u32 %v8492_v22, %v7106_v2  ;;  %v7810_v22 = vld [vmem:[#allocation12 + $0x7b8] sm:$0xf0] }
 0x259   :  { %v7445_v31 = vor.u32 %v8576_v62, %v7442_v18  ;;  %v4508_v26 = vpop.f32.mrf.mxu3  ;;  %v8600_v58 = vld [vmem:[#allocation12 + $0x58c] sm:$0xf]  ;;  %v7394_v7 = vld [vmem:[#allocation12 + $0x478] sm:$0xf0]  ;;  %vm4822_vm5 = vcmp.gt.f32.partialorder %v9404_v13, 0.0 }
 0x25a   :  { %4747 = vmatpush.bf16.msra.mxu2 %v7157_v24  ;;  %v7570_v24 = vld [vmem:[#allocation12 + $0x5d8] sm:$0xf0]  ;;  %v7541_v2 = vor.u32 %v8600_v58, %v7538_v39  ;;  %v8564_v5 = vld [vmem:[#allocation12 + $0x46c] sm:$0xf] }
 0x25b   :  { %4760 = vmatpush.bf16.msra.mxu3 %v7285_v29  ;;  %v8520_v29 = vld [vmem:[#allocation12 + $0x30c] sm:$0xf]  ;;  %v7573_v37 = vor.u32 %v8608_v20, %v7570_v24  ;;  %v7634_v26 = vld [vmem:[#allocation12 + $0x658] sm:$0xf0] }
 0x25c   :  { %4723 = vmatpush.bf16.msra.mxu0 %v6869_v59  ;;  %4736 = vmatpush.bf16.msra.mxu1 %v6997_v14  ;;  %v7714_v59 = vld [vmem:[#allocation12 + $0x6f8] sm:$0xf0]  ;;  %v4495_v21 = vpop.f32.mrf.mxu2  ;;  %v7221_v43 = vor.u32 %v8520_v29, %v7218_v63  ;;  %v8596_v10 = vld [vmem:[#allocation12 + $0x56c] sm:$0xf] }
 0x25d   :  { %v7842_v14 = vld [vmem:[#allocation12 + $0x7f8] sm:$0xf0]  ;;  %v8632_v62 = vld [vmem:[#allocation12 + $0x68c] sm:$0xf]  ;;  %v7525_v20 = vor.u32 %v8596_v10, %v7522_v11 }
 0x25e   :  { %4748 = vmatpush.bf16.msra.mxu2 %v7141_v41  ;;  %v8572_v41 = vld [vmem:[#allocation12 + $0x4ac] sm:$0xf]  ;;  %v7506_v29 = vld [vmem:[#allocation12 + $0x558] sm:$0xf0] }
 0x25f   :  { %4761 = vmatpush.bf16.msra.mxu3 %v7269_v44  ;;  %v7717_v44 = vor.u32 %v8644_v30, %v7714_v59  ;;  %v7429_v25 = vor.u32 %v8572_v41, %v7426_v42  ;;  %v8664_v18 = vld [vmem:[#allocation12 + $0x78c] sm:$0xf]  ;;  %v7650_v59 = vld [vmem:[#allocation12 + $0x678] sm:$0xf0] }
 0x260   :  { %4724 = vmatpush.bf16.msra.mxu0 %v6853_v8  ;;  %4737 = vmatpush.bf16.msra.mxu1 %v6981_v48  ;;  %v7845_v8 = vor.u32 %v8676_v28, %v7842_v14  ;;  %v8672_v48 = vld [vmem:[#allocation12 + $0x7cc] sm:$0xf]  ;;  %v7778_v14 = vld [vmem:[#allocation12 + $0x778] sm:$0xf0] }
 0x261   :  { %v7829_v61 = vor.u32 %v8672_v48, %v7826_v54  ;;  %v8560_v24 = vld [vmem:[#allocation12 + $0x44c] sm:$0xf]  ;;  %v7362_v41 = vld [vmem:[#allocation12 + $0x438] sm:$0xf0] }
 0x262   :  { %4749 = vmatpush.bf16.msra.mxu2 %v7125_v35  ;;  %v7410_v35 = vld [vmem:[#allocation12 + $0x498] sm:$0xf0]  ;;  %v8592_v16 = vld [vmem:[#allocation12 + $0x54c] sm:$0xf] }
 0x263   :  { %4762 = vmatpush.bf16.msra.mxu3 %v7253_v0  ;;  %v7413_v0 = vor.u32 %v8568_v55, %v7410_v35  ;;  %v8628_v30 = vld [vmem:[#allocation12 + $0x66c] sm:$0xf] }
 0x264   :  { %4725 = vmatpush.bf16.msra.mxu0 %v6837_v53  ;;  %4738 = vmatpush.bf16.msra.mxu1 %v6965_v12  ;;  %v9410_v12 = vpop.f32.mrf.mxu0  ;;  %v8660_v28 = vld [vmem:[#allocation12 + $0x76c] sm:$0xf]  ;;  %v7653_v42 = vor.u32 %v8628_v30, %v7650_v59  ;;  %v8701_v30 = vld [vmem:[#allocation15 + $0xb0] sm:$0xff] }
 0x265   :  { %v8588_v21 = vld [vmem:[#allocation12 + $0x52c] sm:$0xf]  ;;  %v7781_v4 = vor.u32 %v8660_v28, %v7778_v14  ;;  %v8709_v59 = vld [vmem:[#allocation15 + $0xf0] sm:$0xff] }
 0x266   :  { %4750 = vmatpush.bf16.msra.mxu2 %v7109_v52  ;;  %v7397_v52 = vor.u32 %v8564_v5, %v7394_v7  ;;  %v8624_v34 = vld [vmem:[#allocation12 + $0x64c] sm:$0xf]  ;;  %v8686_v5 = vld [vmem:[#allocation15 + $0x38] sm:$0xff] }
 0x267   :  { %4763 = vmatpush.bf16.msra.mxu3 %v7237_v27  ;;  %4726 = vmatmul.bf16.vlgmr.msra.gmra.mxu0 %v9319_v36  ;;  %v7701_v36 = vor.u32 %v8640_v46, %v7698_v50  ;;  %v7378_v27 = vld [vmem:[#allocation12 + $0x458] sm:$0xf0]  ;;  %v8656_v50 = vld [vmem:[#allocation12 + $0x74c] sm:$0xf]  ;;  %v7637_v55 = vor.u32 %v8624_v34, %v7634_v26 }
 0x268   :  { %4770 = vmatpush.bf16.msrb.mxu0 %v7461_v45  ;;  %4783 = vmatpush.bf16.msrb.mxu1 %v7589_v15  ;;  %v7813_v45 = vor.u32 %v8668_v1, %v7810_v22  ;;  %v9412_v15 = vpop.f32.mrf.mxu1  ;;  %v8552_v54 = vld [vmem:[#allocation12 + $0x40c] sm:$0xf]  ;;  %v7746_v22 = vld [vmem:[#allocation12 + $0x738] sm:$0xf0] }
 0x269   :  { %4739 = vmatmul.bf16.vlgmr.msra.gmra.mxu1 %v9322_v49  ;;  %v8636_v49 = vld [vmem:[#allocation12 + $0x6ac] sm:$0xf]  ;;  %v8694_v7 = vld [vmem:[#allocation15 + $0x78] sm:$0xff] }
 0x26a   :  { %4751 = vmatpush.bf16.msra.mxu2 %v7093_v40  ;;  %v7685_v53 = vor.u32 %v8636_v49, %v7682_v51  ;;  %v8556_v40 = vld [vmem:[#allocation12 + $0x42c] sm:$0xf]  ;;  %v7618_v49 = vld [vmem:[#allocation12 + $0x638] sm:$0xf0] }
 0x26b   :  { %4764 = vmatpush.bf16.msra.mxu3 %v7221_v43  ;;  %v7490_v43 = vld [vmem:[#allocation12 + $0x538] sm:$0xf0]  ;;  %v7365_v46 = vor.u32 %v8556_v40, %v7362_v41  ;;  %v8584_v35 = vld [vmem:[#allocation12 + $0x50c] sm:$0xf] }
 0x26c   :  { %4771 = vmatpush.bf16.msrb.mxu0 %v7445_v31  ;;  %4784 = vmatpush.bf16.msrb.mxu1 %v7573_v37  ;;  %v7381_v31 = vor.u32 %v8560_v24, %v7378_v27  ;;  %v7509_v37 = vor.u32 %v8592_v16, %v7506_v29  ;;  %v7493_v48 = vor.u32 %v8588_v21, %v7490_v43  ;;  %v8652_v1 = vld [vmem:[#allocation12 + $0x72c] sm:$0xf]  ;;  %v8702_v27 = vld [vmem:[#allocation15 + $0xb8] sm:$0xff]  ;;  %v8689_v21 = vld [vmem:[#allocation15 + $0x50] sm:$0xff] }
 0x26d   :  { %4752 = vmatmul.bf16.vlgmr.msra.gmra.mxu2 %v9328_v3  ;;  %v7666_v3 = vld [vmem:[#allocation12 + $0x698] sm:$0xf0]  ;;  %v7749_v10 = vor.u32 %v8652_v1, %v7746_v22  ;;  %v8616_v11 = vld [vmem:[#allocation12 + $0x60c] sm:$0xf] }
 0x26e   :  { %4796 = vmatpush.bf16.msrb.mxu2 %v7717_v44  ;;  %4765 = vmatmul.bf16.vlgmr.msra.gmra.mxu3 %v9330_v17  ;;  %v7794_v17 = vld [vmem:[#allocation12 + $0x798] sm:$0xf0]  ;;  %v7669_v23 = vor.u32 %v8632_v62, %v7666_v3  ;;  %v4521_v44 = vpop.f32.mrf.mxu0  ;;  %v8648_v62 = vld [vmem:[#allocation12 + $0x70c] sm:$0xf] }
 0x26f   :  { %4809 = vmatpush.bf16.msrb.mxu3 %v7845_v8  ;;  %v7797_v63 = vor.u32 %v8664_v18, %v7794_v17  ;;  %v7730_v3 = vld [vmem:[#allocation12 + $0x718] sm:$0xf0]  ;;  %v8693_v18 = vld [vmem:[#allocation15 + $0x70] sm:$0xff]  ;;  %v8684_v29 = vld [vmem:[#allocation15 + $0x28] sm:$0xff]  ;;  %v2847_v44 = vstv %s5523_s5 }
 0x270   :  { %4772 = vmatpush.bf16.msrb.mxu0 %v7429_v25  ;;  %4785 = vmatpush.bf16.msrb.mxu1 %v7557_v32  ;;  %v4534_v8 = vpop.f32.mrf.mxu1  ;;  %v7762_v25 = vld [vmem:[#allocation12 + $0x758] sm:$0xf0]  ;;  %v9414_v58 = vpop.f32.mrf.mxu2  ;;  %v7733_v24 = vor.u32 %v8648_v62, %v7730_v3  ;;  %v8708_v14 = vld [vmem:[#allocation15 + $0xe8] sm:$0xff]  ;;  %v8703_v62 = vld [vmem:[#allocation15 + $0xc0] sm:$0xff] }
 0x271   :  { %v7346_v32 = vld [vmem:[#allocation12 + $0x418] sm:$0xf0]  ;;  %v7765_v39 = vor.u32 %v8656_v50, %v7762_v25  ;;  %v9416_v51 = vpop.f32.mrf.mxu3  ;;  %v8680_v8 = vld [vmem:[#allocation15 + $0x8] sm:$0xff]  ;;  %v2848_v50 = vmul.f32 %v2847_v44, %v9282_v60  ;;  %v3119_v25 = vperm.slane %v9392_v57, 1 }
 0x272   :  { %4797 = vmatpush.bf16.msrb.mxu2 %v7701_v36  ;;  %v7474_v36 = vld [vmem:[#allocation12 + $0x518] sm:$0xf0]  ;;  %v8696_v1 = vld [vmem:[#allocation15 + $0x88] sm:$0xff] }
 0x273   :  { %4810 = vmatpush.bf16.msrb.mxu3 %v7829_v61  ;;  %v8620_v61 = vld [vmem:[#allocation12 + $0x62c] sm:$0xf]  ;;  %v8710_v16 = vld [vmem:[#allocation15 + $0xf8] sm:$0xff]  ;;  %v2852_v57 = vsel %vm2843_vm1, %v9282_v60, %v2848_v50  ;;  %v8717_v60 = vld [vmem:[#allocation16 + $0x30] sm:$0xff] }
 0x274   :  { %4773 = vmatpush.bf16.msrb.mxu0 %v7413_v0  ;;  %4786 = vmatpush.bf16.msrb.mxu1 %v7541_v2  ;;  %v7349_v0 = vor.u32 %v8552_v54, %v7346_v32  ;;  %v7477_v2 = vor.u32 %v8584_v35, %v7474_v36  ;;  %v8682_v40 = vld [vmem:[#allocation15 + $0x18] sm:$0xff]  ;;  %v2849_v54 = vmul.f32 %v2847_v44, %v9315_v33  ;;  %v8679_v36 = vld [vmem:[#allocation15] sm:$0xff] }
 0x275   :  { %v8690_v41 = vld [vmem:[#allocation15 + $0x58] sm:$0xff]  ;;  %v8719_v50 = vld [vmem:[#allocation16 + $0x40] sm:$0xff] }
 0x276   :  { %4798 = vmatpush.bf16.msrb.mxu2 %v7685_v53  ;;  %v7621_v53 = vor.u32 %v8620_v61, %v7618_v49  ;;  %v8698_v43 = vld [vmem:[#allocation15 + $0x98] sm:$0xff]  ;;  %v4520_v49 = vadd.f32 %v9410_v12, %v3119_v25  ;;  %v2853_v22 = vsel %vm2844_vm2, %v9315_v33, %v2849_v54  ;;  %v8725_v33 = vld [vmem:[#allocation16 + $0x70] sm:$0xff] }
 0x277   :  { %4811 = vmatpush.bf16.msrb.mxu3 %v7813_v45  ;;  %v7602_v45 = vld [vmem:[#allocation12 + $0x618] sm:$0xf0] }
 0x278   :  { %4774 = vmatpush.bf16.msrb.mxu0 %v7397_v52  ;;  %4787 = vmatpush.bf16.msrb.mxu1 %v7525_v20  ;;  %v8685_v52 = vld [vmem:[#allocation15 + $0x30] sm:$0xff]  ;;  %v7605_v17 = vor.u32 %v8616_v11, %v7602_v45  ;;  %v4547_v20 = vpop.f32.mrf.mxu2  ;;  %v8706_v34 = vld [vmem:[#allocation15 + $0xd8] sm:$0xff]  ;;  %v4533_v12 = vadd.f32 %v9412_v15, %v4520_v49  ;;  %v8695_v11 = vld [vmem:[#allocation15 + $0x80] sm:$0xff] }
 0x279   :  { %v8718_v61 = vld [vmem:[#allocation16 + $0x38] sm:$0xff]  ;;  %v8716_v15 = vld [vmem:[#allocation16 + $0x28] sm:$0xff] }
 0x27a   :  { %4799 = vmatpush.bf16.msrb.mxu2 %v7669_v23  ;;  %v4560_v23 = vpop.f32.mrf.mxu3  ;;  %v8734_v3 = vld [vmem:[#allocation16 + $0xb8] sm:$0xff] }
 0x27b   :  { %4812 = vmatpush.bf16.msrb.mxu3 %v7797_v63  ;;  %v8692_v63 = vld [vmem:[#allocation15 + $0x68] sm:$0xff]  ;;  %v8733_v23 = vld [vmem:[#allocation16 + $0xb0] sm:$0xff] }
 0x27c   :  { %4775 = vmatpush.bf16.msrb.mxu0 %v7381_v31  ;;  %4788 = vmatpush.bf16.msrb.mxu1 %v7509_v37  ;;  %v8691_v31 = vld [vmem:[#allocation15 + $0x60] sm:$0xff] }
 0x27e   :  { %4800 = vmatpush.bf16.msrb.mxu2 %v7653_v42  ;;  %v8707_v42 = vld [vmem:[#allocation15 + $0xe0] sm:$0xff] }
 0x27f   :  { %4813 = vmatpush.bf16.msrb.mxu3 %v7781_v4 }
 0x280   :  { %4776 = vmatpush.bf16.msrb.mxu0 %v7365_v46  ;;  %4789 = vmatpush.bf16.msrb.mxu1 %v7493_v48  ;;  %v8688_v46 = vld [vmem:[#allocation15 + $0x48] sm:$0xff]  ;;  %v8697_v48 = vld [vmem:[#allocation15 + $0x90] sm:$0xff] }
 0x282   :  { %4801 = vmatpush.bf16.msrb.mxu2 %v7637_v55  ;;  %v8705_v55 = vld [vmem:[#allocation15 + $0xd0] sm:$0xff] }
 0x283   :  { %4814 = vmatpush.bf16.msrb.mxu3 %v7765_v39  ;;  %v8687_v39 = vld [vmem:[#allocation15 + $0x40] sm:$0xff] }
 0x284   :  { %4777 = vmatpush.bf16.msrb.mxu0 %v7349_v0  ;;  %4790 = vmatpush.bf16.msrb.mxu1 %v7477_v2  ;;  %v9422_v28 = vpop.f32.mrf.mxu0  ;;  %v8726_v0 = vld [vmem:[#allocation16 + $0x78] sm:$0xff]  ;;  %v8704_v2 = vld [vmem:[#allocation15 + $0xc8] sm:$0xff] }
 0x286   :  { %4802 = vmatpush.bf16.msrb.mxu2 %v7621_v53  ;;  %v9424_v37 = vpop.f32.mrf.mxu1  ;;  %v2851_v53 = vmul.f32 %v2847_v44, %v9388_v47 }
 0x287   :  { %4815 = vmatpush.bf16.msrb.mxu3 %v7749_v10  ;;  %4778 = vmatmul.bf16.vlgmr.msrb.gmra.mxu0 %v9356_v9  ;;  %v8683_v9 = vld [vmem:[#allocation15 + $0x20] sm:$0xff]  ;;  %v2857_v10 = vpack.c.bf16 %v2853_v22, %v2853_v22 }
 0x288   :  { %5099 = vmatpush.bf16.msra.mxu0 %v8686_v5  ;;  %5112 = vmatpush.bf16.msra.mxu1 %v8694_v7  ;;  %v2850_v5 = vmul.f32 %v2847_v44, %v9372_v56  ;;  %v2856_v7 = vpack.c.bf16 %v2852_v57, %v2852_v57  ;;  %v2855_v20 = vsel %vm2846_vm4, %v9388_v47, %v2851_v53  ;;  %v8723_v47 = vld [vmem:[#allocation16 + $0x60] sm:$0xff] }
 0x289   :  { %4791 = vmatmul.bf16.vlgmr.msrb.gmra.mxu1 %v9359_v6  ;;  %v8700_v6 = vld [vmem:[#allocation15 + $0xa8] sm:$0xff] }
 0x28a   :  { %4803 = vmatpush.bf16.msrb.mxu2 %v7605_v17 }
 0x28b   :  { %4816 = vmatpush.bf16.msrb.mxu3 %v7733_v24  ;;  %v8724_v24 = vld [vmem:[#allocation16 + $0x68] sm:$0xff] }
 0x28c   :  { %5100 = vmatpush.bf16.msra.mxu0 %v8685_v52  ;;  %5113 = vmatpush.bf16.msra.mxu1 %v8693_v18  ;;  %v4573_v4 = vpop.f32.mrf.mxu0  ;;  %v2854_v52 = vsel %vm2845_vm3, %v9372_v56, %v2850_v5  ;;  %v4546_v18 = vadd.f32 %v9414_v58, %v4533_v12  ;;  %v8715_v56 = vld [vmem:[#allocation16 + $0x20] sm:$0xff] }
 0x28d   :  { %4804 = vmatmul.bf16.vlgmr.msrb.gmra.mxu2 %v9365_v19  ;;  %v8699_v19 = vld [vmem:[#allocation15 + $0xa0] sm:$0xff]  ;;  %v8729_v4 = vld [vmem:[#allocation16 + $0x90] sm:$0xff] }
 0x28e   :  { %5125 = vmatpush.bf16.msra.mxu2 %v8702_v27  ;;  %4817 = vmatmul.bf16.vlgmr.msrb.gmra.mxu3 %v9367_v38  ;;  %v8681_v38 = vld [vmem:[#allocation15 + $0x10] sm:$0xff]  ;;  %v4586_v26 = vpop.f32.mrf.mxu1  ;;  %v2858_v27 = vpack.c.bf16 %v2854_v52, %v2854_v52 }
 0x28f   :  { %5138 = vmatpush.bf16.msra.mxu3 %v8710_v16  ;;  %v2859_v16 = vpack.c.bf16 %v2855_v20, %v2855_v20 }
 0x290   :  { %5101 = vmatpush.bf16.msra.mxu0 %v8684_v29  ;;  %5114 = vmatpush.bf16.msra.mxu1 %v8692_v63  ;;  %v9430_v32 = vpop.f32.mrf.mxu2  ;;  %v4559_v29 = vadd.f32 %v9416_v51, %v4546_v18  ;;  %v8732_v63 = vld [vmem:[#allocation16 + $0xa8] sm:$0xff]  ;;  %v8731_v51 = vld [vmem:[#allocation16 + $0xa0] sm:$0xff] }
 0x291   :  { %v9433_v35 = vpop.f32.mrf.mxu3 }
 0x292   :  { %5126 = vmatpush.bf16.msra.mxu2 %v8701_v30  ;;  %v4572_v58 = vadd.f32 %v9422_v28, %v4559_v29  ;;  %v8713_v28 = vld [vmem:[#allocation16 + $0x10] sm:$0xff] }
 0x293   :  { %5139 = vmatpush.bf16.msra.mxu3 %v8709_v59  ;;  %v8737_v29 = vld [vmem:[#allocation16 + $0xd0] sm:$0xff] }
 0x294   :  { %5102 = vmatpush.bf16.msra.mxu0 %v8683_v9  ;;  %5115 = vmatpush.bf16.msra.mxu1 %v8691_v31  ;;  %v8714_v9 = vld [vmem:[#allocation16 + $0x18] sm:$0xff]  ;;  %v4585_v31 = vadd.f32 %v9424_v37, %v4572_v58  ;;  %v8712_v37 = vld [vmem:[#allocation16 + $0x8] sm:$0xff] }
 0x296   :  { %5127 = vmatpush.bf16.msra.mxu2 %v8700_v6  ;;  %v8722_v6 = vld [vmem:[#allocation16 + $0x58] sm:$0xff] }
 0x297   :  { %5140 = vmatpush.bf16.msra.mxu3 %v8708_v14  ;;  %v4598_v14 = vadd.f32 %v9430_v32, %v4585_v31 }
 0x298   :  { %5103 = vmatpush.bf16.msra.mxu0 %v8682_v40  ;;  %5116 = vmatpush.bf16.msra.mxu1 %v8690_v41  ;;  %v4599_v45 = vpop.f32.mrf.mxu2  ;;  %v8721_v40 = vld [vmem:[#allocation16 + $0x50] sm:$0xff]  ;;  %v8730_v41 = vld [vmem:[#allocation16 + $0x98] sm:$0xff] }
 0x299   :  { %v4612_v17 = vpop.f32.mrf.mxu3  ;;  %v8742_v45 = vld [vmem:[#allocation16 + $0xf8] sm:$0xff] }
 0x29a   :  { %5128 = vmatpush.bf16.msra.mxu2 %v8699_v19  ;;  %v9452_v19 = vstv %s5525_s18 }
 0x29b   :  { %5141 = vmatpush.bf16.msra.mxu3 %v8707_v42  ;;  %v4611_v42 = vadd.f32 %v9433_v35, %v4598_v14  ;;  %v4827_v44 = vmul.f32 %v9452_v19, %v9404_v13  ;;  %v8727_v35 = vld [vmem:[#allocation16 + $0x80] sm:$0xff] }
 0x29c   :  { %5104 = vmatpush.bf16.msra.mxu0 %v8681_v38  ;;  %5117 = vmatpush.bf16.msra.mxu1 %v8689_v21 }
 0x29d   :  { %vm4823_vm6 = vcmp.gt.f32.partialorder %v4611_v42, 0.0  ;;  %v4831_v25 = vsel %vm4822_vm5, %v9404_v13, %v4827_v44 }
 0x29e   :  { %5129 = vmatpush.bf16.msra.mxu2 %v8698_v43  ;;  %v8720_v43 = vld [vmem:[#allocation16 + $0x48] sm:$0xff]  ;;  %v4835_v32 = vpack.c.bf16 %v4831_v25, %v4831_v25 }
 0x29f   :  { %5142 = vmatpush.bf16.msra.mxu3 %v8706_v34  ;;  %v4828_v34 = vmul.f32 %v9452_v19, %v4611_v42 }
 0x2a0   :  { %5105 = vmatpush.bf16.msra.mxu0 %v8680_v8  ;;  %5118 = vmatpush.bf16.msra.mxu1 %v8688_v46  ;;  %v8711_v46 = vld [vmem:[#allocation16] sm:$0xff] }
 0x2a1   :  { %v4832_v54 = vsel %vm4823_vm6, %v4611_v42, %v4828_v34 }
 0x2a2   :  { %5130 = vmatpush.bf16.msra.mxu2 %v8697_v48  ;;  %v8728_v48 = vld [vmem:[#allocation16 + $0x88] sm:$0xff] }
 0x2a3   :  { %5143 = vmatpush.bf16.msra.mxu3 %v8705_v55  ;;  %v4836_v55 = vpack.c.bf16 %v4832_v54, %v4832_v54 }
 0x2a4   :  { %5106 = vmatpush.bf16.msra.mxu0 %v8679_v36  ;;  %5119 = vmatpush.bf16.msra.mxu1 %v8687_v39  ;;  %v4623_v30 = vpop.f32.mrf.mxu0  ;;  %v8768_v36 = vld [vmem:[#allocation13] sm:$0xf] }
 0x2a5   :  { %v3120_v39 = vperm.slane %v8768_v36, 2 }
 0x2a6   :  { %5131 = vmatpush.bf16.msra.mxu2 %v8696_v1  ;;  %v4636_v59 = vpop.f32.mrf.mxu1 }
 0x2a7   :  { %5144 = vmatpush.bf16.msra.mxu3 %v8704_v2  ;;  %5107 = vmatmul.bf16.vlgmr.msra.gmra.mxu0 %v2856_v7  ;;  %v4624_v49 = vadd.f32 %v4623_v30, %v3120_v39 }
 0x2a8   :  { %5413 = vmatpush.bf16.msrb.mxu0 %v8718_v61  ;;  %5426 = vmatpush.bf16.msrb.mxu1 %v8726_v0 }
 0x2a9   :  { %5120 = vmatmul.bf16.vlgmr.msra.gmra.mxu1 %v2857_v10  ;;  %v4637_v0 = vadd.f32 %v4636_v59, %v4624_v49  ;;  %v8735_v59 = vld [vmem:[#allocation16 + $0xc0] sm:$0xff] }
 0x2aa   :  { %5132 = vmatpush.bf16.msra.mxu2 %v8695_v11 }
 0x2ab   :  { %5145 = vmatpush.bf16.msra.mxu3 %v8703_v62 }
 0x2ac   :  { %5414 = vmatpush.bf16.msrb.mxu0 %v8717_v60  ;;  %5427 = vmatpush.bf16.msrb.mxu1 %v8725_v33  ;;  %v4625_v38 = vpop.f32.mrf.mxu0 }
 0x2ad   :  { %5133 = vmatmul.bf16.vlgmr.msra.gmra.mxu2 %v2858_v27 }
 0x2ae   :  { %5439 = vmatpush.bf16.msrb.mxu2 %v8734_v3  ;;  %5146 = vmatmul.bf16.vlgmr.msra.gmra.mxu3 %v2859_v16  ;;  %v4638_v21 = vpop.f32.mrf.mxu1  ;;  %v8741_v3 = vld [vmem:[#allocation16 + $0xf0] sm:$0xff]  ;;  %v8738_v16 = vld [vmem:[#allocation16 + $0xd8] sm:$0xff] }
 0x2af   :  { %5452 = vmatpush.bf16.msrb.mxu3 %v8742_v45 }
 0x2b0   :  { %5415 = vmatpush.bf16.msrb.mxu0 %v8716_v15  ;;  %5428 = vmatpush.bf16.msrb.mxu1 %v8724_v24  ;;  %v4649_v26 = vpop.f32.mrf.mxu2  ;;  %v8740_v15 = vld [vmem:[#allocation16 + $0xe8] sm:$0xff]  ;;  %v8739_v24 = vld [vmem:[#allocation16 + $0xe0] sm:$0xff] }
 0x2b1   :  { %v4662_v8 = vpop.f32.mrf.mxu3  ;;  %v4650_v13 = vadd.f32 %v4649_v26, %v4637_v0 }
 0x2b2   :  { %5440 = vmatpush.bf16.msrb.mxu2 %v8733_v23 }
 0x2b3   :  { %v4663_v2 = vadd.f32 %v4662_v8, %v4650_v13  ;;  %5453 = vmatpush.bf16.msrb.mxu3 %v8741_v3 }
 0x2b4   :  { %5416 = vmatpush.bf16.msrb.mxu0 %v8715_v56  ;;  %5429 = vmatpush.bf16.msrb.mxu1 %v8723_v47  ;;  %v8736_v47 = vld [vmem:[#allocation16 + $0xc8] sm:$0xff] }
 0x2b6   :  { %5441 = vmatpush.bf16.msrb.mxu2 %v8732_v63 }
 0x2b7   :  { %5454 = vmatpush.bf16.msrb.mxu3 %v8740_v15 }
 0x2b8   :  { %5417 = vmatpush.bf16.msrb.mxu0 %v8714_v9  ;;  %5430 = vmatpush.bf16.msrb.mxu1 %v8722_v6  ;;  %v4651_v61 = vpop.f32.mrf.mxu2  ;;  %v3121_v9 = vperm.slane %v8768_v36, 3 }
 0x2b9   :  { %v4664_v57 = vpop.f32.mrf.mxu3 }
 0x2ba   :  { %5442 = vmatpush.bf16.msrb.mxu2 %v8731_v51 }
 0x2bb   :  { %5455 = vmatpush.bf16.msrb.mxu3 %v8739_v24 }
 0x2bc   :  { %5418 = vmatpush.bf16.msrb.mxu0 %v8713_v28  ;;  %5431 = vmatpush.bf16.msrb.mxu1 %v8721_v40 }
 0x2be   :  { %5443 = vmatpush.bf16.msrb.mxu2 %v8730_v41 }
 0x2bf   :  { %5456 = vmatpush.bf16.msrb.mxu3 %v8738_v16 }
 0x2c0   :  { %5419 = vmatpush.bf16.msrb.mxu0 %v8712_v37  ;;  %5432 = vmatpush.bf16.msrb.mxu1 %v8720_v43 }
 0x2c2   :  { %5444 = vmatpush.bf16.msrb.mxu2 %v8729_v4 }
 0x2c3   :  { %5457 = vmatpush.bf16.msrb.mxu3 %v8737_v29 }
 0x2c4   :  { %5420 = vmatpush.bf16.msrb.mxu0 %v8711_v46  ;;  %5433 = vmatpush.bf16.msrb.mxu1 %v8719_v50  ;;  %v4675_v1 = vpop.f32.mrf.mxu0 }
 0x2c5   :  { %v4676_v5 = vadd.f32 %v4675_v1, %v4663_v2  ;;  %v8760_v2 = vld [vmem:[%s9485_s11] ss:$0 sm:$0xff]  ;;  %s9052_s11 = smov [#allocation18]  }
 0x2c6   :  { %5445 = vmatpush.bf16.msrb.mxu2 %v8728_v48  ;;  %v4688_v22 = vpop.f32.mrf.mxu1  ;;  %s5490_s13 = sshll.u32 %s9052_s11, 4  ;;  %s5491_s13 = int_to_ptr.vmem [resolvable:$true] %s5490_s13 }
 0x2c7   :  { %5421 = vmatmul.bf16.vlgmr.msrb.gmra.mxu0 %v4835_v32  ;;  %5434 = vmatmul.bf16.vlgmr.msrb.gmra.mxu1 %v4836_v55  ;;  %v4689_v60 = vadd.f32 %v4688_v22, %v4676_v5  ;;  %v8759_v55 = vld [vmem:[%s9483_s9] ss:$0 sm:$0xff]  ;;  %s5501_s9 = sshll.u32 %s9051_s23, 4  ;;  %s5502_s9 = int_to_ptr.vmem [resolvable:$true] %s5501_s9 }
 0x2c8   :  { %5458 = vmatpush.bf16.msrb.mxu3 %v8736_v47 }
 0x2ca   :  { %5446 = vmatpush.bf16.msrb.mxu2 %v8727_v35 }
 0x2cc   :  { %v4677_v7 = vpop.f32.mrf.mxu0  ;;  %5459 = vmatpush.bf16.msrb.mxu3 %v8735_v59 }
 0x2ce   :  { %v4690_v53 = vpop.f32.mrf.mxu1 }
 0x2d0   :  { %v4701_v10 = vpop.f32.mrf.mxu2 }
 0x2d1   :  { %v4702_v12 = vadd.f32 %v4701_v10, %v4689_v60  ;;  %v4714_v33 = vpop.f32.mrf.mxu3 }
 0x2d3   :  { %v4715_v11 = vadd.f32 %v4714_v33, %v4702_v12 }
 0x2d5   :  { %vm4824_vm7 = vcmp.gt.f32.partialorder %v4715_v11, 0.0  ;;  %v4829_v62 = vmul.f32 %v9452_v19, %v4715_v11 }
 0x2d7   :  { %v4833_v52 = vsel %vm4824_vm7, %v4715_v11, %v4829_v62 }
 0x2d8   :  { %v4837_v18 = vpack.c.bf16 %v4833_v52, %v4833_v52  ;;  %v4703_v17 = vpop.f32.mrf.mxu2 }
 0x2d9   :  { %v4716_v20 = vpop.f32.mrf.mxu3 }
 0x2da   :  { %5447 = vmatmul.bf16.vlgmr.msrb.gmra.mxu2 %v4837_v18 }
 0x2e4   :  { %v4727_v27 = vpop.f32.mrf.mxu0 }
 0x2e5   :  { %v4728_v51 = vadd.f32 %v4727_v27, %v3121_v9 }
 0x2e6   :  { %v4740_v23 = vpop.f32.mrf.mxu1 }
 0x2e7   :  { %v4741_v14 = vadd.f32 %v4740_v23, %v4728_v51 }
 0x2ec   :  { %v4729_v56 = vpop.f32.mrf.mxu0 }
 0x2ee   :  { %v4742_v58 = vpop.f32.mrf.mxu1 }
 0x2f0   :  { %v4753_v63 = vpop.f32.mrf.mxu2 }
 0x2f1   :  { %v4766_v30 = vpop.f32.mrf.mxu3  ;;  %v4754_v40 = vadd.f32 %v4753_v63, %v4741_v14 }
 0x2f3   :  { %v4767_v42 = vadd.f32 %v4766_v30, %v4754_v40 }
 0x2f8   :  { %v4755_v31 = vpop.f32.mrf.mxu2 }
 0x2f9   :  { %v4768_v6 = vpop.f32.mrf.mxu3 }
 0x304   :  { %v4779_v28 = vpop.f32.mrf.mxu0 }
 0x305   :  { %v4780_v38 = vadd.f32 %v4779_v28, %v4767_v42 }
 0x306   :  { %v4792_v41 = vpop.f32.mrf.mxu1 }
 0x307   :  { %v4793_v43 = vadd.f32 %v4792_v41, %v4780_v38 }
 0x30c   :  { %v4781_v21 = vpop.f32.mrf.mxu0 }
 0x30e   :  { %v4794_v37 = vpop.f32.mrf.mxu1 }
 0x310   :  { %v4805_v44 = vpop.f32.mrf.mxu2 }
 0x311   :  { %v4806_v4 = vadd.f32 %v4805_v44, %v4793_v43  ;;  %v4818_v34 = vpop.f32.mrf.mxu3 }
 0x313   :  { %v4819_v26 = vadd.f32 %v4818_v34, %v4806_v4 }
 0x315   :  { %vm4825_vm8 = vcmp.gt.f32.partialorder %v4819_v26, 0.0  ;;  %v4830_v8 = vmul.f32 %v9452_v19, %v4819_v26 }
 0x317   :  { %v4834_v46 = vsel %vm4825_vm8, %v4819_v26, %v4830_v8 }
 0x318   :  { %v4838_v50 = vpack.c.bf16 %v4834_v46, %v4834_v46  ;;  %v4807_v25 = vpop.f32.mrf.mxu2 }
 0x319   :  { %v4820_v48 = vpop.f32.mrf.mxu3 }
 0x31a   :  { %5460 = vmatmul.bf16.vlgmr.msrb.gmra.mxu3 %v4838_v50 }
 0x324   :  { %v5108_v54 = vpop.f32.mrf.mxu0 }
 0x325   :  { %v5109_v35 = vadd.f32 %v8759_v55, %v5108_v54 }
 0x326   :  { %v5121_v32 = vpop.f32.mrf.mxu1 }
 0x327   :  { %v5122_v61 = vadd.f32 %v5121_v32, %v5109_v35 }
 0x32c   :  { %v5110_v36 = vpop.f32.mrf.mxu0 }
 0x32e   :  { %v5123_v39 = vpop.f32.mrf.mxu1 }
 0x330   :  { %v5134_v57 = vpop.f32.mrf.mxu2 }
 0x331   :  { %v5135_v49 = vadd.f32 %v5134_v57, %v5122_v61  ;;  %v5147_v0 = vpop.f32.mrf.mxu3 }
 0x333   :  { %v5148_v1 = vadd.f32 %v5147_v0, %v5135_v49 }
 0x335   :  { %8761 = vtanh.f32 %v5148_v1 }
 0x338   :  { %v5136_v19 = vpop.f32.mrf.mxu2 }
 0x339   :  { %v5149_v13 = vpop.f32.mrf.mxu3 }
 0x33b   :  { %v8762_v22 = vpop.eup %8761 }
 0x33c   :  { %5152 = vst [vmem:[#allocation19] sm:$0xff] %v8762_v22 }
 0x33d   :  { %5506 = dma.vmem_to_hbm [thread:$0]  %s5502_s9, 128, %s5504_s24, [#allocation20]  }
 0x344   :  { %v5422_v5 = vpop.f32.mrf.mxu0  ;;  %v5435_v53 = vpop.f32.mrf.mxu1 }
 0x345   :  { %v5423_v7 = vadd.f32 %v8760_v2, %v5422_v5 }
 0x347   :  { %v5436_v60 = vadd.f32 %v5435_v53, %v5423_v7 }
 0x34c   :  { %v5424_v10 = vpop.f32.mrf.mxu0  ;;  %v5437_v12 = vpop.f32.mrf.mxu1 }
 0x35d   :  { %v5448_v33 = vpop.f32.mrf.mxu2 }
 0x35e   :  { %v5449_v45 = vadd.f32 %v5448_v33, %v5436_v60 }
 0x365   :  { %v5450_v11 = vpop.f32.mrf.mxu2 }
 0x39d   :  { %v5461_v62 = vpop.f32.mrf.mxu3 }
 0x39e   :  { %v5462_v3 = vadd.f32 %v5461_v62, %v5449_v45 }
 0x3a0   :  { %v8102_v52 = vmul.f32 -1.442695, %v5462_v3 }
 0x3a2   :  { %8763 = vpow2.f32 %v8102_v52 }
 0x3a5   :  { %v5463_v18 = vpop.f32.mrf.mxu3 }
 0x3a8   :  { %v8764_v17 = vpop.eup %8763 }
 0x3a9   :  { %v5468_v20 = vadd.f32 1.0, %v8764_v17 }
 0x3ab   :  { %8765 = vrcp.f32 %v5468_v20  ;;  %v5480_v23 = vand.u32 2147483648, %v5468_v20  ;;  %v5478_v29 = vand.u32 2147483647, %v5468_v20  ;;  %vm5474_vm10 = vweird.f32 %v5468_v20 }
 0x3ad   :  { %v5481_v58 = vor.u32 1.1754944e-38, %v5480_v23  ;;  %vm5479_vm12 = vcmp.eq.f32.partialorder %v5478_v29, 8.507059e+37 }
 0x3b1   :  { %v8766_v15 = vpop.eup %8765 }
 0x3b2   :  { %v5470_v24 = vmul.f32 %v8766_v15, %v5468_v20  ;;  %vm5475_vm9 = vweird.f32 %v8766_v15 }
 0x3b3   :  { %vm5476_vm11 = vmor %vm5474_vm10, %vm5475_vm9 }
 0x3b4   :  { %v5471_v27 = vsub.f32 1.0, %v5470_v24 }
 0x3b6   :  { %v5472_v16 = vmul.f32 %v8766_v15, %v5471_v27 }
 0x3b8   :  { %v5473_v56 = vadd.f32 %v8766_v15, %v5472_v16 }
 0x3ba   :  { %v5477_v47 = vsel %vm5476_vm11, %v8766_v15, %v5473_v56 }
 0x3bb   :  { %v5482_v63 = vsel %vm5479_vm12, %v5481_v58, %v5477_v47 }
 0x3bc   :  { %5484 = vst [vmem:[#allocation18] sm:$0xff] %v5482_v63 }
 0x3bd   :  { %5495 = dma.vmem_to_hbm [thread:$0]  %s5491_s13, 128, %s5493_s27, [#allocation4]  }
 0x3be   :  { %9033 = dma.done.wait [#allocation4], 128  }
 0x3bf   :  { %9034 = vsyncadd [#allocation4], 4294967168 }
 0x3c0   :  { %9035 = dma.done.wait [#allocation20], 128  }
 0x3c1   :  { %9036 = vsyncadd [#allocation20], 4294967168 }
 0x3c2   :  { %5515 = vsyncpa [#allocation3], 1 }
 0x3c3   :  { %5516 = vsyncpa [#allocation8], 1 }
 0x3c4   :  { %5517 = vsyncpa [#allocation11], 1 }
 0x3c5   :  { %5518 = vsyncpa [#allocation14], 1 }
 0x3c6   :  { %5519 = vsyncpa [#allocation17], 1 }
 0x3c7   :  { %5520 = vsyncpa [#allocation4], 1 }
 0x3c8   :  { %5521 = vsyncpa [#allocation20], 1 }
 0x3c9   :  { %5522 = vsyncpa [#allocation5], 1 }

</bundles_post_ra>
